<compile_context>
chip_gen: v7x
topology: tpu7x:2x2x1
jax: 0.10.0
libtpu: 0.0.40
codegen_flags: <defaults>
</compile_context>

<pallas_src>
import functools

import jax
import jax.numpy as jnp
from jax.experimental import pallas as pl
from jax.experimental.pallas import tpu as pltpu


# ---------------------------------------------------------------------------
# Kernel 1: row-tiled projections (value / gates / qk / intermediate).
# ---------------------------------------------------------------------------
def _mega_proj_kernel(x_ref, ema_ref,
                      wv_ref, bv_ref,
                      wrg_ref, brg_ref,
                      wqk_ref, bqk_ref,
                      wag_ref, bag_ref,
                      wit_ref, bit_ref,
                      qkw_ref, qkb_ref,
                      q_ref, k_ref, v_ref, ag_ref, rg_ref, it_ref):
    xb = x_ref[...]                                   # (TM, D) bf16
    eb = ema_ref[...]                                 # (TM, D) bf16

    # value branch uses the original input x.
    value = jnp.maximum(
        jnp.dot(xb, wv_ref[...], preferred_element_type=jnp.float32)
        + bv_ref[...], 0.0)                           # (TM, V) f32

    # proj_mx, split into four lane-aligned per-chunk matmuls.
    rg = jax.nn.sigmoid(
        jnp.dot(eb, wrg_ref[...], preferred_element_type=jnp.float32)
        + brg_ref[...])                               # (TM, D)
    qk = jnp.maximum(
        jnp.dot(eb, wqk_ref[...], preferred_element_type=jnp.float32)
        + bqk_ref[...], 0.0)                          # (TM, QK)
    ag = jnp.maximum(
        jnp.dot(eb, wag_ref[...], preferred_element_type=jnp.float32)
        + bag_ref[...], 0.0)                          # (TM, V)
    it = (jnp.dot(eb, wit_ref[...], preferred_element_type=jnp.float32)
          + bit_ref[...])                             # (TM, D)

    # query scaling is already folded into qkw[0]/qkb[0] by the wrapper.
    q_ref[...] = (qk * qkw_ref[0:1, :] + qkb_ref[0:1, :]).astype(q_ref.dtype)
    k_ref[...] = (qk * qkw_ref[1:2, :] + qkb_ref[1:2, :]).astype(k_ref.dtype)
    v_ref[...] = value.astype(v_ref.dtype)
    ag_ref[...] = ag.astype(ag_ref.dtype)
    rg_ref[...] = rg
    it_ref[...] = it


# ---------------------------------------------------------------------------
# Kernel 2: flash attention (online softmax over kv tiles) + gated output.
# ---------------------------------------------------------------------------
def _mega_attn_kernel(ln_eps,
                      q_ref, k_ref, v_ref, bias_ref, ag_ref, rg_ref, it_ref,
                      x_ref, wh_ref, bh_ref, lnw_ref, lnb_ref,
                      out_ref,
                      m_sc, l_sc, acc_sc):
    kt = pl.program_id(2)

    @pl.when(kt == 0)
    def _():
        m_sc[...] = jnp.full(m_sc.shape, -jnp.inf, jnp.float32)
        l_sc[...] = jnp.zeros(l_sc.shape, jnp.float32)
        acc_sc[...] = jnp.zeros(acc_sc.shape, jnp.float32)

    # scores for this (q-tile, kv-tile) block + relative-position bias tile.
    s = (jnp.einsum("bqd,bkd->bqk", q_ref[...], k_ref[...],
                    preferred_element_type=jnp.float32)
         + bias_ref[...])                             # (bt, T, T) f32

    m_prev = m_sc[...]
    m_new = jnp.maximum(m_prev, jnp.max(s, axis=-1, keepdims=True))
    alpha = jnp.exp(m_prev - m_new)
    p = jnp.exp(s - m_new)
    l_sc[...] = alpha * l_sc[...] + jnp.sum(p, axis=-1, keepdims=True)
    acc_sc[...] = alpha * acc_sc[...] + jnp.einsum(
        "bqk,bkv->bqv", p.astype(jnp.bfloat16), v_ref[...],
        preferred_element_type=jnp.float32)
    m_sc[...] = m_new

    @pl.when(kt == pl.num_programs(2) - 1)
    def _():
        bt, t, v_size = acc_sc.shape
        d = out_ref.shape[-1]
        # deferred softmax normalisation on the small (bt*T, V) accumulator.
        weighted = acc_sc[...] * pl.reciprocal(l_sc[...], approx=True)
        gated = (weighted * ag_ref[...].astype(jnp.float32)).astype(jnp.bfloat16)
        gated = gated.reshape(bt * t, v_size)

        h = jnp.maximum(
            it_ref[...].reshape(bt * t, d)
            + jnp.dot(gated, wh_ref[...], preferred_element_type=jnp.float32)
            + bh_ref[...], 0.0)                       # (bt*T, D)

        x = x_ref[...].reshape(bt * t, d)
        out = x + rg_ref[...].reshape(bt * t, d) * (h - x)

        mean = jnp.mean(out, axis=-1, keepdims=True)
        var = jnp.mean((out - mean) ** 2, axis=-1, keepdims=True)
        out = (out - mean) * jax.lax.rsqrt(var + ln_eps)
        out = out * lnw_ref[...] + lnb_ref[...]
        out_ref[...] = out.reshape(bt, t, d)


# ---------------------------------------------------------------------------
# EMA (FFT convolution, wrapper side) and relative-position bias helpers.
# ---------------------------------------------------------------------------
def compute_ema_kernel(damping, decay, expansion, proj, num_heads, K):
    """EMA kernel (D, K), following MultiHeadDampedEMA.compute_ema_kernel."""
    p = jax.nn.sigmoid(damping)                       # (D, H, 1)
    q = 1.0 - p * jax.nn.sigmoid(decay)               # (D, H, 1)
    vander = jnp.arange(K, dtype=jnp.float32).reshape(1, 1, K) * jnp.log(q)
    kern = (p * expansion) * jnp.exp(vander)          # (D, H, K)
    return jnp.einsum("dnl,dn->dl", kern, proj * (num_heads ** -0.5))


def ema_forward(x_bld, P, num_heads, out_dtype=jnp.float32):
    """MultiHeadDampedEMA forward (no mask / state), FFT path, f32 compute."""
    B, L, D = x_bld.shape
    kern = compute_ema_kernel(P["damping"], P["decay"], P["expansion"],
                              P["proj"], num_heads, L)               # (D, L)
    xp = jnp.transpose(x_bld, (0, 2, 1))                             # (B, D, L)
    n = 2 * L
    conv = jnp.fft.irfft(jnp.fft.rfft(xp, n=n) * jnp.fft.rfft(kern, n=n),
                         n=n)[..., :L]
    ema_res = x_bld * P["ema_residual"]
    out = jax.nn.relu(jnp.transpose(conv, (0, 2, 1)) + ema_res)      # (B, L, D)
    return out.astype(out_dtype)


def rel_bias_matrix(b_param, max_positions, L):
    """Dense bias (reference only): bias[i, j] = b[max_positions - 1 + j - i]."""
    i = jnp.arange(L)[:, None]
    j = jnp.arange(L)[None, :]
    return b_param[max_positions - 1 + j - i]


def rel_bias_tiles(b_param, max_positions, L, T):
    """Per-tile-diagonal bias strips: tile d == bias block for kt - qt == d - (nq-1)."""
    nq = L // T
    ndiag = 2 * nq - 1
    delta = jnp.arange(ndiag, dtype=jnp.int32) - (nq - 1)
    i = jnp.arange(T, dtype=jnp.int32)[:, None]
    j = jnp.arange(T, dtype=jnp.int32)[None, :]
    idx = (max_positions - 1) + delta[:, None, None] * T + (j - i)[None, :, :]
    return b_param[idx].astype(jnp.float32)           # (ndiag, T, T)


# ---------------------------------------------------------------------------
# Per-generation VMEM budget and tile pickers.
# ---------------------------------------------------------------------------
def _vmem_capacity_bytes():
    try:
        return int(pltpu.get_tpu_info().vmem_capacity_bytes)
    except Exception:
        return 128 * 1024 * 1024


def _vmem_limit_bytes():
    cap = _vmem_capacity_bytes()
    return max(32 * 1024 * 1024, min(int(cap * 3 // 4), 96 * 1024 * 1024))


def _proj_row_bytes(D, QK, V):
    ins = 2 * (2 * D * 2)                              # x, ema bf16, 2-buffered
    outs = 2 * (2 * QK * 2 + 2 * V * 2 + 2 * D * 4)    # q,k,v,ag (bf16), rg,it (f32)
    interm = 4 * (2 * V + QK + 2 * D)                  # f32 temporaries
    return ins + outs + interm


def _pick_row_tile(R, budget, row_bytes, cap=2048):
    divs = [r for r in range(1, R + 1) if R % r == 0 and (r % 8 == 0 or r == R)]
    fit = [r for r in divs if r <= cap and r * row_bytes <= budget]
    if not fit:
        fit = [min(divs)]
    pref = [r for r in fit if R // r >= 2]             # >= 2 parallel programs
    return max(pref) if pref else max(fit)


def _attn_tile_bytes(bt, T, D, QK, V):
    blk = bt * T
    ins = 2 * (2 * blk * QK * 2 + 2 * blk * V * 2 + T * T * 4 + 3 * blk * D * 4)
    outs = 2 * blk * D * 4
    scratch = blk * (2 * 4 + V * 4)
    interm = 2 * bt * T * T * 4 + 2 * blk * V * 4
    weights = V * D * 2 + 3 * D * 4
    return ins + outs + scratch + interm + weights


def _pick_attn_tiles(B, L, D, QK, V, budget, seq_tile=None):
    def _ok(t):
        return t == L or t % 8 == 0

    if seq_tile is not None:
        assert L % seq_tile == 0 and _ok(seq_tile)
        seq_divs = [seq_tile]
    else:
        seq_divs = [t for t in range(1, min(L, 512) + 1)
                    if L % t == 0 and _ok(t)]
        if not seq_divs:
            seq_divs = [L]
    b_divs = [b for b in range(1, B + 1) if B % b == 0]

    best_key, best = None, None
    for T in seq_divs:
        for bt in b_divs:
            if _attn_tile_bytes(bt, T, D, QK, V) > budget:
                continue
            nprog = (B // bt) * (L // T)
            key = (nprog >= 2, bt * T, T)
            if best_key is None or key > best_key:
                best_key, best = key, (bt, T)
    if best is None:
        best = (1, min(seq_divs))
    return best


# ---------------------------------------------------------------------------
# Wrapper calling the two pallas_calls.
# ---------------------------------------------------------------------------
def mega_forward_pallas(x_lbd, P, *, size, num_heads, qk_size, v_size,
                        max_positions, seq_tile=None,
                        single_buffer_consts=True):
    L, B, D = x_lbd.shape
    assert D == size
    assert L <= max_positions, "RelativePositionBias requires L <= max_positions"

    vmem_limit = _vmem_limit_bytes()
    tile_budget = int(vmem_limit * 0.6)

    x_bld = jnp.transpose(x_lbd, (1, 0, 2)).astype(jnp.float32)      # (B, L, D)
    # EMA via XLA FFT, emitted directly in bf16 for the projection kernel.
    ema_bld = ema_forward(x_bld, P, num_heads, out_dtype=jnp.bfloat16)

    # ---- one-time parameter preprocessing ----------------------------------
    scaling = qk_size ** (-0.5)
    qkw = P["qk_weight"].astype(jnp.float32).at[0].multiply(scaling)
    qkb = P["qk_bias"].astype(jnp.float32).at[0].multiply(scaling)

    Wmx, bmx = P["Wmx"], P["bmx"]
    s0, s1, s2 = size, size + qk_size, size + qk_size + v_size
    w_rg_t = Wmx[:s0].T.astype(jnp.bfloat16)
    w_qk_t = Wmx[s0:s1].T.astype(jnp.bfloat16)
    w_ag_t = Wmx[s1:s2].T.astype(jnp.bfloat16)
    w_it_t = Wmx[s2:].T.astype(jnp.bfloat16)
    b_rg = bmx[:s0].reshape(1, size).astype(jnp.float32)
    b_qk = bmx[s0:s1].reshape(1, qk_size).astype(jnp.float32)
    b_ag = bmx[s1:s2].reshape(1, v_size).astype(jnp.float32)
    b_it = bmx[s2:].reshape(1, size).astype(jnp.float32)

    wv_t = P["Wv"].T.astype(jnp.bfloat16)
    bv = P["bv"].reshape(1, v_size).astype(jnp.float32)
    wh_t = P["Wh"].T.astype(jnp.bfloat16)
    bh = P["bh"].reshape(1, size).astype(jnp.float32)
    lnw = P["ln_w"].reshape(1, size).astype(jnp.float32)
    lnb = P["ln_b"].reshape(1, size).astype(jnp.float32)

    def _const_spec(arr):
        idx = lambda *_g, _nd=arr.ndim: (0,) * _nd
        if single_buffer_consts:
            # constant index_map across the grid -> a single buffer suffices.
            return pl.BlockSpec(arr.shape, idx, pipeline_mode=pl.Buffered(1))
        return pl.BlockSpec(arr.shape, idx)

    # ============================ kernel 1 ===================================
    R = B * L
    x2 = x_bld.reshape(R, D).astype(jnp.bfloat16)
    ema2 = ema_bld.reshape(R, D)

    row_bytes = _proj_row_bytes(D, qk_size, v_size)
    w_fixed = 2 * D * (2 * v_size + 2 * D + qk_size)
    tm = _pick_row_tile(R, max(tile_budget - w_fixed, row_bytes), row_bytes)

    proj_consts = [wv_t, bv, w_rg_t, b_rg, w_qk_t, b_qk, w_ag_t, b_ag,
                   w_it_t, b_it, qkw, qkb]
    proj_in_specs = ([pl.BlockSpec((tm, D), lambda r: (r, 0)),
                      pl.BlockSpec((tm, D), lambda r: (r, 0))]
                     + [_const_spec(a) for a in proj_consts])
    proj_out_specs = [
        pl.BlockSpec((tm, qk_size), lambda r: (r, 0)),
        pl.BlockSpec((tm, qk_size), lambda r: (r, 0)),
        pl.BlockSpec((tm, v_size), lambda r: (r, 0)),
        pl.BlockSpec((tm, v_size), lambda r: (r, 0)),
        pl.BlockSpec((tm, size), lambda r: (r, 0)),
        pl.BlockSpec((tm, size), lambda r: (r, 0)),
    ]
    proj_out_shape = (
        jax.ShapeDtypeStruct((R, qk_size), jnp.bfloat16),    # query (scaled)
        jax.ShapeDtypeStruct((R, qk_size), jnp.bfloat16),    # key
        jax.ShapeDtypeStruct((R, v_size), jnp.bfloat16),     # value
        jax.ShapeDtypeStruct((R, v_size), jnp.bfloat16),     # attention gate
        jax.ShapeDtypeStruct((R, size), jnp.float32),        # residual gate
        jax.ShapeDtypeStruct((R, size), jnp.float32),        # intermediate
    )

    q2, k2, v2, ag2, rg2, it2 = pl.pallas_call(
        _mega_proj_kernel,
        out_shape=proj_out_shape,
        grid_spec=pltpu.PrefetchScalarGridSpec(
            num_scalar_prefetch=0,
            grid=(R // tm,),
            in_specs=proj_in_specs,
            out_specs=proj_out_specs),
        compiler_params=pltpu.CompilerParams(
            dimension_semantics=("parallel",),
            vmem_limit_bytes=vmem_limit),
    )(x2, ema2, *proj_consts)

    # ============================ kernel 2 ===================================
    bt, T = _pick_attn_tiles(B, L, D, qk_size, v_size, tile_budget,
                             seq_tile=seq_tile)
    nq = L // T
    nkv = L // T

    q3 = q2.reshape(B, L, qk_size)
    k3 = k2.reshape(B, L, qk_size)
    v3 = v2.reshape(B, L, v_size)
    ag3 = ag2.reshape(B, L, v_size)
    rg3 = rg2.reshape(B, L, size)
    it3 = it2.reshape(B, L, size)

    bias_tiles = rel_bias_tiles(P["relpos"], max_positions, L, T)    # (2nq-1,T,T)

    attn_in_specs = [
        pl.BlockSpec((bt, T, qk_size), lambda b, qt, kt: (b, qt, 0)),   # q
        pl.BlockSpec((bt, T, qk_size), lambda b, qt, kt: (b, kt, 0)),   # k
        pl.BlockSpec((bt, T, v_size), lambda b, qt, kt: (b, kt, 0)),    # v
        pl.BlockSpec((1, T, T),
                     lambda b, qt, kt: (kt - qt + nq - 1, 0, 0)),       # bias tile
        pl.BlockSpec((bt, T, v_size), lambda b, qt, kt: (b, qt, 0)),    # att gate
        pl.BlockSpec((bt, T, size), lambda b, qt, kt: (b, qt, 0)),      # res gate
        pl.BlockSpec((bt, T, size), lambda b, qt, kt: (b, qt, 0)),      # inter
        pl.BlockSpec((bt, T, size), lambda b, qt, kt: (b, qt, 0)),      # x residual
        _const_spec(wh_t), _const_spec(bh), _const_spec(lnw), _const_spec(lnb),
    ]

    attn_kernel = functools.partial(_mega_attn_kernel, 1e-5)

    out_bld = pl.pallas_call(
        attn_kernel,
        out_shape=jax.ShapeDtypeStruct((B, L, D), jnp.float32),
        grid_spec=pltpu.PrefetchScalarGridSpec(
            num_scalar_prefetch=0,
            grid=(B // bt, nq, nkv),
            in_specs=attn_in_specs,
            out_specs=pl.BlockSpec((bt, T, size), lambda b, qt, kt: (b, qt, 0)),
            scratch_shapes=[pltpu.VMEM((bt, T, 1), jnp.float32),      # m
                            pltpu.VMEM((bt, T, 1), jnp.float32),      # l
                            pltpu.VMEM((bt, T, v_size), jnp.float32)]  # acc
        ),
        compiler_params=pltpu.CompilerParams(
            dimension_semantics=("parallel", "parallel", "arbitrary"),
            vmem_limit_bytes=vmem_limit),
    )(q3, k3, v3, bias_tiles, ag3, rg3, it3, x_bld, wh_t, bh, lnw, lnb)

    return jnp.transpose(out_bld, (1, 0, 2))                         # (L, B, D)


# ---------------------------------------------------------------------------
# Pure-JAX reference (mirrors the PyTorch forward, all f32, FFT-based EMA).
# ---------------------------------------------------------------------------
def mega_reference(x_lbd, P, *, size, num_heads, qk_size, v_size,
                   max_positions):
    L, B, D = x_lbd.shape
    residual = x_lbd
    value = jax.nn.relu(x_lbd @ P["Wv"].T + P["bv"])

    ema_out_bld = ema_forward(jnp.transpose(x_lbd, (1, 0, 2)), P, num_heads)
    ema_out = jnp.transpose(ema_out_bld, (1, 0, 2))                  # (L, B, D)

    base = ema_out @ P["Wmx"].T + P["bmx"]
    rg = jax.nn.sigmoid(base[..., :size])
    qg = jax.nn.relu(base[..., size:size + qk_size + v_size])
    inter = base[..., size + qk_size + v_size:]
    qk = qg[..., :qk_size]
    ag = qg[..., qk_size:]

    q = qk * P["qk_weight"][0] + P["qk_bias"][0]
    k = qk * P["qk_weight"][1] + P["qk_bias"][1]
    q = jnp.transpose(q, (1, 0, 2)) * (qk_size ** -0.5)
    k = jnp.transpose(k, (1, 0, 2))
    v = jnp.transpose(value, (1, 0, 2))

    bias = rel_bias_matrix(P["relpos"], max_positions, L)
    scores = jnp.einsum("bld,bmd->blm", q, k) + bias
    attn = jax.nn.softmax(scores.astype(jnp.float32), axis=-1)
    wo = jnp.einsum("blm,bmv->blv", attn, v)
    wo = jnp.transpose(wo, (1, 0, 2))                                # (L, B, V)

    h = jax.nn.relu(inter + (wo * ag) @ P["Wh"].T + P["bh"])
    out = residual + rg * (h - residual)
    mean = out.mean(-1, keepdims=True)
    var = ((out - mean) ** 2).mean(-1, keepdims=True)
    return (out - mean) / jnp.sqrt(var + 1e-5) * P["ln_w"] + P["ln_b"]


# ---------------------------------------------------------------------------
# Deterministic parameter construction (shapes as in MEGA.__init__).
# ---------------------------------------------------------------------------
def build_params(key, *, size, num_heads, qk_size, v_size, max_positions):
    ks = jax.random.split(key, 10)
    mx_out = qk_size + v_size + 2 * size

    sign = jnp.ones((num_heads, 1), jnp.float32)
    sign = sign.at[1::2].set(-1.0)

    P = {
        "Wv": 0.02 * jax.random.normal(ks[0], (v_size, size), jnp.float32),
        "bv": jnp.zeros((v_size,), jnp.float32),
        "Wmx": 0.02 * jax.random.normal(ks[1], (mx_out, size), jnp.float32),
        "bmx": jnp.zeros((mx_out,), jnp.float32),
        "Wh": 0.02 * jax.random.normal(ks[2], (size, v_size), jnp.float32),
        "bh": jnp.zeros((size,), jnp.float32),
        "qk_weight": 0.02 * jax.random.normal(ks[3], (2, qk_size), jnp.float32),
        "qk_bias": jnp.zeros((2, qk_size), jnp.float32),
        "damping": 0.2 * jax.random.normal(ks[4], (size, num_heads, 1), jnp.float32),
        "decay": 0.2 * jax.random.normal(ks[5], (size, num_heads, 1), jnp.float32),
        "expansion": 0.02 * jax.random.normal(ks[6], (size, num_heads, 1),
                                              jnp.float32) + sign[None],
        "proj": jax.random.normal(ks[7], (size, num_heads), jnp.float32),
        "ema_residual": jax.random.normal(ks[8], (size,), jnp.float32),
        "relpos": 0.02 * jax.random.normal(ks[9], (2 * max_positions - 1,),
                                           jnp.float32),
        "ln_w": jnp.ones((size,), jnp.float32),
        "ln_b": jnp.zeros((size,), jnp.float32),
    }
    return P


if __name__ == "__main__":
    SIZE, NUM_HEADS, QK, V = 32, 4, 16, 64
    L, B = 16, 2
    MAX_POS = 64
    SEQ_TILE = 8   # force >1 q/kv tile so the flash accumulation path is exercised

    key = jax.random.PRNGKey(0)
    k_par, k_x = jax.random.split(key)
    params = build_params(k_par, size=SIZE, num_heads=NUM_HEADS,
                          qk_size=QK, v_size=V, max_positions=MAX_POS)
    x = jax.random.normal(k_x, (L, B, SIZE), jnp.float32)   # PyTorch (L, B, size)

    cfg = dict(size=SIZE, num_heads=NUM_HEADS, qk_size=QK, v_size=V,
               max_positions=MAX_POS, seq_tile=SEQ_TILE)

    try:
        out = jax.block_until_ready(
            mega_forward_pallas(x, params, **cfg, single_buffer_consts=True))
    except Exception:
        # Fallback if this JAX build rejects pipeline_mode=pl.Buffered(1).
        out = jax.block_until_ready(
            mega_forward_pallas(x, params, **cfg, single_buffer_consts=False))

    ref = jax.block_until_ready(
        mega_reference(x, params, size=SIZE, num_heads=NUM_HEADS,
                       qk_size=QK, v_size=V, max_positions=MAX_POS))

    assert out.shape == (L, B, SIZE)
    assert bool(jnp.all(jnp.isfinite(out)))
    assert bool(jnp.allclose(out, ref, atol=3e-2, rtol=3e-2))

    print("KERNEL_OK")
</pallas_src>

<mosaic_0001>
module attributes {stable_mosaic.version = 11 : i64} {
  func.func @_mega_proj_kernel(%arg0: i32, %arg1: memref<16x32xbf16, #tpu.memory_space<vmem>>, %arg2: memref<16x32xbf16, #tpu.memory_space<vmem>>, %arg3: memref<32x64xbf16, #tpu.memory_space<vmem>>, %arg4: memref<1x64xf32, #tpu.memory_space<vmem>>, %arg5: memref<32x32xbf16, #tpu.memory_space<vmem>>, %arg6: memref<1x32xf32, #tpu.memory_space<vmem>>, %arg7: memref<32x16xbf16, #tpu.memory_space<vmem>>, %arg8: memref<1x16xf32, #tpu.memory_space<vmem>>, %arg9: memref<32x64xbf16, #tpu.memory_space<vmem>>, %arg10: memref<1x64xf32, #tpu.memory_space<vmem>>, %arg11: memref<32x32xbf16, #tpu.memory_space<vmem>>, %arg12: memref<1x32xf32, #tpu.memory_space<vmem>>, %arg13: memref<2x16xf32, #tpu.memory_space<vmem>>, %arg14: memref<2x16xf32, #tpu.memory_space<vmem>>, %arg15: memref<16x16xbf16, #tpu.memory_space<vmem>>, %arg16: memref<16x16xbf16, #tpu.memory_space<vmem>>, %arg17: memref<16x64xbf16, #tpu.memory_space<vmem>>, %arg18: memref<16x64xbf16, #tpu.memory_space<vmem>>, %arg19: memref<16x32xf32, #tpu.memory_space<vmem>>, %arg20: memref<16x32xf32, #tpu.memory_space<vmem>>) attributes {dimension_semantics = [#tpu.dimension_semantics<parallel>], iteration_bounds = array<i64: 2>, scalar_prefetch = 0 : i64, scratch_operands = 0 : i64, tpu.core_type = #tpu.core_type<tc>, window_params = [{transform_indices = @transform_0, window_bounds = array<i64: 16, 32>}, {transform_indices = @transform_1, window_bounds = array<i64: 16, 32>}, {pipeline_mode = #tpu.pipeline_mode<synchronous>, transform_indices = @transform_2, window_bounds = array<i64: 32, 64>}, {pipeline_mode = #tpu.pipeline_mode<synchronous>, transform_indices = @transform_3, window_bounds = array<i64: 1, 64>}, {pipeline_mode = #tpu.pipeline_mode<synchronous>, transform_indices = @transform_4, window_bounds = array<i64: 32, 32>}, {pipeline_mode = #tpu.pipeline_mode<synchronous>, transform_indices = @transform_5, window_bounds = array<i64: 1, 32>}, {pipeline_mode = #tpu.pipeline_mode<synchronous>, transform_indices = @transform_6, window_bounds = array<i64: 32, 16>}, {pipeline_mode = #tpu.pipeline_mode<synchronous>, transform_indices = @transform_7, window_bounds = array<i64: 1, 16>}, {pipeline_mode = #tpu.pipeline_mode<synchronous>, transform_indices = @transform_8, window_bounds = array<i64: 32, 64>}, {pipeline_mode = #tpu.pipeline_mode<synchronous>, transform_indices = @transform_9, window_bounds = array<i64: 1, 64>}, {pipeline_mode = #tpu.pipeline_mode<synchronous>, transform_indices = @transform_10, window_bounds = array<i64: 32, 32>}, {pipeline_mode = #tpu.pipeline_mode<synchronous>, transform_indices = @transform_11, window_bounds = array<i64: 1, 32>}, {pipeline_mode = #tpu.pipeline_mode<synchronous>, transform_indices = @transform_12, window_bounds = array<i64: 2, 16>}, {pipeline_mode = #tpu.pipeline_mode<synchronous>, transform_indices = @transform_13, window_bounds = array<i64: 2, 16>}, {transform_indices = @transform_14, window_bounds = array<i64: 16, 16>}, {transform_indices = @transform_15, window_bounds = array<i64: 16, 16>}, {transform_indices = @transform_16, window_bounds = array<i64: 16, 64>}, {transform_indices = @transform_17, window_bounds = array<i64: 16, 64>}, {transform_indices = @transform_18, window_bounds = array<i64: 16, 32>}, {transform_indices = @transform_19, window_bounds = array<i64: 16, 32>}]} {
    %c0 = arith.constant 0 : index
    %c0_0 = arith.constant 0 : index
    %0 = vector.load %arg1[%c0, %c0_0] : memref<16x32xbf16, #tpu.memory_space<vmem>>, vector<16x32xbf16>
    %c0_1 = arith.constant 0 : index
    %c0_2 = arith.constant 0 : index
    %1 = vector.load %arg2[%c0_1, %c0_2] : memref<16x32xbf16, #tpu.memory_space<vmem>>, vector<16x32xbf16>
    %c0_3 = arith.constant 0 : index
    %c0_4 = arith.constant 0 : index
    %2 = vector.load %arg3[%c0_3, %c0_4] : memref<32x64xbf16, #tpu.memory_space<vmem>>, vector<32x64xbf16>
    %cst = arith.constant dense<0.000000e+00> : vector<16x64xf32>
    %3 = tpu.matmul %0, %2, %cst {dimension_numbers = #tpu.dot_dimension_numbers<[1], [0], [0], [1], [0, 0, 1, 1], [], []>} : vector<16x32xbf16>, vector<32x64xbf16>, vector<16x64xf32> -> vector<16x64xf32>
    %c0_5 = arith.constant 0 : index
    %c0_6 = arith.constant 0 : index
    %4 = vector.load %arg4[%c0_5, %c0_6] : memref<1x64xf32, #tpu.memory_space<vmem>>, vector<1x64xf32>
    %5 = vector.broadcast %4 : vector<1x64xf32> to vector<16x64xf32>
    %6 = arith.addf %3, %5 : vector<16x64xf32>
    %cst_7 = arith.constant 0.000000e+00 : f32
    %7 = vector.broadcast %cst_7 : f32 to vector<16x64xf32>
    %8 = arith.maximumf %6, %7 : vector<16x64xf32>
    %c0_8 = arith.constant 0 : index
    %c0_9 = arith.constant 0 : index
    %9 = vector.load %arg5[%c0_8, %c0_9] : memref<32x32xbf16, #tpu.memory_space<vmem>>, vector<32x32xbf16>
    %cst_10 = arith.constant dense<0.000000e+00> : vector<16x32xf32>
    %10 = tpu.matmul %1, %9, %cst_10 {dimension_numbers = #tpu.dot_dimension_numbers<[1], [0], [0], [1], [0, 0, 1, 1], [], []>} : vector<16x32xbf16>, vector<32x32xbf16>, vector<16x32xf32> -> vector<16x32xf32>
    %c0_11 = arith.constant 0 : index
    %c0_12 = arith.constant 0 : index
    %11 = vector.load %arg6[%c0_11, %c0_12] : memref<1x32xf32, #tpu.memory_space<vmem>>, vector<1x32xf32>
    %12 = vector.broadcast %11 : vector<1x32xf32> to vector<16x32xf32>
    %13 = arith.addf %10, %12 : vector<16x32xf32>
    %14 = arith.negf %13 : vector<16x32xf32>
    %15 = math.exp %14 : vector<16x32xf32>
    %cst_13 = arith.constant 1.000000e+00 : f32
    %16 = vector.broadcast %cst_13 : f32 to vector<16x32xf32>
    %17 = arith.addf %16, %15 : vector<16x32xf32>
    %18 = arith.divf %16, %17 : vector<16x32xf32>
    %c0_14 = arith.constant 0 : index
    %c0_15 = arith.constant 0 : index
    %19 = vector.load %arg7[%c0_14, %c0_15] : memref<32x16xbf16, #tpu.memory_space<vmem>>, vector<32x16xbf16>
    %cst_16 = arith.constant dense<0.000000e+00> : vector<16x16xf32>
    %20 = tpu.matmul %1, %19, %cst_16 {dimension_numbers = #tpu.dot_dimension_numbers<[1], [0], [0], [1], [0, 0, 1, 1], [], []>} : vector<16x32xbf16>, vector<32x16xbf16>, vector<16x16xf32> -> vector<16x16xf32>
    %c0_17 = arith.constant 0 : index
    %c0_18 = arith.constant 0 : index
    %21 = vector.load %arg8[%c0_17, %c0_18] : memref<1x16xf32, #tpu.memory_space<vmem>>, vector<1x16xf32>
    %22 = vector.broadcast %21 : vector<1x16xf32> to vector<16x16xf32>
    %23 = arith.addf %20, %22 : vector<16x16xf32>
    %cst_19 = arith.constant 0.000000e+00 : f32
    %24 = vector.broadcast %cst_19 : f32 to vector<16x16xf32>
    %25 = arith.maximumf %23, %24 : vector<16x16xf32>
    %c0_20 = arith.constant 0 : index
    %c0_21 = arith.constant 0 : index
    %26 = vector.load %arg9[%c0_20, %c0_21] : memref<32x64xbf16, #tpu.memory_space<vmem>>, vector<32x64xbf16>
    %cst_22 = arith.constant dense<0.000000e+00> : vector<16x64xf32>
    %27 = tpu.matmul %1, %26, %cst_22 {dimension_numbers = #tpu.dot_dimension_numbers<[1], [0], [0], [1], [0, 0, 1, 1], [], []>} : vector<16x32xbf16>, vector<32x64xbf16>, vector<16x64xf32> -> vector<16x64xf32>
    %c0_23 = arith.constant 0 : index
    %c0_24 = arith.constant 0 : index
    %28 = vector.load %arg10[%c0_23, %c0_24] : memref<1x64xf32, #tpu.memory_space<vmem>>, vector<1x64xf32>
    %29 = vector.broadcast %28 : vector<1x64xf32> to vector<16x64xf32>
    %30 = arith.addf %27, %29 : vector<16x64xf32>
    %cst_25 = arith.constant 0.000000e+00 : f32
    %31 = vector.broadcast %cst_25 : f32 to vector<16x64xf32>
    %32 = arith.maximumf %30, %31 : vector<16x64xf32>
    %c0_26 = arith.constant 0 : index
    %c0_27 = arith.constant 0 : index
    %33 = vector.load %arg11[%c0_26, %c0_27] : memref<32x32xbf16, #tpu.memory_space<vmem>>, vector<32x32xbf16>
    %cst_28 = arith.constant dense<0.000000e+00> : vector<16x32xf32>
    %34 = tpu.matmul %1, %33, %cst_28 {dimension_numbers = #tpu.dot_dimension_numbers<[1], [0], [0], [1], [0, 0, 1, 1], [], []>} : vector<16x32xbf16>, vector<32x32xbf16>, vector<16x32xf32> -> vector<16x32xf32>
    %c0_29 = arith.constant 0 : index
    %c0_30 = arith.constant 0 : index
    %35 = vector.load %arg12[%c0_29, %c0_30] : memref<1x32xf32, #tpu.memory_space<vmem>>, vector<1x32xf32>
    %36 = vector.broadcast %35 : vector<1x32xf32> to vector<16x32xf32>
    %37 = arith.addf %34, %36 : vector<16x32xf32>
    %c0_31 = arith.constant 0 : index
    %c0_32 = arith.constant 0 : index
    %38 = vector.load %arg13[%c0_31, %c0_32] : memref<2x16xf32, #tpu.memory_space<vmem>>, vector<1x16xf32>
    %39 = vector.broadcast %38 : vector<1x16xf32> to vector<16x16xf32>
    %40 = arith.mulf %25, %39 : vector<16x16xf32>
    %c0_33 = arith.constant 0 : index
    %c0_34 = arith.constant 0 : index
    %41 = vector.load %arg14[%c0_33, %c0_34] : memref<2x16xf32, #tpu.memory_space<vmem>>, vector<1x16xf32>
    %42 = vector.broadcast %41 : vector<1x16xf32> to vector<16x16xf32>
    %43 = arith.addf %40, %42 : vector<16x16xf32>
    %44 = arith.truncf %43 : vector<16x16xf32> to vector<16x16xbf16>
    %c0_35 = arith.constant 0 : index
    %c0_36 = arith.constant 0 : index
    %45 = vector.load %arg15[%c0_35, %c0_36] : memref<16x16xbf16, #tpu.memory_space<vmem>>, vector<16x16xbf16>
    tpu.vector_store %arg15[%c0_35, %c0_36], %44 {strides = array<i32>} : memref<16x16xbf16, #tpu.memory_space<vmem>>, vector<16x16xbf16>,
    %c1 = arith.constant 1 : index
    %c0_37 = arith.constant 0 : index
    %46 = vector.load %arg13[%c1, %c0_37] : memref<2x16xf32, #tpu.memory_space<vmem>>, vector<1x16xf32>
    %47 = vector.broadcast %46 : vector<1x16xf32> to vector<16x16xf32>
    %48 = arith.mulf %25, %47 : vector<16x16xf32>
    %c1_38 = arith.constant 1 : index
    %c0_39 = arith.constant 0 : index
    %49 = vector.load %arg14[%c1_38, %c0_39] : memref<2x16xf32, #tpu.memory_space<vmem>>, vector<1x16xf32>
    %50 = vector.broadcast %49 : vector<1x16xf32> to vector<16x16xf32>
    %51 = arith.addf %48, %50 : vector<16x16xf32>
    %52 = arith.truncf %51 : vector<16x16xf32> to vector<16x16xbf16>
    %c0_40 = arith.constant 0 : index
    %c0_41 = arith.constant 0 : index
    %53 = vector.load %arg16[%c0_40, %c0_41] : memref<16x16xbf16, #tpu.memory_space<vmem>>, vector<16x16xbf16>
    tpu.vector_store %arg16[%c0_40, %c0_41], %52 {strides = array<i32>} : memref<16x16xbf16, #tpu.memory_space<vmem>>, vector<16x16xbf16>,
    %54 = arith.truncf %8 : vector<16x64xf32> to vector<16x64xbf16>
    %c0_42 = arith.constant 0 : index
    %c0_43 = arith.constant 0 : index
    %55 = vector.load %arg17[%c0_42, %c0_43] : memref<16x64xbf16, #tpu.memory_space<vmem>>, vector<16x64xbf16>
    tpu.vector_store %arg17[%c0_42, %c0_43], %54 {strides = array<i32>} : memref<16x64xbf16, #tpu.memory_space<vmem>>, vector<16x64xbf16>,
    %56 = arith.truncf %32 : vector<16x64xf32> to vector<16x64xbf16>
    %c0_44 = arith.constant 0 : index
    %c0_45 = arith.constant 0 : index
    %57 = vector.load %arg18[%c0_44, %c0_45] : memref<16x64xbf16, #tpu.memory_space<vmem>>, vector<16x64xbf16>
    tpu.vector_store %arg18[%c0_44, %c0_45], %56 {strides = array<i32>} : memref<16x64xbf16, #tpu.memory_space<vmem>>, vector<16x64xbf16>,
    %c0_46 = arith.constant 0 : index
    %c0_47 = arith.constant 0 : index
    %58 = vector.load %arg19[%c0_46, %c0_47] : memref<16x32xf32, #tpu.memory_space<vmem>>, vector<16x32xf32>
    tpu.vector_store %arg19[%c0_46, %c0_47], %18 {strides = array<i32>} : memref<16x32xf32, #tpu.memory_space<vmem>>, vector<16x32xf32>,
    %c0_48 = arith.constant 0 : index
    %c0_49 = arith.constant 0 : index
    %59 = vector.load %arg20[%c0_48, %c0_49] : memref<16x32xf32, #tpu.memory_space<vmem>>, vector<16x32xf32>
    tpu.vector_store %arg20[%c0_48, %c0_49], %37 {strides = array<i32>} : memref<16x32xf32, #tpu.memory_space<vmem>>, vector<16x32xf32>,
    return
  }
  func.func @transform_0(%arg0: i32) -> (i32, i32) {
    %c0_i32 = arith.constant 0 : i32
    %c0_i32_0 = arith.constant 0 : i32
    return %arg0, %c0_i32 : i32, i32
  }
  func.func @transform_1(%arg0: i32) -> (i32, i32) {
    %c0_i32 = arith.constant 0 : i32
    %c0_i32_0 = arith.constant 0 : i32
    return %arg0, %c0_i32 : i32, i32
  }
  func.func @transform_2(%arg0: i32) -> (i32, i32) {
    %c0_i32 = arith.constant 0 : i32
    %c0_i32_0 = arith.constant 0 : i32
    %c0_i32_1 = arith.constant 0 : i32
    return %c0_i32, %c0_i32_0 : i32, i32
  }
  func.func @transform_3(%arg0: i32) -> (i32, i32) {
    %c0_i32 = arith.constant 0 : i32
    %c0_i32_0 = arith.constant 0 : i32
    %c0_i32_1 = arith.constant 0 : i32
    return %c0_i32, %c0_i32_0 : i32, i32
  }
  func.func @transform_4(%arg0: i32) -> (i32, i32) {
    %c0_i32 = arith.constant 0 : i32
    %c0_i32_0 = arith.constant 0 : i32
    %c0_i32_1 = arith.constant 0 : i32
    return %c0_i32, %c0_i32_0 : i32, i32
  }
  func.func @transform_5(%arg0: i32) -> (i32, i32) {
    %c0_i32 = arith.constant 0 : i32
    %c0_i32_0 = arith.constant 0 : i32
    %c0_i32_1 = arith.constant 0 : i32
    return %c0_i32, %c0_i32_0 : i32, i32
  }
  func.func @transform_6(%arg0: i32) -> (i32, i32) {
    %c0_i32 = arith.constant 0 : i32
    %c0_i32_0 = arith.constant 0 : i32
    %c0_i32_1 = arith.constant 0 : i32
    return %c0_i32, %c0_i32_0 : i32, i32
  }
  func.func @transform_7(%arg0: i32) -> (i32, i32) {
    %c0_i32 = arith.constant 0 : i32
    %c0_i32_0 = arith.constant 0 : i32
    %c0_i32_1 = arith.constant 0 : i32
    return %c0_i32, %c0_i32_0 : i32, i32
  }
  func.func @transform_8(%arg0: i32) -> (i32, i32) {
    %c0_i32 = arith.constant 0 : i32
    %c0_i32_0 = arith.constant 0 : i32
    %c0_i32_1 = arith.constant 0 : i32
    return %c0_i32, %c0_i32_0 : i32, i32
  }
  func.func @transform_9(%arg0: i32) -> (i32, i32) {
    %c0_i32 = arith.constant 0 : i32
    %c0_i32_0 = arith.constant 0 : i32
    %c0_i32_1 = arith.constant 0 : i32
    return %c0_i32, %c0_i32_0 : i32, i32
  }
  func.func @transform_10(%arg0: i32) -> (i32, i32) {
    %c0_i32 = arith.constant 0 : i32
    %c0_i32_0 = arith.constant 0 : i32
    %c0_i32_1 = arith.constant 0 : i32
    return %c0_i32, %c0_i32_0 : i32, i32
  }
  func.func @transform_11(%arg0: i32) -> (i32, i32) {
    %c0_i32 = arith.constant 0 : i32
    %c0_i32_0 = arith.constant 0 : i32
    %c0_i32_1 = arith.constant 0 : i32
    return %c0_i32, %c0_i32_0 : i32, i32
  }
  func.func @transform_12(%arg0: i32) -> (i32, i32) {
    %c0_i32 = arith.constant 0 : i32
    %c0_i32_0 = arith.constant 0 : i32
    %c0_i32_1 = arith.constant 0 : i32
    return %c0_i32, %c0_i32_0 : i32, i32
  }
  func.func @transform_13(%arg0: i32) -> (i32, i32) {
    %c0_i32 = arith.constant 0 : i32
    %c0_i32_0 = arith.constant 0 : i32
    %c0_i32_1 = arith.constant 0 : i32
    return %c0_i32, %c0_i32_0 : i32, i32
  }
  func.func @transform_14(%arg0: i32) -> (i32, i32) {
    %c0_i32 = arith.constant 0 : i32
    %c0_i32_0 = arith.constant 0 : i32
    return %arg0, %c0_i32 : i32, i32
  }
  func.func @transform_15(%arg0: i32) -> (i32, i32) {
    %c0_i32 = arith.constant 0 : i32
    %c0_i32_0 = arith.constant 0 : i32
    return %arg0, %c0_i32 : i32, i32
  }
  func.func @transform_16(%arg0: i32) -> (i32, i32) {
    %c0_i32 = arith.constant 0 : i32
    %c0_i32_0 = arith.constant 0 : i32
    return %arg0, %c0_i32 : i32, i32
  }
  func.func @transform_17(%arg0: i32) -> (i32, i32) {
    %c0_i32 = arith.constant 0 : i32
    %c0_i32_0 = arith.constant 0 : i32
    return %arg0, %c0_i32 : i32, i32
  }
  func.func @transform_18(%arg0: i32) -> (i32, i32) {
    %c0_i32 = arith.constant 0 : i32
    %c0_i32_0 = arith.constant 0 : i32
    return %arg0, %c0_i32 : i32, i32
  }
  func.func @transform_19(%arg0: i32) -> (i32, i32) {
    %c0_i32 = arith.constant 0 : i32
    %c0_i32_0 = arith.constant 0 : i32
    return %arg0, %c0_i32 : i32, i32
  }
}

module attributes {stable_mosaic.version = 11 : i64} {
  func.func @_mega_proj_kernel(%arg0: i32, %arg1: memref<16x32xbf16, #tpu.memory_space<vmem>>, %arg2: memref<16x32xbf16, #tpu.memory_space<vmem>>, %arg3: memref<32x64xbf16, #tpu.memory_space<vmem>>, %arg4: memref<1x64xf32, #tpu.memory_space<vmem>>, %arg5: memref<32x32xbf16, #tpu.memory_space<vmem>>, %arg6: memref<1x32xf32, #tpu.memory_space<vmem>>, %arg7: memref<32x16xbf16, #tpu.memory_space<vmem>>, %arg8: memref<1x16xf32, #tpu.memory_space<vmem>>, %arg9: memref<32x64xbf16, #tpu.memory_space<vmem>>, %arg10: memref<1x64xf32, #tpu.memory_space<vmem>>, %arg11: memref<32x32xbf16, #tpu.memory_space<vmem>>, %arg12: memref<1x32xf32, #tpu.memory_space<vmem>>, %arg13: memref<2x16xf32, #tpu.memory_space<vmem>>, %arg14: memref<2x16xf32, #tpu.memory_space<vmem>>, %arg15: memref<16x16xbf16, #tpu.memory_space<vmem>>, %arg16: memref<16x16xbf16, #tpu.memory_space<vmem>>, %arg17: memref<16x64xbf16, #tpu.memory_space<vmem>>, %arg18: memref<16x64xbf16, #tpu.memory_space<vmem>>, %arg19: memref<16x32xf32, #tpu.memory_space<vmem>>, %arg20: memref<16x32xf32, #tpu.memory_space<vmem>>) attributes {dimension_semantics = [#tpu.dimension_semantics<parallel>], iteration_bounds = array<i64: 2>, scalar_prefetch = 0 : i64, scratch_operands = 0 : i64, tpu.core_type = #tpu.core_type<tc>, window_params = [{transform_indices = @transform_0, window_bounds = array<i64: 16, 32>}, {transform_indices = @transform_1, window_bounds = array<i64: 16, 32>}, {pipeline_mode = #tpu.pipeline_mode<synchronous>, transform_indices = @transform_2, window_bounds = array<i64: 32, 64>}, {pipeline_mode = #tpu.pipeline_mode<synchronous>, transform_indices = @transform_3, window_bounds = array<i64: 1, 64>}, {pipeline_mode = #tpu.pipeline_mode<synchronous>, transform_indices = @transform_4, window_bounds = array<i64: 32, 32>}, {pipeline_mode = #tpu.pipeline_mode<synchronous>, transform_indices = @transform_5, window_bounds = array<i64: 1, 32>}, {pipeline_mode = #tpu.pipeline_mode<synchronous>, transform_indices = @transform_6, window_bounds = array<i64: 32, 16>}, {pipeline_mode = #tpu.pipeline_mode<synchronous>, transform_indices = @transform_7, window_bounds = array<i64: 1, 16>}, {pipeline_mode = #tpu.pipeline_mode<synchronous>, transform_indices = @transform_8, window_bounds = array<i64: 32, 64>}, {pipeline_mode = #tpu.pipeline_mode<synchronous>, transform_indices = @transform_9, window_bounds = array<i64: 1, 64>}, {pipeline_mode = #tpu.pipeline_mode<synchronous>, transform_indices = @transform_10, window_bounds = array<i64: 32, 32>}, {pipeline_mode = #tpu.pipeline_mode<synchronous>, transform_indices = @transform_11, window_bounds = array<i64: 1, 32>}, {pipeline_mode = #tpu.pipeline_mode<synchronous>, transform_indices = @transform_12, window_bounds = array<i64: 2, 16>}, {pipeline_mode = #tpu.pipeline_mode<synchronous>, transform_indices = @transform_13, window_bounds = array<i64: 2, 16>}, {transform_indices = @transform_14, window_bounds = array<i64: 16, 16>}, {transform_indices = @transform_15, window_bounds = array<i64: 16, 16>}, {transform_indices = @transform_16, window_bounds = array<i64: 16, 64>}, {transform_indices = @transform_17, window_bounds = array<i64: 16, 64>}, {transform_indices = @transform_18, window_bounds = array<i64: 16, 32>}, {transform_indices = @transform_19, window_bounds = array<i64: 16, 32>}]} {
    %c0 = arith.constant 0 : index
    %c0_0 = arith.constant 0 : index
    %0 = vector.load %arg1[%c0, %c0_0] : memref<16x32xbf16, #tpu.memory_space<vmem>>, vector<16x32xbf16>
    %c0_1 = arith.constant 0 : index
    %c0_2 = arith.constant 0 : index
    %1 = vector.load %arg2[%c0_1, %c0_2] : memref<16x32xbf16, #tpu.memory_space<vmem>>, vector<16x32xbf16>
    %c0_3 = arith.constant 0 : index
    %c0_4 = arith.constant 0 : index
    %2 = vector.load %arg3[%c0_3, %c0_4] : memref<32x64xbf16, #tpu.memory_space<vmem>>, vector<32x64xbf16>
    %cst = arith.constant dense<0.000000e+00> : vector<16x64xf32>
    %3 = tpu.matmul %0, %2, %cst {dimension_numbers = #tpu.dot_dimension_numbers<[1], [0], [0], [1], [0, 0, 1, 1], [], []>} : vector<16x32xbf16>, vector<32x64xbf16>, vector<16x64xf32> -> vector<16x64xf32>
    %c0_5 = arith.constant 0 : index
    %c0_6 = arith.constant 0 : index
    %4 = vector.load %arg4[%c0_5, %c0_6] : memref<1x64xf32, #tpu.memory_space<vmem>>, vector<1x64xf32>
    %5 = vector.broadcast %4 : vector<1x64xf32> to vector<16x64xf32>
    %6 = arith.addf %3, %5 : vector<16x64xf32>
    %cst_7 = arith.constant 0.000000e+00 : f32
    %7 = vector.broadcast %cst_7 : f32 to vector<16x64xf32>
    %8 = arith.maximumf %6, %7 : vector<16x64xf32>
    %c0_8 = arith.constant 0 : index
    %c0_9 = arith.constant 0 : index
    %9 = vector.load %arg5[%c0_8, %c0_9] : memref<32x32xbf16, #tpu.memory_space<vmem>>, vector<32x32xbf16>
    %cst_10 = arith.constant dense<0.000000e+00> : vector<16x32xf32>
    %10 = tpu.matmul %1, %9, %cst_10 {dimension_numbers = #tpu.dot_dimension_numbers<[1], [0], [0], [1], [0, 0, 1, 1], [], []>} : vector<16x32xbf16>, vector<32x32xbf16>, vector<16x32xf32> -> vector<16x32xf32>
    %c0_11 = arith.constant 0 : index
    %c0_12 = arith.constant 0 : index
    %11 = vector.load %arg6[%c0_11, %c0_12] : memref<1x32xf32, #tpu.memory_space<vmem>>, vector<1x32xf32>
    %12 = vector.broadcast %11 : vector<1x32xf32> to vector<16x32xf32>
    %13 = arith.addf %10, %12 : vector<16x32xf32>
    %14 = arith.negf %13 : vector<16x32xf32>
    %15 = math.exp %14 : vector<16x32xf32>
    %cst_13 = arith.constant 1.000000e+00 : f32
    %16 = vector.broadcast %cst_13 : f32 to vector<16x32xf32>
    %17 = arith.addf %16, %15 : vector<16x32xf32>
    %18 = arith.divf %16, %17 : vector<16x32xf32>
    %c0_14 = arith.constant 0 : index
    %c0_15 = arith.constant 0 : index
    %19 = vector.load %arg7[%c0_14, %c0_15] : memref<32x16xbf16, #tpu.memory_space<vmem>>, vector<32x16xbf16>
    %cst_16 = arith.constant dense<0.000000e+00> : vector<16x16xf32>
    %20 = tpu.matmul %1, %19, %cst_16 {dimension_numbers = #tpu.dot_dimension_numbers<[1], [0], [0], [1], [0, 0, 1, 1], [], []>} : vector<16x32xbf16>, vector<32x16xbf16>, vector<16x16xf32> -> vector<16x16xf32>
    %c0_17 = arith.constant 0 : index
    %c0_18 = arith.constant 0 : index
    %21 = vector.load %arg8[%c0_17, %c0_18] : memref<1x16xf32, #tpu.memory_space<vmem>>, vector<1x16xf32>
    %22 = vector.broadcast %21 : vector<1x16xf32> to vector<16x16xf32>
    %23 = arith.addf %20, %22 : vector<16x16xf32>
    %cst_19 = arith.constant 0.000000e+00 : f32
    %24 = vector.broadcast %cst_19 : f32 to vector<16x16xf32>
    %25 = arith.maximumf %23, %24 : vector<16x16xf32>
    %c0_20 = arith.constant 0 : index
    %c0_21 = arith.constant 0 : index
    %26 = vector.load %arg9[%c0_20, %c0_21] : memref<32x64xbf16, #tpu.memory_space<vmem>>, vector<32x64xbf16>
    %cst_22 = arith.constant dense<0.000000e+00> : vector<16x64xf32>
    %27 = tpu.matmul %1, %26, %cst_22 {dimension_numbers = #tpu.dot_dimension_numbers<[1], [0], [0], [1], [0, 0, 1, 1], [], []>} : vector<16x32xbf16>, vector<32x64xbf16>, vector<16x64xf32> -> vector<16x64xf32>
    %c0_23 = arith.constant 0 : index
    %c0_24 = arith.constant 0 : index
    %28 = vector.load %arg10[%c0_23, %c0_24] : memref<1x64xf32, #tpu.memory_space<vmem>>, vector<1x64xf32>
    %29 = vector.broadcast %28 : vector<1x64xf32> to vector<16x64xf32>
    %30 = arith.addf %27, %29 : vector<16x64xf32>
    %cst_25 = arith.constant 0.000000e+00 : f32
    %31 = vector.broadcast %cst_25 : f32 to vector<16x64xf32>
    %32 = arith.maximumf %30, %31 : vector<16x64xf32>
    %c0_26 = arith.constant 0 : index
    %c0_27 = arith.constant 0 : index
    %33 = vector.load %arg11[%c0_26, %c0_27] : memref<32x32xbf16, #tpu.memory_space<vmem>>, vector<32x32xbf16>
    %cst_28 = arith.constant dense<0.000000e+00> : vector<16x32xf32>
    %34 = tpu.matmul %1, %33, %cst_28 {dimension_numbers = #tpu.dot_dimension_numbers<[1], [0], [0], [1], [0, 0, 1, 1], [], []>} : vector<16x32xbf16>, vector<32x32xbf16>, vector<16x32xf32> -> vector<16x32xf32>
    %c0_29 = arith.constant 0 : index
    %c0_30 = arith.constant 0 : index
    %35 = vector.load %arg12[%c0_29, %c0_30] : memref<1x32xf32, #tpu.memory_space<vmem>>, vector<1x32xf32>
    %36 = vector.broadcast %35 : vector<1x32xf32> to vector<16x32xf32>
    %37 = arith.addf %34, %36 : vector<16x32xf32>
    %c0_31 = arith.constant 0 : index
    %c0_32 = arith.constant 0 : index
    %38 = vector.load %arg13[%c0_31, %c0_32] : memref<2x16xf32, #tpu.memory_space<vmem>>, vector<1x16xf32>
    %39 = vector.broadcast %38 : vector<1x16xf32> to vector<16x16xf32>
    %40 = arith.mulf %25, %39 : vector<16x16xf32>
    %c0_33 = arith.constant 0 : index
    %c0_34 = arith.constant 0 : index
    %41 = vector.load %arg14[%c0_33, %c0_34] : memref<2x16xf32, #tpu.memory_space<vmem>>, vector<1x16xf32>
    %42 = vector.broadcast %41 : vector<1x16xf32> to vector<16x16xf32>
    %43 = arith.addf %40, %42 : vector<16x16xf32>
    %44 = arith.truncf %43 : vector<16x16xf32> to vector<16x16xbf16>
    %c0_35 = arith.constant 0 : index
    %c0_36 = arith.constant 0 : index
    %45 = vector.load %arg15[%c0_35, %c0_36] : memref<16x16xbf16, #tpu.memory_space<vmem>>, vector<16x16xbf16>
    tpu.vector_store %arg15[%c0_35, %c0_36], %44 {strides = array<i32>} : memref<16x16xbf16, #tpu.memory_space<vmem>>, vector<16x16xbf16>,
    %c1 = arith.constant 1 : index
    %c0_37 = arith.constant 0 : index
    %46 = vector.load %arg13[%c1, %c0_37] : memref<2x16xf32, #tpu.memory_space<vmem>>, vector<1x16xf32>
    %47 = vector.broadcast %46 : vector<1x16xf32> to vector<16x16xf32>
    %48 = arith.mulf %25, %47 : vector<16x16xf32>
    %c1_38 = arith.constant 1 : index
    %c0_39 = arith.constant 0 : index
    %49 = vector.load %arg14[%c1_38, %c0_39] : memref<2x16xf32, #tpu.memory_space<vmem>>, vector<1x16xf32>
    %50 = vector.broadcast %49 : vector<1x16xf32> to vector<16x16xf32>
    %51 = arith.addf %48, %50 : vector<16x16xf32>
    %52 = arith.truncf %51 : vector<16x16xf32> to vector<16x16xbf16>
    %c0_40 = arith.constant 0 : index
    %c0_41 = arith.constant 0 : index
    %53 = vector.load %arg16[%c0_40, %c0_41] : memref<16x16xbf16, #tpu.memory_space<vmem>>, vector<16x16xbf16>
    tpu.vector_store %arg16[%c0_40, %c0_41], %52 {strides = array<i32>} : memref<16x16xbf16, #tpu.memory_space<vmem>>, vector<16x16xbf16>,
    %54 = arith.truncf %8 : vector<16x64xf32> to vector<16x64xbf16>
    %c0_42 = arith.constant 0 : index
    %c0_43 = arith.constant 0 : index
    %55 = vector.load %arg17[%c0_42, %c0_43] : memref<16x64xbf16, #tpu.memory_space<vmem>>, vector<16x64xbf16>
    tpu.vector_store %arg17[%c0_42, %c0_43], %54 {strides = array<i32>} : memref<16x64xbf16, #tpu.memory_space<vmem>>, vector<16x64xbf16>,
    %56 = arith.truncf %32 : vector<16x64xf32> to vector<16x64xbf16>
    %c0_44 = arith.constant 0 : index
    %c0_45 = arith.constant 0 : index
    %57 = vector.load %arg18[%c0_44, %c0_45] : memref<16x64xbf16, #tpu.memory_space<vmem>>, vector<16x64xbf16>
    tpu.vector_store %arg18[%c0_44, %c0_45], %56 {strides = array<i32>} : memref<16x64xbf16, #tpu.memory_space<vmem>>, vector<16x64xbf16>,
    %c0_46 = arith.constant 0 : index
    %c0_47 = arith.constant 0 : index
    %58 = vector.load %arg19[%c0_46, %c0_47] : memref<16x32xf32, #tpu.memory_space<vmem>>, vector<16x32xf32>
    tpu.vector_store %arg19[%c0_46, %c0_47], %18 {strides = array<i32>} : memref<16x32xf32, #tpu.memory_space<vmem>>, vector<16x32xf32>,
    %c0_48 = arith.constant 0 : index
    %c0_49 = arith.constant 0 : index
    %59 = vector.load %arg20[%c0_48, %c0_49] : memref<16x32xf32, #tpu.memory_space<vmem>>, vector<16x32xf32>
    tpu.vector_store %arg20[%c0_48, %c0_49], %37 {strides = array<i32>} : memref<16x32xf32, #tpu.memory_space<vmem>>, vector<16x32xf32>,
    return
  }
  func.func @transform_0(%arg0: i32) -> (i32, i32) {
    %c0_i32 = arith.constant 0 : i32
    %c0_i32_0 = arith.constant 0 : i32
    return %arg0, %c0_i32 : i32, i32
  }
  func.func @transform_1(%arg0: i32) -> (i32, i32) {
    %c0_i32 = arith.constant 0 : i32
    %c0_i32_0 = arith.constant 0 : i32
    return %arg0, %c0_i32 : i32, i32
  }
  func.func @transform_2(%arg0: i32) -> (i32, i32) {
    %c0_i32 = arith.constant 0 : i32
    %c0_i32_0 = arith.constant 0 : i32
    %c0_i32_1 = arith.constant 0 : i32
    return %c0_i32, %c0_i32_0 : i32, i32
  }
  func.func @transform_3(%arg0: i32) -> (i32, i32) {
    %c0_i32 = arith.constant 0 : i32
    %c0_i32_0 = arith.constant 0 : i32
    %c0_i32_1 = arith.constant 0 : i32
    return %c0_i32, %c0_i32_0 : i32, i32
  }
  func.func @transform_4(%arg0: i32) -> (i32, i32) {
    %c0_i32 = arith.constant 0 : i32
    %c0_i32_0 = arith.constant 0 : i32
    %c0_i32_1 = arith.constant 0 : i32
    return %c0_i32, %c0_i32_0 : i32, i32
  }
  func.func @transform_5(%arg0: i32) -> (i32, i32) {
    %c0_i32 = arith.constant 0 : i32
    %c0_i32_0 = arith.constant 0 : i32
    %c0_i32_1 = arith.constant 0 : i32
    return %c0_i32, %c0_i32_0 : i32, i32
  }
  func.func @transform_6(%arg0: i32) -> (i32, i32) {
    %c0_i32 = arith.constant 0 : i32
    %c0_i32_0 = arith.constant 0 : i32
    %c0_i32_1 = arith.constant 0 : i32
    return %c0_i32, %c0_i32_0 : i32, i32
  }
  func.func @transform_7(%arg0: i32) -> (i32, i32) {
    %c0_i32 = arith.constant 0 : i32
    %c0_i32_0 = arith.constant 0 : i32
    %c0_i32_1 = arith.constant 0 : i32
    return %c0_i32, %c0_i32_0 : i32, i32
  }
  func.func @transform_8(%arg0: i32) -> (i32, i32) {
    %c0_i32 = arith.constant 0 : i32
    %c0_i32_0 = arith.constant 0 : i32
    %c0_i32_1 = arith.constant 0 : i32
    return %c0_i32, %c0_i32_0 : i32, i32
  }
  func.func @transform_9(%arg0: i32) -> (i32, i32) {
    %c0_i32 = arith.constant 0 : i32
    %c0_i32_0 = arith.constant 0 : i32
    %c0_i32_1 = arith.constant 0 : i32
    return %c0_i32, %c0_i32_0 : i32, i32
  }
  func.func @transform_10(%arg0: i32) -> (i32, i32) {
    %c0_i32 = arith.constant 0 : i32
    %c0_i32_0 = arith.constant 0 : i32
    %c0_i32_1 = arith.constant 0 : i32
    return %c0_i32, %c0_i32_0 : i32, i32
  }
  func.func @transform_11(%arg0: i32) -> (i32, i32) {
    %c0_i32 = arith.constant 0 : i32
    %c0_i32_0 = arith.constant 0 : i32
    %c0_i32_1 = arith.constant 0 : i32
    return %c0_i32, %c0_i32_0 : i32, i32
  }
  func.func @transform_12(%arg0: i32) -> (i32, i32) {
    %c0_i32 = arith.constant 0 : i32
    %c0_i32_0 = arith.constant 0 : i32
    %c0_i32_1 = arith.constant 0 : i32
    return %c0_i32, %c0_i32_0 : i32, i32
  }
  func.func @transform_13(%arg0: i32) -> (i32, i32) {
    %c0_i32 = arith.constant 0 : i32
    %c0_i32_0 = arith.constant 0 : i32
    %c0_i32_1 = arith.constant 0 : i32
    return %c0_i32, %c0_i32_0 : i32, i32
  }
  func.func @transform_14(%arg0: i32) -> (i32, i32) {
    %c0_i32 = arith.constant 0 : i32
    %c0_i32_0 = arith.constant 0 : i32
    return %arg0, %c0_i32 : i32, i32
  }
  func.func @transform_15(%arg0: i32) -> (i32, i32) {
    %c0_i32 = arith.constant 0 : i32
    %c0_i32_0 = arith.constant 0 : i32
    return %arg0, %c0_i32 : i32, i32
  }
  func.func @transform_16(%arg0: i32) -> (i32, i32) {
    %c0_i32 = arith.constant 0 : i32
    %c0_i32_0 = arith.constant 0 : i32
    return %arg0, %c0_i32 : i32, i32
  }
  func.func @transform_17(%arg0: i32) -> (i32, i32) {
    %c0_i32 = arith.constant 0 : i32
    %c0_i32_0 = arith.constant 0 : i32
    return %arg0, %c0_i32 : i32, i32
  }
  func.func @transform_18(%arg0: i32) -> (i32, i32) {
    %c0_i32 = arith.constant 0 : i32
    %c0_i32_0 = arith.constant 0 : i32
    return %arg0, %c0_i32 : i32, i32
  }
  func.func @transform_19(%arg0: i32) -> (i32, i32) {
    %c0_i32 = arith.constant 0 : i32
    %c0_i32_0 = arith.constant 0 : i32
    return %arg0, %c0_i32 : i32, i32
  }
}

</mosaic_0001>

<bundles_post_ra>
// kernel: tpu_custom_call.1
= control target key start
LH: loop header
LB: loop body
LE: loop exit
PB: predicated region body
PF: predicated region fallthrough
CT: control target
= control target key end

     0   :  { %s3727_s0 = inlined_call_operand.hbm [shape: bf16[32,32], index: 0, kind: input, shape index: {}]   ;;  %s3728_s1 = inlined_call_operand.hbm [shape: bf16[32,32], index: 1, kind: input, shape index: {}]   ;;  %s3729_s2 = inlined_call_operand.hbm [shape: bf16[32,64], index: 2, kind: input, shape index: {}]   ;;  %s3730_s3 = inlined_call_operand.hbm [shape: f32[1,64], index: 3, kind: input, shape index: {}]   ;;  %s3731_s4 = inlined_call_operand.hbm [shape: bf16[32,32], index: 4, kind: input, shape index: {}]   ;;  %s3732_s5 = inlined_call_operand.hbm [shape: f32[1,32], index: 5, kind: input, shape index: {}]   ;;  %s3733_s6 = inlined_call_operand.hbm [shape: bf16[32,16], index: 6, kind: input, shape index: {}]   ;;  %s3734_s7 = inlined_call_operand.hbm [shape: f32[1,16], index: 7, kind: input, shape index: {}]   ;;  %s3735_s8 = inlined_call_operand.hbm [shape: bf16[32,64], index: 8, kind: input, shape index: {}]   ;;  %s3736_s9 = inlined_call_operand.hbm [shape: f32[1,64], index: 9, kind: input, shape index: {}]   ;;  %s3737_s10 = inlined_call_operand.hbm [shape: bf16[32,32], index: 10, kind: input, shape index: {}]   ;;  %s3738_s11 = inlined_call_operand.hbm [shape: f32[1,32], index: 11, kind: input, shape index: {}]   ;;  %s3739_s12 = inlined_call_operand.hbm [shape: f32[2,16], index: 12, kind: input, shape index: {}]   ;;  %s3740_s13 = inlined_call_operand.hbm [shape: f32[2,16], index: 13, kind: input, shape index: {}]   ;;  %s3741_s14 = inlined_call_operand.hbm [shape: bf16[32,16], index: 14, kind: output, shape index: {0}]   ;;  %s3742_s15 = inlined_call_operand.hbm [shape: bf16[32,16], index: 15, kind: output, shape index: {1}]   ;;  %s3743_s16 = inlined_call_operand.hbm [shape: bf16[32,64], index: 16, kind: output, shape index: {2}]   ;;  %s3744_s17 = inlined_call_operand.hbm [shape: bf16[32,64], index: 17, kind: output, shape index: {3}]   ;;  %s3745_s18 = inlined_call_operand.hbm [shape: f32[32,32], index: 18, kind: output, shape index: {4}]   ;;  %s3746_s19 = inlined_call_operand.hbm [shape: f32[32,32], index: 19, kind: output, shape index: {5}]  }
   0x1   :  { %3780 = sst [smem:[#allocation53_spill]] %s3727_s0 }
   0x2   :  { %3781 = sst [smem:[#allocation54_spill]] %s3728_s1 }
   0x3   :  { %3782 = sst [smem:[#allocation55_spill]] %s3729_s2 }
   0x4   :  { %3783 = sst [smem:[#allocation56_spill]] %s3730_s3 }
   0x5   :  { %3784 = sst [smem:[#allocation57_spill]] %s3731_s4 }
   0x6   :  { %3785 = sst [smem:[#allocation58_spill]] %s3732_s5 }
   0x7   :  { %3786 = sst [smem:[#allocation59_spill]] %s3733_s6 }
   0x8   :  { %3787 = sst [smem:[#allocation60_spill]] %s3734_s7 }
   0x9   :  { %3788 = sst [smem:[#allocation61_spill]] %s3735_s8 }
   0xa   :  { %3789 = sst [smem:[#allocation62_spill]] %s3736_s9 }
   0xb   :  { %3790 = sst [smem:[#allocation63_spill]] %s3737_s10 }
   0xc   :  { %3791 = sst [smem:[#allocation64_spill]] %s3738_s11 }
   0xd   :  { %3792 = sst [smem:[#allocation65_spill]] %s3739_s12 }
   0xe   :  { %3793 = sst [smem:[#allocation66_spill]] %s3740_s13 }
   0xf   :  { %3794 = sst [smem:[#allocation67_spill]] %s3741_s14 }
  0x10   :  { %3795 = sst [smem:[#allocation68_spill]] %s3742_s15 }
  0x11   :  { %3796 = sst [smem:[#allocation69_spill]] %s3743_s16 }
  0x12   :  { %3797 = sst [smem:[#allocation70_spill]] %s3744_s17 }
  0x13   :  { %3798 = sst [smem:[#allocation71_spill]] %s3745_s18 }
  0x14   :  { %3799 = sst [smem:[#allocation72_spill]] %s3746_s19 }
  0x15   :  { %25 = vsyncpa [#allocation3], 0 }
  0x16   :  { %27 = vsyncpa [#allocation3 + $0x1], 0 }
  0x17   :  { %28 = vsyncpa [#allocation6], 0 }
  0x18   :  { %30 = vsyncpa [#allocation6 + $0x1], 0 }
  0x19   :  { %31 = vsyncpa [#allocation9], 0 }
  0x1a   :  { %32 = vsyncpa [#allocation12], 0 }
  0x1b   :  { %33 = vsyncpa [#allocation15], 0 }
  0x1c   :  { %34 = vsyncpa [#allocation18], 0 }
  0x1d   :  { %35 = vsyncpa [#allocation21], 0 }
  0x1e   :  { %36 = vsyncpa [#allocation24], 0 }
  0x1f   :  { %37 = vsyncpa [#allocation4], 0 }
  0x20   :  { %39 = vsyncpa [#allocation4 + $0x1], 0 }
  0x21   :  { %40 = vsyncpa [#allocation27], 0 }
  0x22   :  { %42 = vsyncpa [#allocation27 + $0x1], 0 }
  0x23   :  { %43 = vsyncpa [#allocation30], 0 }
  0x24   :  { %45 = vsyncpa [#allocation30 + $0x1], 0 }
  0x25   :  { %46 = vsyncpa [#allocation33], 0 }
  0x26   :  { %48 = vsyncpa [#allocation33 + $0x1], 0  ;;  %s2961_s0 = smov 0   ;;  %s2963_s30 = smov 0  }
  0x27   :  { %s2965_s20 = smov 0   ;;  %s2967_s21 = smov 0  }
  0x28 LB: > { %3800 = sst [smem:[#allocation47_spill]] %s2819_s0  ;;  %s2833_s1 = smov [#allocation7]   ;;  %s2831_s21 = sphi %s2967_s21, %s3871_s21   ;;  %s2827_s20 = sphi %s2965_s20, %s3870_s20   ;;  %s2823_s30 = sphi %s2963_s30, %s3869_s30   ;;  %s2819_s0 = sphi %s2961_s0, %s3868_s0  }
  0x29   : > { %3801 = sst [smem:[#allocation48_spill]] %s2823_s30  ;;  %s531_s22 = sshll.u32 %s2833_s1, 4  ;;  %s2987_s22 = int_to_ptr.vmem [resolvable:$true] %s531_s22 }
  0x2a   : > { %3802 = sst [smem:[#allocation49_spill]] %s2827_s20  ;;  %s2982_s2 = sadd.s32 4294967295, %s2831_s21  }
  0x2b   : > { %3803 = sst [smem:[#allocation50_spill]] %s2982_s2  ;;  %p1792_p0 = scmp.ge.s32.totalorder %s2831_s21, 1 }
  0x2c   : > { %p3763_p1 = scmp.eq.s32.totalorder %s2982_s2, 0  ;;  %p519_p2 = scmp.lt.s32.totalorder %s2831_s21, 3 }
  0x2d   : > { %s2834_s24 = smov [#allocation8]   ;;  %s2835_s26 = smov [#allocation11]  }
  0x2e   : > { %p2989_p3 = pnand %p1792_p0, %p519_p2  ;;  %s545_s25 = sshll.u32 %s2834_s24, 4  ;;  %s3002_s25 = int_to_ptr.vmem [resolvable:$true] %s545_s25 }
  0x2f   : > { %s569_s27 = sshll.u32 %s2835_s26, 4  ;;  %s3807_s1 = sld [smem:[#allocation55_spill]]  ;;  %s3004_s27 = int_to_ptr.vmem [resolvable:$true] %s569_s27 }
  0x30   : > { %s3804_s23 = scalar_select %p2989_p3, 1, 0 }
  0x31   : > { %p2024_p5 = pneg %p2989_p3 }
  0x32   : > { %3805 = sst [smem:[#allocation51_spill]] %s3804_s23 }
  0x33   : > { %p2998_p6 = pnand %p2024_p5, %p3763_p1 }
  0x35   : > { %s2185_s18 = scalar_lea.hbm %s3807_s1, 256  ;;  %p3014_p8 = pneg %p2998_p6 }
  0x36   : > { %p2186_p7 = scmp.ne.s32.totalorder %s3807_s1, %s2185_s18  ;;  %p2192_p11 = scmp.lt.u32.totalorder %s2185_s18, %s3807_s1 }
  0x38   : > { %p2188_p9 = pnand %p3014_p8, %p2186_p7 }
  0x3a   : > { %p2189_p10 = pneg %p2188_p9 }
  0x3c   : > { %p2194_p12 = pnand %p2192_p11, %p2189_p10 }
  0x3e   : > { %2197 = shalt.err (!%p2194_p12)
}
  0x3f   : > { %s2198_s16 = scalar_lea.vmem %s2987_s22, 256  ;;  %p2206_p5 = scmp.lt.s32.totalorder %s2987_s22, %s2987_s22 }
  0x40   : > { %p2199_p13 = scmp.ne.s32.totalorder %s2987_s22, %s2198_s16  ;;  %p2207_p4 = scmp.lt.s32.totalorder %s2198_s16, %s2198_s16 }
  0x42   : > { %p2201_p0 = pnand %p2199_p13, %p3014_p8  ;;  %p2208_p7 = por %p2207_p4, %p2206_p5 }
  0x44   : > { %p2202_p2 = pneg %p2201_p0 }
  0x46   : > { %p2209_p9 = pnand %p2208_p7, %p2202_p2 }
  0x48   : > { %2212 = shalt.err (!%p2209_p9)
}
  0x49   : > { %s3761_s19 = smov 64   ;;  %s3767_s14 = smov 4  }
  0x4a   : > { %2027 = dma.hbm_to_vmem [thread:$0]  (!%p2998_p6), %s3807_s1, 256, %s2987_s22, [#allocation6], %s3761_s19, %s3761_s19, %s3767_s14  }
  0x4b   : > { %s3809_s15 = sld [smem:[#allocation56_spill]] }
  0x51   : > { %s2213_s16 = scalar_lea.hbm %s3809_s15, 16 }
  0x52   : > { %p2214_p4 = scmp.ne.s32.totalorder %s3809_s15, %s2213_s16  ;;  %p2220_p12 = scmp.lt.u32.totalorder %s2213_s16, %s3809_s15 }
  0x54   : > { %p2216_p10 = pnand %p2214_p4, %p3014_p8 }
  0x56   : > { %p2217_p11 = pneg %p2216_p10 }
  0x58   : > { %p2222_p13 = pnand %p2220_p12, %p2217_p11 }
  0x5a   : > { %2225 = shalt.err (!%p2222_p13)
}
  0x5b   : > { %s2226_s22 = scalar_lea.vmem %s3002_s25, 16  ;;  %s2233_s17 = scalar_lea.vmem %s3002_s25, 32 }
  0x5c   : > { %p2227_p0 = scmp.ne.s32.totalorder %s3002_s25, %s2226_s22  ;;  %p2234_p7 = scmp.lt.s32.totalorder %s3002_s25, %s3002_s25 }
  0x5d   : > { %p2235_p9 = scmp.lt.s32.totalorder %s2233_s17, %s2226_s22 }
  0x5e   : > { %p2229_p2 = pnand %p2227_p0, %p3014_p8 }
  0x5f   : > { %p2236_p4 = por %p2235_p9, %p2234_p7 }
  0x60   : > { %p2230_p5 = pneg %p2229_p2 }
  0x62   : > { %p2237_p10 = pnand %p2236_p4, %p2230_p5 }
  0x64   : > { %2240 = shalt.err (!%p2237_p10)
}
  0x65   : > { %2030 = dma.hbm_to_vmem [thread:$0]  (!%p2998_p6), %s3809_s15, 16, %s3002_s25, [#allocation9]  }
  0x66   : > { %s3810_s5 = sld [smem:[#allocation58_spill]] }
  0x6c   : > { %s2241_s28 = scalar_lea.hbm %s3810_s5, 16 }
  0x6d   : > { %p2242_p11 = scmp.ne.s32.totalorder %s3810_s5, %s2241_s28  ;;  %p2248_p0 = scmp.lt.u32.totalorder %s2241_s28, %s3810_s5 }
  0x6f   : > { %p2244_p12 = pnand %p2242_p11, %p3014_p8 }
  0x71   : > { %p2245_p13 = pneg %p2244_p12 }
  0x73   : > { %p2250_p2 = pnand %p2248_p0, %p2245_p13 }
  0x75   : > { %2253 = shalt.err (!%p2250_p2)
}
  0x76   : > { %s2254_s25 = scalar_lea.vmem %s3004_s27, 16  ;;  %s2261_s17 = scalar_lea.vmem %s3004_s27, 32 }
  0x77   : > { %p2255_p5 = scmp.ne.s32.totalorder %s3004_s27, %s2254_s25  ;;  %p2262_p4 = scmp.lt.s32.totalorder %s3004_s27, %s3004_s27 }
  0x78   : > { %p2263_p10 = scmp.lt.s32.totalorder %s2261_s17, %s2254_s25 }
  0x79   : > { %p2257_p7 = pnand %p2255_p5, %p3014_p8 }
  0x7a   : > { %p2264_p11 = por %p2263_p10, %p2262_p4 }
  0x7b   : > { %p2258_p9 = pneg %p2257_p7 }
  0x7d   : > { %p2265_p12 = pnand %p2264_p11, %p2258_p9 }
  0x7f   : > { %2268 = shalt.err (!%p2265_p12)
}
  0x80   : > { %2036 = dma.hbm_to_vmem [thread:$0]  (!%p2998_p6), %s3810_s5, 16, %s3004_s27, [#allocation12]  }
  0x81   : > { %s2838_s23 = smov [#allocation14]   ;;  %s2839_s28 = smov [#allocation17]  }
  0x82   : > { %s593_s18 = sshll.u32 %s2838_s23, 4  ;;  %s617_s29 = sshll.u32 %s2839_s28, 4  ;;  %s594_s18 = int_to_ptr.vmem [resolvable:$true] %s593_s18  ;;  %s618_s29 = int_to_ptr.vmem [resolvable:$true] %s617_s29 }
  0x83   : > { %s3811_s7 = sld [smem:[#allocation60_spill]] }
  0x89   : > { %s2269_s22 = scalar_lea.hbm %s3811_s7, 16 }
  0x8a   : > { %p2270_p13 = scmp.ne.s32.totalorder %s3811_s7, %s2269_s22  ;;  %p2276_p5 = scmp.lt.u32.totalorder %s2269_s22, %s3811_s7 }
  0x8c   : > { %p2272_p0 = pnand %p2270_p13, %p3014_p8 }
  0x8e   : > { %p2273_p2 = pneg %p2272_p0 }
  0x90   : > { %p2278_p7 = pnand %p2276_p5, %p2273_p2 }
  0x92   : > { %2281 = shalt.err (!%p2278_p7)
}
  0x93   : > { %s2282_s27 = scalar_lea.vmem %s594_s18, 16  ;;  %s2289_s2 = scalar_lea.vmem %s594_s18, 32 }
  0x94   : > { %p2283_p9 = scmp.ne.s32.totalorder %s594_s18, %s2282_s27  ;;  %p2290_p11 = scmp.lt.s32.totalorder %s594_s18, %s594_s18 }
  0x95   : > { %p2291_p12 = scmp.lt.s32.totalorder %s2289_s2, %s2282_s27 }
  0x96   : > { %p2285_p4 = pnand %p2283_p9, %p3014_p8 }
  0x97   : > { %p2292_p1 = por %p2291_p12, %p2290_p11 }
  0x98   : > { %p2286_p10 = pneg %p2285_p4 }
  0x9a   : > { %p2293_p3 = pnand %p2292_p1, %p2286_p10 }
  0x9c   : > { %2296 = shalt.err (!%p2293_p3)
}
  0x9d   : > { %2042 = dma.hbm_to_vmem [thread:$0]  (!%p2998_p6), %s3811_s7, 16, %s594_s18, [#allocation15]  }
  0x9e   : > { %s3812_s9 = sld [smem:[#allocation62_spill]] }
  0xa4   : > { %s2297_s16 = scalar_lea.hbm %s3812_s9, 16 }
  0xa5   : > { %p2298_p13 = scmp.ne.s32.totalorder %s3812_s9, %s2297_s16  ;;  %p2304_p3 = scmp.lt.u32.totalorder %s2297_s16, %s3812_s9 }
  0xa7   : > { %p2300_p0 = pnand %p2298_p13, %p3014_p8 }
  0xa9   : > { %p2301_p1 = pneg %p2300_p0 }
  0xab   : > { %p2306_p2 = pnand %p2304_p3, %p2301_p1 }
  0xad   : > { %2309 = shalt.err (!%p2306_p2)
}
  0xae   : > { %s2310_s27 = scalar_lea.vmem %s618_s29, 16  ;;  %s2317_s18 = scalar_lea.vmem %s618_s29, 32 }
  0xaf   : > { %p2311_p5 = scmp.ne.s32.totalorder %s618_s29, %s2310_s27  ;;  %p2318_p4 = scmp.lt.s32.totalorder %s618_s29, %s618_s29 }
  0xb0   : > { %p2319_p10 = scmp.lt.s32.totalorder %s2317_s18, %s2310_s27 }
  0xb1   : > { %p2313_p7 = pnand %p2311_p5, %p3014_p8 }
  0xb2   : > { %p2320_p11 = por %p2319_p10, %p2318_p4 }
  0xb3   : > { %p2314_p9 = pneg %p2313_p7 }
  0xb5   : > { %p2321_p12 = pnand %p2320_p11, %p2314_p9 }
  0xb7   : > { %2324 = shalt.err (!%p2321_p12)
}
  0xb8   : > { %2048 = dma.hbm_to_vmem [thread:$0]  (!%p2998_p6), %s3812_s9, 16, %s618_s29, [#allocation18]  }
  0xb9   : > { %s2840_s28 = smov [#allocation20]   ;;  %s2841_s26 = smov [#allocation10]  }
  0xba   : > { %s641_s19 = sshll.u32 %s2840_s28, 4  ;;  %s555_s16 = sshll.u32 %s2841_s26, 4  ;;  %s642_s19 = int_to_ptr.vmem [resolvable:$true] %s641_s19  ;;  %s556_s16 = int_to_ptr.vmem [resolvable:$true] %s555_s16 }
  0xbb   : > { %s3813_s11 = sld [smem:[#allocation64_spill]] }
  0xc1   : > { %s2325_s17 = scalar_lea.hbm %s3813_s11, 16 }
  0xc2   : > { %p2326_p13 = scmp.ne.s32.totalorder %s3813_s11, %s2325_s17  ;;  %p2332_p3 = scmp.lt.u32.totalorder %s2325_s17, %s3813_s11 }
  0xc4   : > { %p2328_p0 = pnand %p2326_p13, %p3014_p8 }
  0xc6   : > { %p2329_p1 = pneg %p2328_p0 }
  0xc8   : > { %p2334_p2 = pnand %p2332_p3, %p2329_p1 }
  0xca   : > { %2337 = shalt.err (!%p2334_p2)
}
  0xcb   : > { %s2338_s29 = scalar_lea.vmem %s642_s19, 16  ;;  %s2345_s23 = scalar_lea.vmem %s642_s19, 32 }
  0xcc   : > { %p2339_p5 = scmp.ne.s32.totalorder %s642_s19, %s2338_s29  ;;  %p2346_p4 = scmp.lt.s32.totalorder %s642_s19, %s642_s19 }
  0xcd   : > { %p2347_p10 = scmp.lt.s32.totalorder %s2345_s23, %s2338_s29 }
  0xce   : > { %p2341_p7 = pnand %p2339_p5, %p3014_p8 }
  0xcf   : > { %p2348_p11 = por %p2347_p10, %p2346_p4 }
  0xd0   : > { %p2342_p9 = pneg %p2341_p7 }
  0xd2   : > { %p2349_p12 = pnand %p2348_p11, %p2342_p9 }
  0xd4   : > { %2352 = shalt.err (!%p2349_p12)
}
  0xd5   : > { %2054 = dma.hbm_to_vmem [thread:$0]  (!%p2998_p6), %s3813_s11, 16, %s642_s19, [#allocation21]  }
  0xd6   : > { %s3814_s4 = sld [smem:[#allocation57_spill]] }
  0xdc   : > { %s2353_s17 = scalar_lea.hbm %s3814_s4, 256 }
  0xdd   : > { %p2354_p13 = scmp.ne.s32.totalorder %s3814_s4, %s2353_s17  ;;  %p2360_p3 = scmp.lt.u32.totalorder %s2353_s17, %s3814_s4 }
  0xdf   : > { %p2356_p0 = pnand %p2354_p13, %p3014_p8 }
  0xe1   : > { %p2357_p1 = pneg %p2356_p0 }
  0xe3   : > { %p2362_p2 = pnand %p2360_p3, %p2357_p1 }
  0xe5   : > { %2365 = shalt.err (!%p2362_p2)
}
  0xe6   : > { %s2366_s29 = scalar_lea.vmem %s556_s16, 256  ;;  %p2374_p4 = scmp.lt.s32.totalorder %s556_s16, %s556_s16 }
  0xe7   : > { %p2367_p5 = scmp.ne.s32.totalorder %s556_s16, %s2366_s29  ;;  %p2375_p10 = scmp.lt.s32.totalorder %s2366_s29, %s2366_s29 }
  0xe9   : > { %p2369_p7 = pnand %p2367_p5, %p3014_p8  ;;  %p2376_p11 = por %p2375_p10, %p2374_p4 }
  0xeb   : > { %p2370_p9 = pneg %p2369_p7 }
  0xed   : > { %p2377_p12 = pnand %p2376_p11, %p2370_p9 }
  0xef   : > { %2380 = shalt.err (!%p2377_p12)
}
  0xf0   : > { %s3815_s19 = smov 64   ;;  %s2842_s26 = smov [#allocation13]  }
  0xf1   : > { %2033 = dma.hbm_to_vmem [thread:$0]  (!%p2998_p6), %s3814_s4, 256, %s556_s16, [#allocation9], %s3815_s19, %s3815_s19, %s3767_s14  }
  0xf2   : > { %s579_s22 = sshll.u32 %s2842_s26, 4  ;;  %s2843_s25 = smov [#allocation16]   ;;  %s580_s22 = int_to_ptr.vmem [resolvable:$true] %s579_s22 }
  0xf3   : > { %s603_s17 = sshll.u32 %s2843_s25, 4  ;;  %s3816_s6 = sld [smem:[#allocation59_spill]]  ;;  %s604_s17 = int_to_ptr.vmem [resolvable:$true] %s603_s17 }
  0xf9   : > { %s2381_s18 = scalar_lea.hbm %s3816_s6, 256 }
  0xfa   : > { %p2382_p13 = scmp.ne.s32.totalorder %s3816_s6, %s2381_s18  ;;  %p2388_p3 = scmp.lt.u32.totalorder %s2381_s18, %s3816_s6 }
  0xfc   : > { %p2384_p0 = pnand %p2382_p13, %p3014_p8 }
  0xfe   : > { %p2385_p1 = pneg %p2384_p0 }
 0x100   : > { %p2390_p2 = pnand %p2388_p3, %p2385_p1 }
 0x102   : > { %2393 = shalt.err (!%p2390_p2)
}
 0x103   : > { %s2394_s16 = scalar_lea.vmem %s580_s22, 256  ;;  %p2402_p4 = scmp.lt.s32.totalorder %s580_s22, %s580_s22 }
 0x104   : > { %p2395_p5 = scmp.ne.s32.totalorder %s580_s22, %s2394_s16  ;;  %p2403_p10 = scmp.lt.s32.totalorder %s2394_s16, %s2394_s16 }
 0x106   : > { %p2397_p7 = pnand %p2395_p5, %p3014_p8  ;;  %p2404_p11 = por %p2403_p10, %p2402_p4 }
 0x108   : > { %p2398_p9 = pneg %p2397_p7 }
 0x10a   : > { %p2405_p12 = pnand %p2404_p11, %p2398_p9 }
 0x10c   : > { %2408 = shalt.err (!%p2405_p12)
}
 0x10d   : > { %2039 = dma.hbm_to_vmem [thread:$0]  (!%p2998_p6), %s3816_s6, 256, %s580_s22, [#allocation12], %s3815_s19, %s3815_s19, %s3767_s14  }
 0x10e   : > { %s3817_s8 = sld [smem:[#allocation61_spill]] }
 0x114   : > { %s2409_s0 = scalar_lea.hbm %s3817_s8, 256 }
 0x115   : > { %p2410_p13 = scmp.ne.s32.totalorder %s3817_s8, %s2409_s0  ;;  %p2416_p3 = scmp.lt.u32.totalorder %s2409_s0, %s3817_s8 }
 0x117   : > { %p2412_p0 = pnand %p2410_p13, %p3014_p8 }
 0x119   : > { %p2413_p1 = pneg %p2412_p0 }
 0x11b   : > { %p2418_p2 = pnand %p2416_p3, %p2413_p1 }
 0x11d   : > { %2421 = shalt.err (!%p2418_p2)
}
 0x11e   : > { %s2422_s23 = scalar_lea.vmem %s604_s17, 256  ;;  %p2430_p4 = scmp.lt.s32.totalorder %s604_s17, %s604_s17 }
 0x11f   : > { %p2423_p5 = scmp.ne.s32.totalorder %s604_s17, %s2422_s23  ;;  %p2431_p10 = scmp.lt.s32.totalorder %s2422_s23, %s2422_s23 }
 0x121   : > { %p2425_p7 = pnand %p2423_p5, %p3014_p8  ;;  %p2432_p11 = por %p2431_p10, %p2430_p4 }
 0x123   : > { %p2426_p9 = pneg %p2425_p7 }
 0x125   : > { %p2433_p12 = pnand %p2432_p11, %p2426_p9 }
 0x127   : > { %2436 = shalt.err (!%p2433_p12)
}
 0x128   : > { %2045 = dma.hbm_to_vmem [thread:$0]  (!%p2998_p6), %s3817_s8, 256, %s604_s17, [#allocation15], %s3815_s19, %s3815_s19, %s3767_s14  }
 0x129   : > { %s2844_s1 = smov [#allocation19]   ;;  %s2845_s26 = smov [#allocation22]  }
 0x12a   : > { %s627_s28 = sshll.u32 %s2844_s1, 4  ;;  %s652_s25 = sshll.u32 %s2845_s26, 4  ;;  %s628_s28 = int_to_ptr.vmem [resolvable:$true] %s627_s28  ;;  %s653_s25 = int_to_ptr.vmem [resolvable:$true] %s652_s25 }
 0x12b   : > { %s3818_s10 = sld [smem:[#allocation63_spill]] }
 0x131   : > { %s2437_s18 = scalar_lea.hbm %s3818_s10, 256 }
 0x132   : > { %p2438_p13 = scmp.ne.s32.totalorder %s3818_s10, %s2437_s18  ;;  %p2444_p3 = scmp.lt.u32.totalorder %s2437_s18, %s3818_s10 }
 0x134   : > { %p2440_p0 = pnand %p2438_p13, %p3014_p8 }
 0x136   : > { %p2441_p1 = pneg %p2440_p0 }
 0x138   : > { %p2446_p2 = pnand %p2444_p3, %p2441_p1 }
 0x13a   : > { %2449 = shalt.err (!%p2446_p2)
}
 0x13b   : > { %s2450_s17 = scalar_lea.vmem %s628_s28, 256  ;;  %p2458_p4 = scmp.lt.s32.totalorder %s628_s28, %s628_s28 }
 0x13c   : > { %p2451_p5 = scmp.ne.s32.totalorder %s628_s28, %s2450_s17  ;;  %p2459_p10 = scmp.lt.s32.totalorder %s2450_s17, %s2450_s17 }
 0x13e   : > { %p2453_p7 = pnand %p2451_p5, %p3014_p8  ;;  %p2460_p11 = por %p2459_p10, %p2458_p4 }
 0x140   : > { %p2454_p9 = pneg %p2453_p7 }
 0x142   : > { %p2461_p12 = pnand %p2460_p11, %p2454_p9 }
 0x144   : > { %2464 = shalt.err (!%p2461_p12)
}
 0x145   : > { %2051 = dma.hbm_to_vmem [thread:$0]  (!%p2998_p6), %s3818_s10, 256, %s628_s28, [#allocation18], %s3815_s19, %s3815_s19, %s3767_s14  }
 0x146   : > { %s3819_s12 = sld [smem:[#allocation65_spill]] }
 0x14c   : > { %s2465_s27 = scalar_lea.hbm %s3819_s12, 32 }
 0x14d   : > { %p2466_p13 = scmp.ne.s32.totalorder %s3819_s12, %s2465_s27  ;;  %p2472_p3 = scmp.lt.u32.totalorder %s2465_s27, %s3819_s12 }
 0x14f   : > { %p2468_p0 = pnand %p2466_p13, %p3014_p8 }
 0x151   : > { %p2469_p1 = pneg %p2468_p0 }
 0x153   : > { %p2474_p2 = pnand %p2472_p3, %p2469_p1 }
 0x155   : > { %2477 = shalt.err (!%p2474_p2)
}
 0x156   : > { %s2478_s22 = scalar_lea.vmem %s653_s25, 32  ;;  %p2486_p4 = scmp.lt.s32.totalorder %s653_s25, %s653_s25 }
 0x157   : > { %p2479_p5 = scmp.ne.s32.totalorder %s653_s25, %s2478_s22  ;;  %p2487_p10 = scmp.lt.s32.totalorder %s2478_s22, %s2478_s22 }
 0x159   : > { %p2481_p7 = pnand %p2479_p5, %p3014_p8  ;;  %p2488_p11 = por %p2487_p10, %p2486_p4 }
 0x15b   : > { %p2482_p9 = pneg %p2481_p7 }
 0x15d   : > { %p2489_p12 = pnand %p2488_p11, %p2482_p9 }
 0x15f   : > { %2492 = shalt.err (!%p2489_p12)
}
 0x160   : > { %2057 = dma.hbm_to_vmem [thread:$0]  (!%p2998_p6), %s3819_s12, 32, %s653_s25, [#allocation21]  }
 0x161   : > { %s2846_s16 = smov [#allocation23]   ;;  %s3820_s13 = sld [smem:[#allocation66_spill]] }
 0x162   : > { %s663_s1 = sshll.u32 %s2846_s16, 4  ;;  %s664_s1 = int_to_ptr.vmem [resolvable:$true] %s663_s1 }
 0x167   : > { %s2493_s27 = scalar_lea.hbm %s3820_s13, 32 }
 0x168   : > { %p2494_p13 = scmp.ne.s32.totalorder %s3820_s13, %s2493_s27  ;;  %p2500_p3 = scmp.lt.u32.totalorder %s2493_s27, %s3820_s13 }
 0x16a   : > { %p2496_p0 = pnand %p2494_p13, %p3014_p8 }
 0x16c   : > { %p2497_p1 = pneg %p2496_p0 }
 0x16e   : > { %p2502_p2 = pnand %p2500_p3, %p2497_p1 }
 0x170   : > { %2505 = shalt.err (!%p2502_p2)
}
 0x171   : > { %s2506_s25 = scalar_lea.vmem %s664_s1, 32  ;;  %p2514_p4 = scmp.lt.s32.totalorder %s664_s1, %s664_s1 }
 0x172   : > { %p2507_p5 = scmp.ne.s32.totalorder %s664_s1, %s2506_s25  ;;  %p2515_p10 = scmp.lt.s32.totalorder %s2506_s25, %s2506_s25 }
 0x174   : > { %p2509_p7 = pnand %p2507_p5, %p3014_p8  ;;  %p2516_p11 = por %p2515_p10, %p2514_p4 }
 0x176   : > { %p2510_p9 = pneg %p2509_p7 }
 0x178   : > { %p2517_p12 = pnand %p2516_p11, %p2510_p9 }
 0x17a   : > { %2520 = shalt.err (!%p2517_p12)
}
 0x17b   : > { %s3821_s24 = sld [smem:[#allocation47_spill]]  ;;  %s3822_s17 = sld [smem:[#allocation50_spill]] }
 0x17c   : > { %2060 = dma.hbm_to_vmem [thread:$0]  (!%p2998_p6), %s3820_s13, 32, %s664_s1, [#allocation24]  }
 0x17d   : > { %s3766_s3 = sadd.s32 4294967294, %s2831_s21   ;;  %s3262_s16 = sadd.s32 1, %s2831_s21  }
 0x17e   : > { %s58_s26 = ssub.s32 %s2831_s21, %s3262_s16  ;;  %s61_s0 = sadd.s32 1, %s2827_s20 }
 0x17f   : > { %p59_p8 = scmp.eq.s32.totalorder %s58_s26, 0  ;;  %p68_p13 = scmp.ne.s32.totalorder %s2827_s20, %s2823_s30 }
 0x180   : > { %p69_p0 = scmp.eq.s32.totalorder %s2831_s21, 0  ;;  %p382_p7 = scmp.eq.s32.totalorder %s3766_s3, 1 }
 0x181   : > { %p74_p1 = scmp.ne.s32.totalorder %s2823_s30, %s3821_s24  ;;  %p3825_p2 = scmp.eq.s32.totalorder %s3822_s17, 0 }
 0x182   : > { %s3273_s27 = scalar_select %p59_p8, %s2827_s20, %s61_s0  }
 0x183   : > { %p3275_p3 = por %p69_p0, %p68_p13  ;;  %p3281_p6 = por %p3825_p2, %p74_p1 }
 0x184   : > { %3823 = sst [smem:[#allocation52_spill]] %s3273_s27  ;;  %p376_p5 = scmp.eq.s32.totalorder %s3822_s17, 1 }
 0x185   : > { %p2099_p9 = scmp.lt.s32.totalorder %s2831_s21, 2  ;;  %s674_s2 = sand.u32 1, %s2827_s20  }
 0x186   : > { %p3290_p4 = por %p376_p5, %p68_p13  ;;  %p3294_p10 = por %p382_p7, %p74_p1 }
 0x187   : > { %s1806_s25 = sshll.u32 %s674_s2, 3  ;;  %s1889_s22 = sshll.u32 %s2831_s21, 7 }
 0x188   : > { %s3827_s29 = scalar_select %p3290_p4, 1, 0 }
 0x189   : > { %s3828_s23 = scalar_select %p3294_p10, 1, 0 }
 0x18a   : > { %s3829_s26 = sld [smem:[#allocation53_spill]]  ;;  %s678_s17 = scalar_lea.vmem [#allocation2], %s1806_s25 }
 0x18b   : > { %s685_s3 = sshll.u32 %s678_s17, 4  ;;  %p3308_p11 = pnand %p2099_p9, %p3275_p3  ;;  %s3304_s3 = int_to_ptr.vmem [resolvable:$true] %s685_s3 }
 0x18c   : > { %s3831_s6 = sld [smem:[#allocation54_spill]]  ;;  %s699_s24 = scalar_lea.vmem [#allocation5], %s1806_s25 }
 0x18d   : > { %s3317_s7 = sshll.u32 %s699_s24, 4  ;;  %s3319_s8 = scalar_lea.sflag [#allocation3], %s674_s2  ;;  %s3351_s7 = int_to_ptr.vmem [resolvable:$true] %s3317_s7 }
 0x18e   : > { %p2523_p8 = pneg %p3308_p11 }
 0x190   : > { %s3302_s0 = scalar_lea.hbm %s3829_s26, %s1889_s22  ;;  %s2526_s4 = scalar_lea.hbm %s3829_s26, 256 }
 0x191   : > { %s2521_s17 = scalar_lea.hbm %s3302_s0, 128  ;;  %p2527_p1 = scmp.lt.u32.totalorder %s3302_s0, %s3829_s26 }
 0x192   : > { %s3315_s28 = scalar_lea.hbm %s3831_s6, %s1889_s22  ;;  %p2522_p12 = scmp.ne.s32.totalorder %s3302_s0, %s2521_s17 }
 0x193   : > { %p2528_p3 = scmp.lt.u32.totalorder %s2526_s4, %s2521_s17  ;;  %p2530_p5 = scmp.lt.u32.totalorder %s2521_s17, %s3302_s0 }
 0x194   : > { %p2524_p13 = pnand %p2523_p8, %p2522_p12 }
 0x195   : > { %p2529_p2 = por %p2528_p3, %p2527_p1 }
 0x196   : > { %p2525_p0 = pneg %p2524_p13 }
 0x197   : > { %p2531_p7 = por %p2530_p5, %p2529_p2 }
 0x199   : > { %p2532_p9 = pnand %p2531_p7, %p2525_p0 }
 0x19b   : > { %2535 = shalt.err (!%p2532_p9)
}
 0x19c   : > { %s2536_s2 = scalar_lea.vmem %s3304_s3, 128  ;;  %s2847_s9 = smov [#allocation2]  }
 0x19d   : > { %p2537_p12 = scmp.ne.s32.totalorder %s3304_s3, %s2536_s2  ;;  %s2541_s25 = sshll.u32 %s2847_s9, 4  ;;  %s2542_s25 = int_to_ptr.vmem [resolvable:$false] %s2541_s25 }
 0x19e   : > { %s2543_s24 = scalar_lea.vmem %s2542_s25, 256  ;;  %p2544_p4 = scmp.lt.s32.totalorder %s3304_s3, %s2542_s25 }
 0x19f   : > { %p2539_p13 = pnand %p2537_p12, %p2523_p8  ;;  %p2545_p1 = scmp.lt.s32.totalorder %s2543_s24, %s2536_s2 }
 0x1a1   : > { %p2540_p10 = pneg %p2539_p13  ;;  %p2546_p3 = por %p2545_p1, %p2544_p4 }
 0x1a3   : > { %p2547_p2 = pnand %p2546_p3, %p2540_p10 }
 0x1a5   : > { %2550 = shalt.err (!%p2547_p2)
}
 0x1a6   : > { %s3832_s17 = smov 4   ;;  %s695_s18 = sand.u32 1, %s2831_s21  }
 0x1a7   : > { %2064 = dma.hbm_to_vmem [thread:$0]  (!%p3308_p11), %s3302_s0, 128, %s3304_s3, %s3319_s8, %s3815_s19, %s3815_s19, %s3832_s17  }
 0x1a8   : > { %s3354_s4 = scalar_lea.sflag [#allocation6], %s695_s18  ;;  %s2551_s5 = scalar_lea.hbm %s3315_s28, 128 }
 0x1a9   : > { %p2552_p4 = scmp.ne.s32.totalorder %s3315_s28, %s2551_s5  ;;  %s2556_s9 = scalar_lea.hbm %s3831_s6, 256 }
 0x1aa   : > { %p2557_p5 = scmp.lt.u32.totalorder %s3315_s28, %s3831_s6  ;;  %p2558_p7 = scmp.lt.u32.totalorder %s2556_s9, %s2551_s5 }
 0x1ab   : > { %p2554_p10 = pnand %p2552_p4, %p2523_p8  ;;  %p2560_p12 = scmp.lt.u32.totalorder %s2551_s5, %s3315_s28 }
 0x1ac   : > { %p2559_p9 = por %p2558_p7, %p2557_p5 }
 0x1ad   : > { %p2555_p0 = pneg %p2554_p10 }
 0x1ae   : > { %p2561_p13 = por %p2560_p12, %p2559_p9 }
 0x1b0   : > { %p2562_p1 = pnand %p2561_p13, %p2555_p0 }
 0x1b2   : > { %2565 = shalt.err (!%p2562_p1)
}
 0x1b3   : > { %s2566_s8 = scalar_lea.vmem %s3351_s7, 128  ;;  %s2848_s3 = smov [#allocation5]  }
 0x1b4   : > { %p2567_p3 = scmp.ne.s32.totalorder %s3351_s7, %s2566_s8  ;;  %s2571_s0 = sshll.u32 %s2848_s3, 4  ;;  %s2572_s0 = int_to_ptr.vmem [resolvable:$false] %s2571_s0 }
 0x1b5   : > { %s2573_s18 = scalar_lea.vmem %s2572_s0, 256  ;;  %p2574_p10 = scmp.lt.s32.totalorder %s3351_s7, %s2572_s0 }
 0x1b6   : > { %p2569_p2 = pnand %p2567_p3, %p2523_p8  ;;  %p2575_p5 = scmp.lt.s32.totalorder %s2573_s18, %s2566_s8 }
 0x1b8   : > { %p2570_p4 = pneg %p2569_p2  ;;  %p2576_p7 = por %p2575_p5, %p2574_p10 }
 0x1ba   : > { %p2577_p9 = pnand %p2576_p7, %p2570_p4 }
 0x1bc   : > { %2580 = shalt.err (!%p2577_p9)
}
 0x1bd   : > { %2067 = dma.hbm_to_vmem [thread:$0]  (!%p3308_p11), %s3315_s28, 128, %s3351_s7, %s3354_s4, %s3815_s19, %s3815_s19, %s3832_s17  }
 0x1be   : > { %s3833_s5 = sld [smem:[#allocation51_spill]] }
 0x1c4   : > { %p3834_p8 = scmp.ne.s32.totalorder %s3833_s5, 0 }
 0x1c5   : > { %s3386_s22 = sand.u32 (!%p3834_p8), 1, %s2823_s30  }
 0x1c6   : > { %718 = sbr.rel (%p3834_p8) target bundleno = 880 (0x370), region = 76  ;;  %s3389_s2 = sshll.u32 (!%p3834_p8), %s3386_s22, 3 }
 0x1c7   : > { %s721_s14 = scalar_lea.sflag (!%p3834_p8), [#allocation3], %s3386_s22  ;;  %s724_s9 = scalar_lea.vmem (!%p3834_p8), [#allocation2], %s3389_s2 }
 0x1cd   : > { %2766 = dma.done.wait (%p3281_p6), %s721_s14, 128  }
 0x1ce   : > { %2768 = vsyncadd (%p3281_p6), %s721_s14, 4294967168  ;;  %s3835_s7 = sld [smem:[#allocation50_spill]]  ;;  %s733_s17 = scalar_lea.vmem [#allocation5], %s3389_s2 }
 0x1d4   : > { %s3398_s19 = sand.u32 1, %s3835_s7  }
 0x1d5   : > { %s730_s28 = scalar_lea.sflag [#allocation6], %s3398_s19 }
 0x1d6   : > { %2770 = dma.done.wait (%p3281_p6), %s730_s28, 128  }
 0x1d7   : > { %2772 = vsyncadd (%p3281_p6), %s730_s28, 4294967168  ;;  %p3836_p11 = scmp.eq.s32.totalorder %s3835_s7, 0 }
 0x1d9   : > { %2774 = dma.done.wait (%p3836_p11), [#allocation6], 256   ;;  %p3837_p0 = pmov %p3836_p11 }
 0x1db   : > { %2776 = vsyncadd (%p3837_p0), [#allocation6], 4294967040  ;;  %p3838_p12 = pmov %p3837_p0 }
 0x1dc   : > { %p3839_p13 = pmov %p3837_p0 }
 0x1dd   : > { %2778 = dma.done.wait (%p3838_p12), [#allocation9], 272  }
 0x1de   : > { %2780 = vsyncadd (%p3839_p13), [#allocation9], 4294967024  ;;  %p3840_p1 = pmov %p3837_p0 }
 0x1df   : > { %p3841_p3 = pmov %p3837_p0 }
 0x1e0   : > { %2782 = dma.done.wait (%p3840_p1), [#allocation12], 272  }
 0x1e1   : > { %2784 = vsyncadd (%p3841_p3), [#allocation12], 4294967024  ;;  %p3842_p6 = pmov %p3837_p0 }
 0x1e2   : > { %p3843_p2 = pmov %p3837_p0 }
 0x1e3   : > { %2786 = dma.done.wait (%p3842_p6), [#allocation15], 272  }
 0x1e4   : > { %2788 = vsyncadd (%p3843_p2), [#allocation15], 4294967024  ;;  %p3844_p4 = pmov %p3837_p0 }
 0x1e5   : > { %p3845_p10 = pmov %p3837_p0 }
 0x1e6   : > { %2790 = dma.done.wait (%p3844_p4), [#allocation18], 272  }
 0x1e7   : > { %2792 = vsyncadd (%p3845_p10), [#allocation18], 4294967024  ;;  %p3846_p5 = pmov %p3837_p0 }
 0x1e8   : > { %p3847_p7 = pmov %p3837_p0 }
 0x1e9   : > { %2794 = dma.done.wait (%p3846_p5), [#allocation21], 48  }
 0x1ea   : > { %2796 = vsyncadd (%p3847_p7), [#allocation21], 4294967248  ;;  %p3848_p9 = pmov %p3837_p0 }
 0x1eb   : > { %p3849_p8 = pmov %p3837_p0 }
 0x1ec   : > { %2798 = dma.done.wait (%p3848_p9), [#allocation24], 32  }
 0x1ed   : > { %2800 = vsyncadd (%p3849_p8), [#allocation24], 4294967264  ;;  %v2849_v0 = vmov 0.0   ;;  %vm2850_vm0 = vmmov 0   ;;  %v2165_v1 = vld [vmem:[#allocation10] sm:$0xff]   ;;  %v2166_v2 = vld [vmem:[#allocation10 + $0x8] sm:$0xff]  }
 0x1ee   : > { %1928 = vmatprep.subr.bf16.mxu1 %v2849_v0  ;;  %1920 = vmatprep.subr.bf16.mxu0 %v2849_v0  ;;  %v2167_v3 = vld [vmem:[#allocation7] sm:$0xff]   ;;  %v2169_v4 = vld [vmem:[#allocation7 + $0x8] sm:$0xff]   ;;  %v2168_v5 = vld [vmem:[%s733_s17] sm:$0xff]   ;;  %vm907_vm1 = vcmask 261120   ;;  %vm1291_vm2 = vcmask 519168   ;;  %s1831_s1 = sshll.u32 %s3386_s22, 4 }
 0x1ef   : > { %1932 = vmatprep.mubr.msk.bf16.mxu1 %vm2850_vm0, %v2849_v0  ;;  %1924 = vmatprep.mubr.msk.bf16.mxu0 %vm2850_vm0, %v2849_v0  ;;  %v2170_v6 = vld [vmem:[%s724_s9] sm:$0xff]   ;;  %v2173_v8 = vld [vmem:[#allocation16] sm:$0xff]   ;;  %v1833_v15 = vld [vmem:[#allocation8] ss:$0 sm:$0xff]  ;;  %s844_s4 = scalar_lea.vmem [#allocation28], %s3389_s2  ;;  %s3453_s24 = sshll.u32 %s3835_s7, 7 }
 0x1f0   : > { %1929 = vmatpush3.bf16.msra.mxu1 %v2165_v1  ;;  %1921 = vmatpush3.bf16.msra.mxu0 %v2167_v3  ;;  %v2171_v7 = vld [vmem:[#allocation13] sm:$0xff]   ;;  %v2172_v10 = vld [vmem:[#allocation13 + $0x8] sm:$0xff]   ;;  %v1838_v13 = vld [vmem:[#allocation11] ss:$0 sm:$0xff]  ;;  %s1379_s25 = sshll.u32 %s844_s4, 4  ;;  %s3456_s8 = scalar_lea.vmem [#allocation26], %s3389_s2  ;;  %s3449_s25 = int_to_ptr.vmem [resolvable:$true] %s1379_s25 }
 0x1f1   : > { %1930 = vmatprep.subr.bf16.mxu1 %v2849_v0  ;;  %1922 = vmatprep.subr.bf16.mxu0 %v2849_v0  ;;  %v2174_v9 = vld [vmem:[#allocation16 + $0x8] sm:$0xff]   ;;  %v2175_v11 = vld [vmem:[#allocation19] sm:$0xff]   ;;  %v2176_v12 = vld [vmem:[#allocation19 + $0x8] sm:$0xff]   ;;  %s3461_s0 = scalar_lea.vmem [#allocation31], %s1831_s1  ;;  %s851_s5 = scalar_lea.vmem [#allocation29], %s3389_s2  ;;  %vm1256_vm3 = vcmask 125952  }
 0x1f2   : > { %v1849_v30 = vld [vmem:[#allocation17] ss:$0 sm:$0xff]  ;;  %v1845_v33 = vld [vmem:[#allocation14] ss:$0 sm:$0xff]  ;;  %v1857_v39 = vld [vmem:[#allocation22] ss:$0 sm:$0xff] }
 0x1f3   : > { %v1861_v46 = vld [vmem:[#allocation22 + $0x1] ss:$0 sm:$0xff]  ;;  %s1395_s14 = sshll.u32 %s851_s5, 4  ;;  %s3467_s9 = scalar_lea.vmem [#allocation32], %s1831_s1  ;;  %v1858_v53 = vld [vmem:[#allocation23] ss:$0 sm:$0xff]  ;;  %s3477_s14 = int_to_ptr.vmem [resolvable:$true] %s1395_s14 }
 0x1f4   : > { %1931 = vmatpush3.bf16.msra.mxu1 %v2166_v2  ;;  %1923 = vmatpush3.bf16.msra.mxu0 %v2169_v4  ;;  %s1427_s28 = sshll.u32 %s3467_s9, 4  ;;  %v1862_v54 = vld [vmem:[#allocation23 + $0x1] ss:$0 sm:$0xff]  ;;  %s3850_s18 = sld [smem:[#allocation70_spill]]  ;;  %v1853_v2 = vld [vmem:[#allocation20] ss:$0 sm:$0xff]  ;;  %s3479_s28 = int_to_ptr.vmem [resolvable:$true] %s1427_s28 }
 0x1f5   : > { %1944 = vmatprep.subr.bf16.mxu1 %v2849_v0  ;;  %1936 = vmatprep.subr.bf16.mxu0 %v2849_v0  ;;  %s3489_s10 = scalar_lea.vmem [#allocation25], %s3389_s2  ;;  %s2581_s13 = scalar_lea.vmem %s3477_s14, 128 }
 0x1f6   : > { %p2582_p11 = scmp.ne.s32.totalorder %s3477_s14, %s2581_s13  ;;  %p3852_p0 = scmp.ne.s32.totalorder %s3827_s29, 0 }
 0x1f7   : > { %1933 = vmatmul.mubr.msk.bf16.vlgmr.msra.gmra.mrb[0].mxu1 %vm907_vm1, %v2168_v5  ;;  %1925 = vmatmul.mubr.msk.bf16.vlgmr.msra.gmra.mrb[0].mxu0 %vm907_vm1, %v2170_v6 }
 0x1f8   : > { %1945 = vmatpush3.bf16.msra.mxu1 %v2173_v8  ;;  %1948 = vmatprep.mubr.msk.bf16.mxu1 %vm2850_vm0, %v2849_v0  ;;  %p2583_p12 = pnand %p2582_p11, %p3852_p0 }
 0x1f9   : > { %1946 = vmatprep.subr.bf16.mxu1 %v2849_v0  ;;  %1937 = vmatpush3.bf16.msra.mxu0 %v2171_v7 }
 0x1fa   : > { %1940 = vmatprep.mubr.msk.bf16.mxu0 %vm2850_vm0, %v2849_v0  ;;  %1938 = vmatprep.subr.bf16.mxu0 %v2849_v0  ;;  %s3475_s3 = scalar_lea.hbm %s3850_s18, %s3453_s24  ;;  %p2584_p13 = pneg %p2583_p12 }
 0x1fc   : > { %1947 = vmatpush3.bf16.msra.mxu1 %v2174_v9 }
 0x1fd   : > { %1939 = vmatpush3.bf16.msra.mxu0 %v2172_v10 }
 0x1fe   : > { %1952 = vmatprep.subr.bf16.mxu0 %v2849_v0 }
 0x1ff   : > { %1949 = vmatmul.mubr.msk.bf16.vlgmr.msra.gmra.mrb[4].mxu1 %vm907_vm1, %v2168_v5 }
 0x200   : > { %1941 = vmatmul.mubr.msk.bf16.vlgmr.msra.gmra.mrb[4].mxu0 %vm907_vm1, %v2168_v5 }
 0x201   : > { %1953 = vmatpush3.bf16.msra.mxu0 %v2175_v11  ;;  %1956 = vmatprep.mubr.msk.bf16.mxu0 %vm2850_vm0, %v2849_v0 }
 0x202   : > { %1954 = vmatprep.subr.bf16.mxu0 %v2849_v0 }
 0x205   : > { %1955 = vmatpush3.bf16.msra.mxu0 %v2176_v12 }
 0x208   : > { %1957 = vmatmul.mubr.msk.bf16.vlgmr.msra.gmra.mrb[8].mxu0 %vm907_vm1, %v2168_v5 }
 0x2ca   : > { %v1019_v14 = vpop.f32.mrb[0].mxu1  ;;  %v945_v19 = vpop.f32.mrb[0].mxu0 }
 0x2cb   : > { %v1020_v16 = vadd.f32 %v1838_v13, %v1019_v14  ;;  %v1934_v17 = vpop.f32.mrb[1].mxu1  ;;  %v946_v23 = vadd.f32 %v1833_v15, %v945_v19  ;;  %v1926_v24 = vpop.f32.mrb[1].mxu0 }
 0x2cc   : > { %v1022_v18 = vpop.f32.mrb[2].mxu1  ;;  %v948_v25 = vpop.f32.mrb[2].mxu0 }
 0x2cd   : > { %v1843_v20 = vmul.f32 -1.442695, %v1020_v16  ;;  %v1023_v21 = vadd.f32 %v1838_v13, %v1022_v18  ;;  %v1935_v22 = vpop.f32.mrb[3].mxu1  ;;  %v952_v27 = vmax.f32 %v946_v23, 0.0  ;;  %v949_v28 = vadd.f32 %v1833_v15, %v948_v25  ;;  %v1927_v29 = vpop.f32.mrb[3].mxu0 }
 0x2cf   : > { %2177 = vpow2.f32 %v1843_v20  ;;  %v1844_v26 = vmul.f32 -1.442695, %v1023_v21  ;;  %v1895_v31 = vpack.c.bf16 %v952_v27, %v952_v27  ;;  %v953_v32 = vmax.f32 %v949_v28, 0.0 }
 0x2d1   : > { %2179 = vpow2.f32 %v1844_v26  ;;  %1292 = vst.msk [vmem:[%s844_s4] sm:$0xf] %vm1291_vm2, %v1895_v31  ;;  %v1896_v35 = vpack.c.bf16 %v953_v32, %v953_v32 }
 0x2d2   : > { %v1161_v34 = vpop.f32.mrb[4].mxu1 }
 0x2d3   : > { %v1162_v36 = vadd.f32 %v1849_v30, %v1161_v34  ;;  %v1950_v37 = vpop.f32.mrb[5].mxu1  ;;  %v1095_v38 = vpop.f32.mrb[4].mxu0  ;;  %1293 = vst.msk [vmem:[%s844_s4 + $0x4] sm:$0xf] %vm1291_vm2, %v1896_v35  ;;  %s3851_s4 = sld [smem:[#allocation68_spill]] }
 0x2d4   : > { %v1164_v40 = vpop.f32.mrb[6].mxu1  ;;  %v1096_v41 = vadd.f32 %v1845_v33, %v1095_v38  ;;  %v1942_v42 = vpop.f32.mrb[5].mxu0 }
 0x2d5   : > { %v1168_v43 = vmax.f32 %v1162_v36, 0.0  ;;  %v1165_v44 = vadd.f32 %v1849_v30, %v1164_v40  ;;  %v1951_v45 = vpop.f32.mrb[7].mxu1  ;;  %v1098_v47 = vpop.f32.mrb[6].mxu0 }
 0x2d6   : > { %v1102_v48 = vmax.f32 %v1096_v41, 0.0  ;;  %v1099_v49 = vadd.f32 %v1845_v33, %v1098_v47  ;;  %v1943_v50 = vpop.f32.mrb[7].mxu0 }
 0x2d7   : > { %v1897_v51 = vpack.c.bf16 %v1168_v43, %v1168_v43  ;;  %v1169_v52 = vmax.f32 %v1165_v44, 0.0 }
 0x2d8   : > { %v1239_v56 = vmul.f32 %v1857_v39, %v1102_v48  ;;  %v1264_v57 = vmul.f32 %v1861_v46, %v1102_v48  ;;  %v1103_v58 = vmax.f32 %v1099_v49, 0.0 }
 0x2d9   : > { %v2178_v55 = vpop.eup %2177  ;;  %1302 = vst.msk [vmem:[%s851_s5] sm:$0xf] %vm1291_vm2, %v1897_v51  ;;  %v1898_v59 = vpack.c.bf16 %v1169_v52, %v1169_v52  ;;  %s3486_s6 = scalar_lea.hbm %s3851_s4, %s3453_s24 }
 0x2da   : > { %v1032_v60 = vadd.f32 1.0, %v2178_v55  ;;  %v1246_v62 = vadd.f32 %v1858_v53, %v1239_v56  ;;  %v1271_v63 = vadd.f32 %v1862_v54, %v1264_v57  ;;  %v1240_v0 = vmul.f32 %v1857_v39, %v1103_v58 }
 0x2db   : > { %v2180_v61 = vpop.eup %2179  ;;  %v1265_v1 = vmul.f32 %v1861_v46, %v1103_v58  ;;  %1303 = vst.msk [vmem:[%s851_s5 + $0x4] sm:$0xf] %vm1291_vm2, %v1898_v59  ;;  %v1227_v4 = vpop.f32.mrb[8].mxu0  ;;  %s2851_s5 = smov [#allocation29]  }
 0x2dc   : > { %2181 = vrcp.f32 %v1032_v60  ;;  %v1033_v3 = vadd.f32 1.0, %v2180_v61  ;;  %s2585_s15 = sshll.u32 %s2851_s5, 4  ;;  %s2586_s15 = int_to_ptr.vmem [resolvable:$false] %s2585_s15 }
 0x2dd   : > { %s2587_s1 = scalar_lea.vmem %s2586_s15, 256  ;;  %p2588_p1 = scmp.lt.s32.totalorder %s3477_s14, %s2586_s15 }
 0x2de   : > { %p2589_p3 = scmp.lt.s32.totalorder %s2587_s1, %s2581_s13 }
 0x2e0   : > { %p2590_p6 = por %p2589_p3, %p2588_p1 }
 0x2e2   : > { %p2591_p2 = pnand %p2590_p6, %p2584_p13 }
 0x2e4   : > { %2594 = shalt.err (!%p2591_p2)
}
 0x2e5   : > { %s2595_s2 = scalar_lea.hbm %s3475_s3, 128  ;;  %s2599_s5 = scalar_lea.hbm %s3850_s18, 256 }
 0x2e6   : > { %p2596_p4 = scmp.ne.s32.totalorder %s3475_s3, %s2595_s2  ;;  %p2600_p7 = scmp.lt.u32.totalorder %s3475_s3, %s3850_s18 }
 0x2e7   : > { %p2601_p9 = scmp.lt.u32.totalorder %s2599_s5, %s2595_s2  ;;  %p2603_p11 = scmp.lt.u32.totalorder %s2595_s2, %s3475_s3 }
 0x2e8   : > { %p2597_p10 = pnand %p2596_p4, %p3852_p0 }
 0x2e9   : > { %p2602_p8 = por %p2601_p9, %p2600_p7 }
 0x2ea   : > { %p2598_p5 = pneg %p2597_p10 }
 0x2eb   : > { %p2604_p12 = por %p2603_p11, %p2602_p8 }
 0x2ed   : > { %p2605_p13 = pnand %p2604_p12, %p2598_p5 }
 0x2ef   : > { %2608 = shalt.err (!%p2605_p13)
}
 0x2f0   : > { %s3772_s13 = smov 64   ;;  %s3774_s11 = smov 4   ;;  %v1891_v5 = vpack.c.bf16 %v1246_v62, %v1246_v62  ;;  %v1893_v6 = vpack.c.bf16 %v1271_v63, %v1271_v63  ;;  %v1247_v7 = vadd.f32 %v1858_v53, %v1240_v0  ;;  %v1272_v8 = vadd.f32 %v1862_v54, %v1265_v1  ;;  %v1958_v9 = vpop.f32.mrb[9].mxu0 }
 0x2f1   : > { %s3853_s12 = scalar_lea.sflag [#allocation30], %s3398_s19  ;;  %s3854_s1 = sshll.u32 %s3456_s8, 4  ;;  %2183 = vrcp.f32 %v1033_v3  ;;  %v1228_v10 = vadd.f32 %v1853_v2, %v1227_v4  ;;  %v1230_v11 = vpop.f32.mrb[10].mxu0  ;;  %s3521_s1 = int_to_ptr.vmem [resolvable:$true] %s3854_s1 }
 0x2f2   : > { %2015 = dma.vmem_to_hbm [thread:$0]  (%p3852_p0), %s3477_s14, 128, %s3475_s3, %s3853_s12, %s3772_s13, %s3772_s13, %s3774_s11   ;;  %v1892_v12 = vpack.c.bf16 %v1247_v7, %v1247_v7  ;;  %v1894_v13 = vpack.c.bf16 %v1272_v8, %v1272_v8  ;;  %v1231_v14 = vadd.f32 %v1853_v2, %v1230_v11  ;;  %v1959_v15 = vpop.f32.mrb[11].mxu0 }
 0x2f3   : > { %s3855_s14 = sld [smem:[#allocation67_spill]]  ;;  %s1903_s5 = sshll.u32 %s3835_s7, 8  ;;  %1257 = vst.msk [vmem:[%s3489_s10] sm:$0xf] %vm1256_vm3, %v1891_v5  ;;  %1281 = vst.msk [vmem:[%s3456_s8] sm:$0xf] %vm1256_vm3, %v1893_v6 }
 0x2f4   : > { %s3856_s15 = sshll.u32 %s3489_s10, 4  ;;  %s3857_s3 = sld [smem:[#allocation69_spill]]  ;;  %1306 = vst.msk [vmem:[%s3467_s9] sm:$0xff] %vm907_vm1, %v1228_v10  ;;  %1307 = vst.msk [vmem:[%s3467_s9 + $0x8] sm:$0xff] %vm907_vm1, %v1231_v14  ;;  %s3536_s15 = int_to_ptr.vmem [resolvable:$true] %s3856_s15 }
 0x2f5   : > { %1258 = vst.msk [vmem:[%s3489_s10 + $0x4] sm:$0xf] %vm1256_vm3, %v1892_v12  ;;  %1282 = vst.msk [vmem:[%s3456_s8 + $0x4] sm:$0xf] %vm1256_vm3, %v1894_v13  ;;  %s3858_s26 = sld [smem:[#allocation72_spill]]  ;;  %s1314_s20 = scalar_lea.sflag [#allocation27], %s3398_s19 }
 0x2f6   : > { %s2609_s30 = scalar_lea.vmem %s3521_s1, 128 }
 0x2f7   : > { %p2610_p1 = scmp.ne.s32.totalorder %s3521_s1, %s2609_s30 }
 0x2f9   : > { %s3527_s17 = scalar_lea.hbm %s3855_s14, %s3453_s24  ;;  %p2611_p3 = pnand %p2610_p1, %p3852_p0 }
 0x2fa   : > { %s3542_s13 = scalar_lea.hbm %s3857_s3, %s3453_s24  ;;  %s2854_s24 = smov [#allocation26]  }
 0x2fb   : > { %s3557_s27 = scalar_lea.hbm %s3858_s26, %s1903_s5  ;;  %p2612_p6 = pneg %p2611_p3 }
 0x2fc   : > { %s2613_s12 = sshll.u32 %s2854_s24, 4  ;;  %s2614_s12 = int_to_ptr.vmem [resolvable:$false] %s2613_s12 }
 0x2fd   : > { %s2615_s10 = scalar_lea.vmem %s2614_s12, 256  ;;  %p2616_p2 = scmp.lt.s32.totalorder %s3521_s1, %s2614_s12 }
 0x2fe   : > { %p2617_p4 = scmp.lt.s32.totalorder %s2615_s10, %s2609_s30 }
 0x300   : > { %p2618_p10 = por %p2617_p4, %p2616_p2 }
 0x302   : > { %p2619_p5 = pnand %p2618_p10, %p2612_p6 }
 0x304   : > { %2622 = shalt.err (!%p2619_p5)
}
 0x305   : > { %s2623_s8 = scalar_lea.hbm %s3486_s6, 128  ;;  %s2627_s11 = scalar_lea.hbm %s3851_s4, 256 }
 0x306   : > { %p2624_p7 = scmp.ne.s32.totalorder %s3486_s6, %s2623_s8  ;;  %p2628_p11 = scmp.lt.u32.totalorder %s3486_s6, %s3851_s4 }
 0x307   : > { %p2629_p12 = scmp.lt.u32.totalorder %s2627_s11, %s2623_s8  ;;  %p2631_p1 = scmp.lt.u32.totalorder %s2623_s8, %s3486_s6 }
 0x308   : > { %p2625_p9 = pnand %p2624_p7, %p3852_p0 }
 0x309   : > { %p2630_p13 = por %p2629_p12, %p2628_p11 }
 0x30a   : > { %p2626_p8 = pneg %p2625_p9 }
 0x30b   : > { %p2632_p3 = por %p2631_p1, %p2630_p13 }
 0x30d   : > { %p2633_p6 = pnand %p2632_p3, %p2626_p8 }
 0x30f   : > { %2636 = shalt.err (!%p2633_p6)
}
 0x310   : > { %s3859_s30 = smov 4   ;;  %s3860_s12 = smov 64  }
 0x311   : > { %2013 = dma.vmem_to_hbm [thread:$0]  (%p3852_p0), %s3521_s1, 128, %s3486_s6, %s1314_s20, %s3860_s12, %s3860_s12, %s3859_s30  }
 0x312   : > { %s1309_s10 = scalar_lea.sflag [#allocation4], %s3386_s22  ;;  %s2637_s8 = scalar_lea.vmem %s3536_s15, 128 }
 0x313   : > { %p2638_p2 = scmp.ne.s32.totalorder %s3536_s15, %s2637_s8  ;;  %s2855_s18 = smov [#allocation25]  }
 0x314   : > { %s2641_s9 = sshll.u32 %s2855_s18, 4  ;;  %s2642_s9 = int_to_ptr.vmem [resolvable:$false] %s2641_s9 }
 0x315   : > { %p2639_p4 = pnand %p2638_p2, %p3852_p0  ;;  %s2643_s11 = scalar_lea.vmem %s2642_s9, 256 }
 0x316   : > { %p2644_p5 = scmp.lt.s32.totalorder %s3536_s15, %s2642_s9  ;;  %p2645_p7 = scmp.lt.s32.totalorder %s2643_s11, %s2637_s8 }
 0x317   : > { %p2640_p10 = pneg %p2639_p4 }
 0x318   : > { %p2646_p9 = por %p2645_p7, %p2644_p5 }
 0x31a   : > { %p2647_p8 = pnand %p2646_p9, %p2640_p10 }
 0x31c   : > { %2650 = shalt.err (!%p2647_p8)
}
 0x31d   : > { %s2651_s6 = scalar_lea.hbm %s3527_s17, 128  ;;  %s2655_s24 = scalar_lea.hbm %s3855_s14, 256 }
 0x31e   : > { %p2652_p11 = scmp.ne.s32.totalorder %s3527_s17, %s2651_s6  ;;  %p2656_p1 = scmp.lt.u32.totalorder %s3527_s17, %s3855_s14 }
 0x31f   : > { %p2657_p3 = scmp.lt.u32.totalorder %s2655_s24, %s2651_s6  ;;  %p2659_p2 = scmp.lt.u32.totalorder %s2651_s6, %s3527_s17 }
 0x320   : > { %p2653_p12 = pnand %p2652_p11, %p3852_p0 }
 0x321   : > { %p2658_p6 = por %p2657_p3, %p2656_p1 }
 0x322   : > { %p2654_p13 = pneg %p2653_p12 }
 0x323   : > { %p2660_p4 = por %p2659_p2, %p2658_p6 }
 0x325   : > { %p2661_p10 = pnand %p2660_p4, %p2654_p13 }
 0x327   : > { %2664 = shalt.err (!%p2661_p10)
}
 0x328   : > { %2012 = dma.vmem_to_hbm [thread:$0]  (%p3852_p0), %s3536_s15, 128, %s3527_s17, %s1309_s10, %s3860_s12, %s3860_s12, %s3859_s30  }
 0x329   : > { %s2665_s8 = scalar_lea.vmem %s3449_s25, 128  ;;  %s2856_s11 = smov [#allocation28]  }
 0x32a   : > { %p2666_p5 = scmp.ne.s32.totalorder %s3449_s25, %s2665_s8  ;;  %s2669_s6 = sshll.u32 %s2856_s11, 4  ;;  %s2670_s6 = int_to_ptr.vmem [resolvable:$false] %s2669_s6 }
 0x32b   : > { %s2671_s1 = scalar_lea.vmem %s2670_s6, 256  ;;  %p2672_p8 = scmp.lt.s32.totalorder %s3449_s25, %s2670_s6 }
 0x32c   : > { %p2667_p7 = pnand %p2666_p5, %p3852_p0  ;;  %p2673_p11 = scmp.lt.s32.totalorder %s2671_s1, %s2665_s8 }
 0x32e   : > { %p2668_p9 = pneg %p2667_p7  ;;  %p2674_p12 = por %p2673_p11, %p2672_p8 }
 0x330   : > { %p2675_p13 = pnand %p2674_p12, %p2668_p9 }
 0x332   : > { %2678 = shalt.err (!%p2675_p13)
}
 0x333   : > { %s2679_s17 = scalar_lea.hbm %s3542_s13, 128  ;;  %s2683_s2 = scalar_lea.hbm %s3857_s3, 256 }
 0x334   : > { %p2680_p1 = scmp.ne.s32.totalorder %s3542_s13, %s2679_s17  ;;  %p2684_p2 = scmp.lt.u32.totalorder %s3542_s13, %s3857_s3 }
 0x335   : > { %p2685_p4 = scmp.lt.u32.totalorder %s2683_s2, %s2679_s17  ;;  %p2687_p5 = scmp.lt.u32.totalorder %s2679_s17, %s3542_s13 }
 0x336   : > { %p2681_p3 = pnand %p2680_p1, %p3852_p0 }
 0x337   : > { %p2686_p10 = por %p2685_p4, %p2684_p2 }
 0x338   : > { %p2682_p6 = pneg %p2681_p3 }
 0x339   : > { %p2688_p7 = por %p2687_p5, %p2686_p10 }
 0x33b   : > { %p2689_p9 = pnand %p2688_p7, %p2682_p6 }
 0x33d   : > { %2692 = shalt.err (!%p2689_p9)
}
 0x33e   : > { %2014 = dma.vmem_to_hbm [thread:$0]  (%p3852_p0), %s3449_s25, 128, %s3542_s13, %s1314_s20, %s3860_s12, %s3860_s12, %s3859_s30  }
 0x33f   : > { %s1334_s9 = scalar_lea.sflag [#allocation33], %s3386_s22  ;;  %s2693_s8 = scalar_lea.vmem %s3479_s28, 256 }
 0x340   : > { %p2694_p8 = scmp.ne.s32.totalorder %s3479_s28, %s2693_s8  ;;  %s2857_s11 = smov [#allocation32]  }
 0x341   : > { %s2697_s6 = sshll.u32 %s2857_s11, 4  ;;  %s2698_s6 = int_to_ptr.vmem [resolvable:$false] %s2697_s6 }
 0x342   : > { %p2695_p11 = pnand %p2694_p8, %p3852_p0  ;;  %s2699_s1 = scalar_lea.vmem %s2698_s6, 512 }
 0x343   : > { %p2700_p13 = scmp.lt.s32.totalorder %s3479_s28, %s2698_s6  ;;  %p2701_p1 = scmp.lt.s32.totalorder %s2699_s1, %s2693_s8 }
 0x344   : > { %p2696_p12 = pneg %p2695_p11 }
 0x345   : > { %p2702_p3 = por %p2701_p1, %p2700_p13 }
 0x347   : > { %p2703_p6 = pnand %p2702_p3, %p2696_p12 }
 0x349   : > { %2706 = shalt.err (!%p2703_p6)
}
 0x34a   : > { %s2707_s20 = scalar_lea.hbm %s3557_s27, 256  ;;  %s2711_s30 = scalar_lea.hbm %s3858_s26, 512 }
 0x34b   : > { %p2708_p2 = scmp.ne.s32.totalorder %s3557_s27, %s2707_s20  ;;  %p2712_p5 = scmp.lt.u32.totalorder %s3557_s27, %s3858_s26 }
 0x34c   : > { %p2713_p7 = scmp.lt.u32.totalorder %s2711_s30, %s2707_s20  ;;  %p2715_p8 = scmp.lt.u32.totalorder %s2707_s20, %s3557_s27 }
 0x34d   : > { %p2709_p4 = pnand %p2708_p2, %p3852_p0 }
 0x34e   : > { %p2714_p9 = por %p2713_p7, %p2712_p5 }
 0x34f   : > { %p2710_p10 = pneg %p2709_p4 }
 0x350   : > { %p2716_p11 = por %p2715_p8, %p2714_p9 }
 0x352   : > { %p2717_p12 = pnand %p2716_p11, %p2710_p10 }
 0x354   : > { %2720 = shalt.err (!%p2717_p12)
}
 0x355   : > { %s2858_s15 = smov 128   ;;  %s2859_s10 = smov 8   ;;  %v2182_v16 = vpop.eup %2181 }
 0x356   : > { %2017 = dma.vmem_to_hbm [thread:$0]  (%p3852_p0), %s3479_s28, 256, %s3557_s27, %s1334_s9, %s2858_s15, %s2858_s15, %s2859_s10   ;;  %v2184_v17 = vpop.eup %2183 }
 0x357   : > { %1304 = vst.msk [vmem:[%s3461_s0] sm:$0xff] %vm907_vm1, %v2182_v16  ;;  %s3861_s2 = sshll.u32 %s3461_s0, 4  ;;  %s3862_s8 = sld [smem:[#allocation71_spill]]  ;;  %1305 = vst.msk [vmem:[%s3461_s0 + $0x8] sm:$0xff] %vm907_vm1, %v2184_v17  ;;  %s3670_s2 = int_to_ptr.vmem [resolvable:$true] %s3861_s2 }
 0x358   : > { %s2721_s22 = scalar_lea.vmem %s3670_s2, 256  ;;  %s2860_s27 = smov [#allocation31]  }
 0x359   : > { %p2722_p13 = scmp.ne.s32.totalorder %s3670_s2, %s2721_s22  ;;  %s2725_s28 = sshll.u32 %s2860_s27, 4  ;;  %s2726_s28 = int_to_ptr.vmem [resolvable:$false] %s2725_s28 }
 0x35a   : > { %s2727_s7 = scalar_lea.vmem %s2726_s28, 512  ;;  %p2728_p6 = scmp.lt.s32.totalorder %s3670_s2, %s2726_s28 }
 0x35b   : > { %p2723_p1 = pnand %p2722_p13, %p3852_p0  ;;  %p2729_p2 = scmp.lt.s32.totalorder %s2727_s7, %s2721_s22 }
 0x35d   : > { %s3677_s11 = scalar_lea.hbm %s3862_s8, %s1903_s5  ;;  %p2724_p3 = pneg %p2723_p1 }
 0x35e   : > { %p2730_p4 = por %p2729_p2, %p2728_p6 }
 0x360   : > { %p2731_p10 = pnand %p2730_p4, %p2724_p3 }
 0x362   : > { %2734 = shalt.err (!%p2731_p10)
}
 0x363   : > { %s2735_s0 = scalar_lea.hbm %s3677_s11, 256  ;;  %s2739_s6 = scalar_lea.hbm %s3862_s8, 512 }
 0x364   : > { %p2736_p5 = scmp.ne.s32.totalorder %s3677_s11, %s2735_s0  ;;  %p2740_p8 = scmp.lt.u32.totalorder %s3677_s11, %s3862_s8 }
 0x365   : > { %p2741_p11 = scmp.lt.u32.totalorder %s2739_s6, %s2735_s0  ;;  %p2743_p13 = scmp.lt.u32.totalorder %s2735_s0, %s3677_s11 }
 0x366   : > { %p2737_p7 = pnand %p2736_p5, %p3852_p0 }
 0x367   : > { %p2742_p12 = por %p2741_p11, %p2740_p8 }
 0x368   : > { %p2738_p9 = pneg %p2737_p7 }
 0x369   : > { %p2744_p1 = por %p2743_p13, %p2742_p12 }
 0x36b   : > { %p2745_p3 = pnand %p2744_p1, %p2738_p9 }
 0x36d   : > { %2748 = shalt.err (!%p2745_p3)
}
 0x36e   : > { %s3863_s25 = scalar_lea.sflag [#allocation30], %s3398_s19 }
 0x36f   : > { %2016 = dma.vmem_to_hbm [thread:$0]  (%p3852_p0), %s3670_s2, 256, %s3677_s11, %s3863_s25, %s2858_s15, %s2858_s15, %s2859_s10  }
 0x370 PF: > { %s3864_s13 = sld [smem:[#allocation47_spill]]  ;;  %p3865_p6 = scmp.ne.s32.totalorder %s3828_s23, 0 }
 0x371   : > { %p3866_p2 = scmp.ge.s32.totalorder %s2831_s21, 2 }
 0x373   : > { %p2069_p4 = pnand %p3866_p2, %p3865_p6 }
 0x376   : > { %s1442_s30 = sand.u32 1, %s3864_s13  }
 0x377   : > { %s1443_s12 = scalar_lea.sflag [#allocation4], %s1442_s30 }
 0x378   : > { %2802 = dma.done.wait (!%p2069_p4), %s1443_s12, 128  }
 0x379   : > { %2804 = vsyncadd (!%p2069_p4), %s1443_s12, 4294967168  ;;  %s3867_s29 = sadd.s32 4294967294, %s2831_s21  }
 0x37a   : > { %s1451_s17 = sand.u32 1, %s3867_s29  }
 0x37b   : > { %s1452_s24 = scalar_lea.sflag [#allocation27], %s1451_s17 }
 0x37c   : > { %2806 = dma.done.wait (!%p2069_p4), %s1452_s24, 256  }
 0x37d   : > { %2808 = vsyncadd (!%p2069_p4), %s1452_s24, 4294967040  ;;  %s1470_s19 = scalar_lea.sflag [#allocation30], %s1451_s17 }
 0x37e   : > { %2810 = dma.done.wait (!%p2069_p4), %s1470_s19, 384  }
 0x37f   : > { %2812 = vsyncadd (!%p2069_p4), %s1470_s19, 4294966912  ;;  %s1488_s15 = scalar_lea.sflag [#allocation33], %s1442_s30 }
 0x380   : > { %2814 = dma.done.wait (!%p2069_p4), %s1488_s15, 256  }
 0x381   : > { %2816 = vsyncadd (!%p2069_p4), %s1488_s15, 4294967040  ;;  %s3868_s0 = sld [smem:[#allocation48_spill]]  ;;  %s3869_s30 = sld [smem:[#allocation49_spill]] }
 0x382   : > { %s3870_s20 = sld [smem:[#allocation52_spill]]  ;;  %p51_p0 = scmp.ge.s32.totalorder %s3262_s16, 4  }
 0x383   : > { %s3871_s21 = smov %s3262_s16 }
 0x384   :  { %53 = sbr.rel (!%p51_p0) target bundleno = 40 (0x28), region = 263 }
 0x38b   :  { %1493 = vsyncpa [#allocation3], 1 }
 0x38c   :  { %1495 = vsyncpa [#allocation3 + $0x1], 1 }
 0x38d   :  { %1496 = vsyncpa [#allocation6], 1 }
 0x38e   :  { %1498 = vsyncpa [#allocation6 + $0x1], 1 }
 0x38f   :  { %1499 = vsyncpa [#allocation9], 1 }
 0x390   :  { %1500 = vsyncpa [#allocation12], 1 }
 0x391   :  { %1501 = vsyncpa [#allocation15], 1 }
 0x392   :  { %1502 = vsyncpa [#allocation18], 1 }
 0x393   :  { %1503 = vsyncpa [#allocation21], 1 }
 0x394   :  { %1504 = vsyncpa [#allocation24], 1 }
 0x395   :  { %1505 = vsyncpa [#allocation4], 1 }
 0x396   :  { %1507 = vsyncpa [#allocation4 + $0x1], 1 }
 0x397   :  { %1508 = vsyncpa [#allocation27], 1 }
 0x398   :  { %1510 = vsyncpa [#allocation27 + $0x1], 1 }
 0x399   :  { %1511 = vsyncpa [#allocation30], 1 }
 0x39a   :  { %1513 = vsyncpa [#allocation30 + $0x1], 1 }
 0x39b   :  { %1514 = vsyncpa [#allocation33], 1 }
 0x39c   :  { %1516 = vsyncpa [#allocation33 + $0x1], 1 }

// kernel: tpu_custom_call.1
= control target key start
LH: loop header
LB: loop body
LE: loop exit
PB: predicated region body
PF: predicated region fallthrough
CT: control target
= control target key end

     0   :  { %s3727_s0 = inlined_call_operand.hbm [shape: bf16[32,32], index: 0, kind: input, shape index: {}]   ;;  %s3728_s1 = inlined_call_operand.hbm [shape: bf16[32,32], index: 1, kind: input, shape index: {}]   ;;  %s3729_s2 = inlined_call_operand.hbm [shape: bf16[32,64], index: 2, kind: input, shape index: {}]   ;;  %s3730_s3 = inlined_call_operand.hbm [shape: f32[1,64], index: 3, kind: input, shape index: {}]   ;;  %s3731_s4 = inlined_call_operand.hbm [shape: bf16[32,32], index: 4, kind: input, shape index: {}]   ;;  %s3732_s5 = inlined_call_operand.hbm [shape: f32[1,32], index: 5, kind: input, shape index: {}]   ;;  %s3733_s6 = inlined_call_operand.hbm [shape: bf16[32,16], index: 6, kind: input, shape index: {}]   ;;  %s3734_s7 = inlined_call_operand.hbm [shape: f32[1,16], index: 7, kind: input, shape index: {}]   ;;  %s3735_s8 = inlined_call_operand.hbm [shape: bf16[32,64], index: 8, kind: input, shape index: {}]   ;;  %s3736_s9 = inlined_call_operand.hbm [shape: f32[1,64], index: 9, kind: input, shape index: {}]   ;;  %s3737_s10 = inlined_call_operand.hbm [shape: bf16[32,32], index: 10, kind: input, shape index: {}]   ;;  %s3738_s11 = inlined_call_operand.hbm [shape: f32[1,32], index: 11, kind: input, shape index: {}]   ;;  %s3739_s12 = inlined_call_operand.hbm [shape: f32[2,16], index: 12, kind: input, shape index: {}]   ;;  %s3740_s13 = inlined_call_operand.hbm [shape: f32[2,16], index: 13, kind: input, shape index: {}]   ;;  %s3741_s14 = inlined_call_operand.hbm [shape: bf16[32,16], index: 14, kind: output, shape index: {0}]   ;;  %s3742_s15 = inlined_call_operand.hbm [shape: bf16[32,16], index: 15, kind: output, shape index: {1}]   ;;  %s3743_s16 = inlined_call_operand.hbm [shape: bf16[32,64], index: 16, kind: output, shape index: {2}]   ;;  %s3744_s17 = inlined_call_operand.hbm [shape: bf16[32,64], index: 17, kind: output, shape index: {3}]   ;;  %s3745_s18 = inlined_call_operand.hbm [shape: f32[32,32], index: 18, kind: output, shape index: {4}]   ;;  %s3746_s19 = inlined_call_operand.hbm [shape: f32[32,32], index: 19, kind: output, shape index: {5}]  }
   0x1   :  { %3780 = sst [smem:[#allocation53_spill]] %s3727_s0 }
   0x2   :  { %3781 = sst [smem:[#allocation54_spill]] %s3728_s1 }
   0x3   :  { %3782 = sst [smem:[#allocation55_spill]] %s3729_s2 }
   0x4   :  { %3783 = sst [smem:[#allocation56_spill]] %s3730_s3 }
   0x5   :  { %3784 = sst [smem:[#allocation57_spill]] %s3731_s4 }
   0x6   :  { %3785 = sst [smem:[#allocation58_spill]] %s3732_s5 }
   0x7   :  { %3786 = sst [smem:[#allocation59_spill]] %s3733_s6 }
   0x8   :  { %3787 = sst [smem:[#allocation60_spill]] %s3734_s7 }
   0x9   :  { %3788 = sst [smem:[#allocation61_spill]] %s3735_s8 }
   0xa   :  { %3789 = sst [smem:[#allocation62_spill]] %s3736_s9 }
   0xb   :  { %3790 = sst [smem:[#allocation63_spill]] %s3737_s10 }
   0xc   :  { %3791 = sst [smem:[#allocation64_spill]] %s3738_s11 }
   0xd   :  { %3792 = sst [smem:[#allocation65_spill]] %s3739_s12 }
   0xe   :  { %3793 = sst [smem:[#allocation66_spill]] %s3740_s13 }
   0xf   :  { %3794 = sst [smem:[#allocation67_spill]] %s3741_s14 }
  0x10   :  { %3795 = sst [smem:[#allocation68_spill]] %s3742_s15 }
  0x11   :  { %3796 = sst [smem:[#allocation69_spill]] %s3743_s16 }
  0x12   :  { %3797 = sst [smem:[#allocation70_spill]] %s3744_s17 }
  0x13   :  { %3798 = sst [smem:[#allocation71_spill]] %s3745_s18 }
  0x14   :  { %3799 = sst [smem:[#allocation72_spill]] %s3746_s19 }
  0x15   :  { %25 = vsyncpa [#allocation3], 0 }
  0x16   :  { %27 = vsyncpa [#allocation3 + $0x1], 0 }
  0x17   :  { %28 = vsyncpa [#allocation6], 0 }
  0x18   :  { %30 = vsyncpa [#allocation6 + $0x1], 0 }
  0x19   :  { %31 = vsyncpa [#allocation9], 0 }
  0x1a   :  { %32 = vsyncpa [#allocation12], 0 }
  0x1b   :  { %33 = vsyncpa [#allocation15], 0 }
  0x1c   :  { %34 = vsyncpa [#allocation18], 0 }
  0x1d   :  { %35 = vsyncpa [#allocation21], 0 }
  0x1e   :  { %36 = vsyncpa [#allocation24], 0 }
  0x1f   :  { %37 = vsyncpa [#allocation4], 0 }
  0x20   :  { %39 = vsyncpa [#allocation4 + $0x1], 0 }
  0x21   :  { %40 = vsyncpa [#allocation27], 0 }
  0x22   :  { %42 = vsyncpa [#allocation27 + $0x1], 0 }
  0x23   :  { %43 = vsyncpa [#allocation30], 0 }
  0x24   :  { %45 = vsyncpa [#allocation30 + $0x1], 0 }
  0x25   :  { %46 = vsyncpa [#allocation33], 0 }
  0x26   :  { %48 = vsyncpa [#allocation33 + $0x1], 0  ;;  %s2961_s0 = smov 0   ;;  %s2963_s30 = smov 0  }
  0x27   :  { %s2965_s20 = smov 0   ;;  %s2967_s21 = smov 0  }
  0x28 LB: > { %3800 = sst [smem:[#allocation47_spill]] %s2819_s0  ;;  %s2833_s1 = smov [#allocation7]   ;;  %s2831_s21 = sphi %s2967_s21, %s3871_s21   ;;  %s2827_s20 = sphi %s2965_s20, %s3870_s20   ;;  %s2823_s30 = sphi %s2963_s30, %s3869_s30   ;;  %s2819_s0 = sphi %s2961_s0, %s3868_s0  }
  0x29   : > { %3801 = sst [smem:[#allocation48_spill]] %s2823_s30  ;;  %s531_s22 = sshll.u32 %s2833_s1, 4  ;;  %s2987_s22 = int_to_ptr.vmem [resolvable:$true] %s531_s22 }
  0x2a   : > { %3802 = sst [smem:[#allocation49_spill]] %s2827_s20  ;;  %s2982_s2 = sadd.s32 4294967295, %s2831_s21  }
  0x2b   : > { %3803 = sst [smem:[#allocation50_spill]] %s2982_s2  ;;  %p1792_p0 = scmp.ge.s32.totalorder %s2831_s21, 1 }
  0x2c   : > { %p3763_p1 = scmp.eq.s32.totalorder %s2982_s2, 0  ;;  %p519_p2 = scmp.lt.s32.totalorder %s2831_s21, 3 }
  0x2d   : > { %s2834_s24 = smov [#allocation8]   ;;  %s2835_s26 = smov [#allocation11]  }
  0x2e   : > { %p2989_p3 = pnand %p1792_p0, %p519_p2  ;;  %s545_s25 = sshll.u32 %s2834_s24, 4  ;;  %s3002_s25 = int_to_ptr.vmem [resolvable:$true] %s545_s25 }
  0x2f   : > { %s569_s27 = sshll.u32 %s2835_s26, 4  ;;  %s3807_s1 = sld [smem:[#allocation55_spill]]  ;;  %s3004_s27 = int_to_ptr.vmem [resolvable:$true] %s569_s27 }
  0x30   : > { %s3804_s23 = scalar_select %p2989_p3, 1, 0 }
  0x31   : > { %p2024_p5 = pneg %p2989_p3 }
  0x32   : > { %3805 = sst [smem:[#allocation51_spill]] %s3804_s23 }
  0x33   : > { %p2998_p6 = pnand %p2024_p5, %p3763_p1 }
  0x35   : > { %s2185_s18 = scalar_lea.hbm %s3807_s1, 256  ;;  %p3014_p8 = pneg %p2998_p6 }
  0x36   : > { %p2186_p7 = scmp.ne.s32.totalorder %s3807_s1, %s2185_s18  ;;  %p2192_p11 = scmp.lt.u32.totalorder %s2185_s18, %s3807_s1 }
  0x38   : > { %p2188_p9 = pnand %p3014_p8, %p2186_p7 }
  0x3a   : > { %p2189_p10 = pneg %p2188_p9 }
  0x3c   : > { %p2194_p12 = pnand %p2192_p11, %p2189_p10 }
  0x3e   : > { %2197 = shalt.err (!%p2194_p12)
}
  0x3f   : > { %s2198_s16 = scalar_lea.vmem %s2987_s22, 256  ;;  %p2206_p5 = scmp.lt.s32.totalorder %s2987_s22, %s2987_s22 }
  0x40   : > { %p2199_p13 = scmp.ne.s32.totalorder %s2987_s22, %s2198_s16  ;;  %p2207_p4 = scmp.lt.s32.totalorder %s2198_s16, %s2198_s16 }
  0x42   : > { %p2201_p0 = pnand %p2199_p13, %p3014_p8  ;;  %p2208_p7 = por %p2207_p4, %p2206_p5 }
  0x44   : > { %p2202_p2 = pneg %p2201_p0 }
  0x46   : > { %p2209_p9 = pnand %p2208_p7, %p2202_p2 }
  0x48   : > { %2212 = shalt.err (!%p2209_p9)
}
  0x49   : > { %s3761_s19 = smov 64   ;;  %s3767_s14 = smov 4  }
  0x4a   : > { %2027 = dma.hbm_to_vmem [thread:$0]  (!%p2998_p6), %s3807_s1, 256, %s2987_s22, [#allocation6], %s3761_s19, %s3761_s19, %s3767_s14  }
  0x4b   : > { %s3809_s15 = sld [smem:[#allocation56_spill]] }
  0x51   : > { %s2213_s16 = scalar_lea.hbm %s3809_s15, 16 }
  0x52   : > { %p2214_p4 = scmp.ne.s32.totalorder %s3809_s15, %s2213_s16  ;;  %p2220_p12 = scmp.lt.u32.totalorder %s2213_s16, %s3809_s15 }
  0x54   : > { %p2216_p10 = pnand %p2214_p4, %p3014_p8 }
  0x56   : > { %p2217_p11 = pneg %p2216_p10 }
  0x58   : > { %p2222_p13 = pnand %p2220_p12, %p2217_p11 }
  0x5a   : > { %2225 = shalt.err (!%p2222_p13)
}
  0x5b   : > { %s2226_s22 = scalar_lea.vmem %s3002_s25, 16  ;;  %s2233_s17 = scalar_lea.vmem %s3002_s25, 32 }
  0x5c   : > { %p2227_p0 = scmp.ne.s32.totalorder %s3002_s25, %s2226_s22  ;;  %p2234_p7 = scmp.lt.s32.totalorder %s3002_s25, %s3002_s25 }
  0x5d   : > { %p2235_p9 = scmp.lt.s32.totalorder %s2233_s17, %s2226_s22 }
  0x5e   : > { %p2229_p2 = pnand %p2227_p0, %p3014_p8 }
  0x5f   : > { %p2236_p4 = por %p2235_p9, %p2234_p7 }
  0x60   : > { %p2230_p5 = pneg %p2229_p2 }
  0x62   : > { %p2237_p10 = pnand %p2236_p4, %p2230_p5 }
  0x64   : > { %2240 = shalt.err (!%p2237_p10)
}
  0x65   : > { %2030 = dma.hbm_to_vmem [thread:$0]  (!%p2998_p6), %s3809_s15, 16, %s3002_s25, [#allocation9]  }
  0x66   : > { %s3810_s5 = sld [smem:[#allocation58_spill]] }
  0x6c   : > { %s2241_s28 = scalar_lea.hbm %s3810_s5, 16 }
  0x6d   : > { %p2242_p11 = scmp.ne.s32.totalorder %s3810_s5, %s2241_s28  ;;  %p2248_p0 = scmp.lt.u32.totalorder %s2241_s28, %s3810_s5 }
  0x6f   : > { %p2244_p12 = pnand %p2242_p11, %p3014_p8 }
  0x71   : > { %p2245_p13 = pneg %p2244_p12 }
  0x73   : > { %p2250_p2 = pnand %p2248_p0, %p2245_p13 }
  0x75   : > { %2253 = shalt.err (!%p2250_p2)
}
  0x76   : > { %s2254_s25 = scalar_lea.vmem %s3004_s27, 16  ;;  %s2261_s17 = scalar_lea.vmem %s3004_s27, 32 }
  0x77   : > { %p2255_p5 = scmp.ne.s32.totalorder %s3004_s27, %s2254_s25  ;;  %p2262_p4 = scmp.lt.s32.totalorder %s3004_s27, %s3004_s27 }
  0x78   : > { %p2263_p10 = scmp.lt.s32.totalorder %s2261_s17, %s2254_s25 }
  0x79   : > { %p2257_p7 = pnand %p2255_p5, %p3014_p8 }
  0x7a   : > { %p2264_p11 = por %p2263_p10, %p2262_p4 }
  0x7b   : > { %p2258_p9 = pneg %p2257_p7 }
  0x7d   : > { %p2265_p12 = pnand %p2264_p11, %p2258_p9 }
  0x7f   : > { %2268 = shalt.err (!%p2265_p12)
}
  0x80   : > { %2036 = dma.hbm_to_vmem [thread:$0]  (!%p2998_p6), %s3810_s5, 16, %s3004_s27, [#allocation12]  }
  0x81   : > { %s2838_s23 = smov [#allocation14]   ;;  %s2839_s28 = smov [#allocation17]  }
  0x82   : > { %s593_s18 = sshll.u32 %s2838_s23, 4  ;;  %s617_s29 = sshll.u32 %s2839_s28, 4  ;;  %s594_s18 = int_to_ptr.vmem [resolvable:$true] %s593_s18  ;;  %s618_s29 = int_to_ptr.vmem [resolvable:$true] %s617_s29 }
  0x83   : > { %s3811_s7 = sld [smem:[#allocation60_spill]] }
  0x89   : > { %s2269_s22 = scalar_lea.hbm %s3811_s7, 16 }
  0x8a   : > { %p2270_p13 = scmp.ne.s32.totalorder %s3811_s7, %s2269_s22  ;;  %p2276_p5 = scmp.lt.u32.totalorder %s2269_s22, %s3811_s7 }
  0x8c   : > { %p2272_p0 = pnand %p2270_p13, %p3014_p8 }
  0x8e   : > { %p2273_p2 = pneg %p2272_p0 }
  0x90   : > { %p2278_p7 = pnand %p2276_p5, %p2273_p2 }
  0x92   : > { %2281 = shalt.err (!%p2278_p7)
}
  0x93   : > { %s2282_s27 = scalar_lea.vmem %s594_s18, 16  ;;  %s2289_s2 = scalar_lea.vmem %s594_s18, 32 }
  0x94   : > { %p2283_p9 = scmp.ne.s32.totalorder %s594_s18, %s2282_s27  ;;  %p2290_p11 = scmp.lt.s32.totalorder %s594_s18, %s594_s18 }
  0x95   : > { %p2291_p12 = scmp.lt.s32.totalorder %s2289_s2, %s2282_s27 }
  0x96   : > { %p2285_p4 = pnand %p2283_p9, %p3014_p8 }
  0x97   : > { %p2292_p1 = por %p2291_p12, %p2290_p11 }
  0x98   : > { %p2286_p10 = pneg %p2285_p4 }
  0x9a   : > { %p2293_p3 = pnand %p2292_p1, %p2286_p10 }
  0x9c   : > { %2296 = shalt.err (!%p2293_p3)
}
  0x9d   : > { %2042 = dma.hbm_to_vmem [thread:$0]  (!%p2998_p6), %s3811_s7, 16, %s594_s18, [#allocation15]  }
  0x9e   : > { %s3812_s9 = sld [smem:[#allocation62_spill]] }
  0xa4   : > { %s2297_s16 = scalar_lea.hbm %s3812_s9, 16 }
  0xa5   : > { %p2298_p13 = scmp.ne.s32.totalorder %s3812_s9, %s2297_s16  ;;  %p2304_p3 = scmp.lt.u32.totalorder %s2297_s16, %s3812_s9 }
  0xa7   : > { %p2300_p0 = pnand %p2298_p13, %p3014_p8 }
  0xa9   : > { %p2301_p1 = pneg %p2300_p0 }
  0xab   : > { %p2306_p2 = pnand %p2304_p3, %p2301_p1 }
  0xad   : > { %2309 = shalt.err (!%p2306_p2)
}
  0xae   : > { %s2310_s27 = scalar_lea.vmem %s618_s29, 16  ;;  %s2317_s18 = scalar_lea.vmem %s618_s29, 32 }
  0xaf   : > { %p2311_p5 = scmp.ne.s32.totalorder %s618_s29, %s2310_s27  ;;  %p2318_p4 = scmp.lt.s32.totalorder %s618_s29, %s618_s29 }
  0xb0   : > { %p2319_p10 = scmp.lt.s32.totalorder %s2317_s18, %s2310_s27 }
  0xb1   : > { %p2313_p7 = pnand %p2311_p5, %p3014_p8 }
  0xb2   : > { %p2320_p11 = por %p2319_p10, %p2318_p4 }
  0xb3   : > { %p2314_p9 = pneg %p2313_p7 }
  0xb5   : > { %p2321_p12 = pnand %p2320_p11, %p2314_p9 }
  0xb7   : > { %2324 = shalt.err (!%p2321_p12)
}
  0xb8   : > { %2048 = dma.hbm_to_vmem [thread:$0]  (!%p2998_p6), %s3812_s9, 16, %s618_s29, [#allocation18]  }
  0xb9   : > { %s2840_s28 = smov [#allocation20]   ;;  %s2841_s26 = smov [#allocation10]  }
  0xba   : > { %s641_s19 = sshll.u32 %s2840_s28, 4  ;;  %s555_s16 = sshll.u32 %s2841_s26, 4  ;;  %s642_s19 = int_to_ptr.vmem [resolvable:$true] %s641_s19  ;;  %s556_s16 = int_to_ptr.vmem [resolvable:$true] %s555_s16 }
  0xbb   : > { %s3813_s11 = sld [smem:[#allocation64_spill]] }
  0xc1   : > { %s2325_s17 = scalar_lea.hbm %s3813_s11, 16 }
  0xc2   : > { %p2326_p13 = scmp.ne.s32.totalorder %s3813_s11, %s2325_s17  ;;  %p2332_p3 = scmp.lt.u32.totalorder %s2325_s17, %s3813_s11 }
  0xc4   : > { %p2328_p0 = pnand %p2326_p13, %p3014_p8 }
  0xc6   : > { %p2329_p1 = pneg %p2328_p0 }
  0xc8   : > { %p2334_p2 = pnand %p2332_p3, %p2329_p1 }
  0xca   : > { %2337 = shalt.err (!%p2334_p2)
}
  0xcb   : > { %s2338_s29 = scalar_lea.vmem %s642_s19, 16  ;;  %s2345_s23 = scalar_lea.vmem %s642_s19, 32 }
  0xcc   : > { %p2339_p5 = scmp.ne.s32.totalorder %s642_s19, %s2338_s29  ;;  %p2346_p4 = scmp.lt.s32.totalorder %s642_s19, %s642_s19 }
  0xcd   : > { %p2347_p10 = scmp.lt.s32.totalorder %s2345_s23, %s2338_s29 }
  0xce   : > { %p2341_p7 = pnand %p2339_p5, %p3014_p8 }
  0xcf   : > { %p2348_p11 = por %p2347_p10, %p2346_p4 }
  0xd0   : > { %p2342_p9 = pneg %p2341_p7 }
  0xd2   : > { %p2349_p12 = pnand %p2348_p11, %p2342_p9 }
  0xd4   : > { %2352 = shalt.err (!%p2349_p12)
}
  0xd5   : > { %2054 = dma.hbm_to_vmem [thread:$0]  (!%p2998_p6), %s3813_s11, 16, %s642_s19, [#allocation21]  }
  0xd6   : > { %s3814_s4 = sld [smem:[#allocation57_spill]] }
  0xdc   : > { %s2353_s17 = scalar_lea.hbm %s3814_s4, 256 }
  0xdd   : > { %p2354_p13 = scmp.ne.s32.totalorder %s3814_s4, %s2353_s17  ;;  %p2360_p3 = scmp.lt.u32.totalorder %s2353_s17, %s3814_s4 }
  0xdf   : > { %p2356_p0 = pnand %p2354_p13, %p3014_p8 }
  0xe1   : > { %p2357_p1 = pneg %p2356_p0 }
  0xe3   : > { %p2362_p2 = pnand %p2360_p3, %p2357_p1 }
  0xe5   : > { %2365 = shalt.err (!%p2362_p2)
}
  0xe6   : > { %s2366_s29 = scalar_lea.vmem %s556_s16, 256  ;;  %p2374_p4 = scmp.lt.s32.totalorder %s556_s16, %s556_s16 }
  0xe7   : > { %p2367_p5 = scmp.ne.s32.totalorder %s556_s16, %s2366_s29  ;;  %p2375_p10 = scmp.lt.s32.totalorder %s2366_s29, %s2366_s29 }
  0xe9   : > { %p2369_p7 = pnand %p2367_p5, %p3014_p8  ;;  %p2376_p11 = por %p2375_p10, %p2374_p4 }
  0xeb   : > { %p2370_p9 = pneg %p2369_p7 }
  0xed   : > { %p2377_p12 = pnand %p2376_p11, %p2370_p9 }
  0xef   : > { %2380 = shalt.err (!%p2377_p12)
}
  0xf0   : > { %s3815_s19 = smov 64   ;;  %s2842_s26 = smov [#allocation13]  }
  0xf1   : > { %2033 = dma.hbm_to_vmem [thread:$0]  (!%p2998_p6), %s3814_s4, 256, %s556_s16, [#allocation9], %s3815_s19, %s3815_s19, %s3767_s14  }
  0xf2   : > { %s579_s22 = sshll.u32 %s2842_s26, 4  ;;  %s2843_s25 = smov [#allocation16]   ;;  %s580_s22 = int_to_ptr.vmem [resolvable:$true] %s579_s22 }
  0xf3   : > { %s603_s17 = sshll.u32 %s2843_s25, 4  ;;  %s3816_s6 = sld [smem:[#allocation59_spill]]  ;;  %s604_s17 = int_to_ptr.vmem [resolvable:$true] %s603_s17 }
  0xf9   : > { %s2381_s18 = scalar_lea.hbm %s3816_s6, 256 }
  0xfa   : > { %p2382_p13 = scmp.ne.s32.totalorder %s3816_s6, %s2381_s18  ;;  %p2388_p3 = scmp.lt.u32.totalorder %s2381_s18, %s3816_s6 }
  0xfc   : > { %p2384_p0 = pnand %p2382_p13, %p3014_p8 }
  0xfe   : > { %p2385_p1 = pneg %p2384_p0 }
 0x100   : > { %p2390_p2 = pnand %p2388_p3, %p2385_p1 }
 0x102   : > { %2393 = shalt.err (!%p2390_p2)
}
 0x103   : > { %s2394_s16 = scalar_lea.vmem %s580_s22, 256  ;;  %p2402_p4 = scmp.lt.s32.totalorder %s580_s22, %s580_s22 }
 0x104   : > { %p2395_p5 = scmp.ne.s32.totalorder %s580_s22, %s2394_s16  ;;  %p2403_p10 = scmp.lt.s32.totalorder %s2394_s16, %s2394_s16 }
 0x106   : > { %p2397_p7 = pnand %p2395_p5, %p3014_p8  ;;  %p2404_p11 = por %p2403_p10, %p2402_p4 }
 0x108   : > { %p2398_p9 = pneg %p2397_p7 }
 0x10a   : > { %p2405_p12 = pnand %p2404_p11, %p2398_p9 }
 0x10c   : > { %2408 = shalt.err (!%p2405_p12)
}
 0x10d   : > { %2039 = dma.hbm_to_vmem [thread:$0]  (!%p2998_p6), %s3816_s6, 256, %s580_s22, [#allocation12], %s3815_s19, %s3815_s19, %s3767_s14  }
 0x10e   : > { %s3817_s8 = sld [smem:[#allocation61_spill]] }
 0x114   : > { %s2409_s0 = scalar_lea.hbm %s3817_s8, 256 }
 0x115   : > { %p2410_p13 = scmp.ne.s32.totalorder %s3817_s8, %s2409_s0  ;;  %p2416_p3 = scmp.lt.u32.totalorder %s2409_s0, %s3817_s8 }
 0x117   : > { %p2412_p0 = pnand %p2410_p13, %p3014_p8 }
 0x119   : > { %p2413_p1 = pneg %p2412_p0 }
 0x11b   : > { %p2418_p2 = pnand %p2416_p3, %p2413_p1 }
 0x11d   : > { %2421 = shalt.err (!%p2418_p2)
}
 0x11e   : > { %s2422_s23 = scalar_lea.vmem %s604_s17, 256  ;;  %p2430_p4 = scmp.lt.s32.totalorder %s604_s17, %s604_s17 }
 0x11f   : > { %p2423_p5 = scmp.ne.s32.totalorder %s604_s17, %s2422_s23  ;;  %p2431_p10 = scmp.lt.s32.totalorder %s2422_s23, %s2422_s23 }
 0x121   : > { %p2425_p7 = pnand %p2423_p5, %p3014_p8  ;;  %p2432_p11 = por %p2431_p10, %p2430_p4 }
 0x123   : > { %p2426_p9 = pneg %p2425_p7 }
 0x125   : > { %p2433_p12 = pnand %p2432_p11, %p2426_p9 }
 0x127   : > { %2436 = shalt.err (!%p2433_p12)
}
 0x128   : > { %2045 = dma.hbm_to_vmem [thread:$0]  (!%p2998_p6), %s3817_s8, 256, %s604_s17, [#allocation15], %s3815_s19, %s3815_s19, %s3767_s14  }
 0x129   : > { %s2844_s1 = smov [#allocation19]   ;;  %s2845_s26 = smov [#allocation22]  }
 0x12a   : > { %s627_s28 = sshll.u32 %s2844_s1, 4  ;;  %s652_s25 = sshll.u32 %s2845_s26, 4  ;;  %s628_s28 = int_to_ptr.vmem [resolvable:$true] %s627_s28  ;;  %s653_s25 = int_to_ptr.vmem [resolvable:$true] %s652_s25 }
 0x12b   : > { %s3818_s10 = sld [smem:[#allocation63_spill]] }
 0x131   : > { %s2437_s18 = scalar_lea.hbm %s3818_s10, 256 }
 0x132   : > { %p2438_p13 = scmp.ne.s32.totalorder %s3818_s10, %s2437_s18  ;;  %p2444_p3 = scmp.lt.u32.totalorder %s2437_s18, %s3818_s10 }
 0x134   : > { %p2440_p0 = pnand %p2438_p13, %p3014_p8 }
 0x136   : > { %p2441_p1 = pneg %p2440_p0 }
 0x138   : > { %p2446_p2 = pnand %p2444_p3, %p2441_p1 }
 0x13a   : > { %2449 = shalt.err (!%p2446_p2)
}
 0x13b   : > { %s2450_s17 = scalar_lea.vmem %s628_s28, 256  ;;  %p2458_p4 = scmp.lt.s32.totalorder %s628_s28, %s628_s28 }
 0x13c   : > { %p2451_p5 = scmp.ne.s32.totalorder %s628_s28, %s2450_s17  ;;  %p2459_p10 = scmp.lt.s32.totalorder %s2450_s17, %s2450_s17 }
 0x13e   : > { %p2453_p7 = pnand %p2451_p5, %p3014_p8  ;;  %p2460_p11 = por %p2459_p10, %p2458_p4 }
 0x140   : > { %p2454_p9 = pneg %p2453_p7 }
 0x142   : > { %p2461_p12 = pnand %p2460_p11, %p2454_p9 }
 0x144   : > { %2464 = shalt.err (!%p2461_p12)
}
 0x145   : > { %2051 = dma.hbm_to_vmem [thread:$0]  (!%p2998_p6), %s3818_s10, 256, %s628_s28, [#allocation18], %s3815_s19, %s3815_s19, %s3767_s14  }
 0x146   : > { %s3819_s12 = sld [smem:[#allocation65_spill]] }
 0x14c   : > { %s2465_s27 = scalar_lea.hbm %s3819_s12, 32 }
 0x14d   : > { %p2466_p13 = scmp.ne.s32.totalorder %s3819_s12, %s2465_s27  ;;  %p2472_p3 = scmp.lt.u32.totalorder %s2465_s27, %s3819_s12 }
 0x14f   : > { %p2468_p0 = pnand %p2466_p13, %p3014_p8 }
 0x151   : > { %p2469_p1 = pneg %p2468_p0 }
 0x153   : > { %p2474_p2 = pnand %p2472_p3, %p2469_p1 }
 0x155   : > { %2477 = shalt.err (!%p2474_p2)
}
 0x156   : > { %s2478_s22 = scalar_lea.vmem %s653_s25, 32  ;;  %p2486_p4 = scmp.lt.s32.totalorder %s653_s25, %s653_s25 }
 0x157   : > { %p2479_p5 = scmp.ne.s32.totalorder %s653_s25, %s2478_s22  ;;  %p2487_p10 = scmp.lt.s32.totalorder %s2478_s22, %s2478_s22 }
 0x159   : > { %p2481_p7 = pnand %p2479_p5, %p3014_p8  ;;  %p2488_p11 = por %p2487_p10, %p2486_p4 }
 0x15b   : > { %p2482_p9 = pneg %p2481_p7 }
 0x15d   : > { %p2489_p12 = pnand %p2488_p11, %p2482_p9 }
 0x15f   : > { %2492 = shalt.err (!%p2489_p12)
}
 0x160   : > { %2057 = dma.hbm_to_vmem [thread:$0]  (!%p2998_p6), %s3819_s12, 32, %s653_s25, [#allocation21]  }
 0x161   : > { %s2846_s16 = smov [#allocation23]   ;;  %s3820_s13 = sld [smem:[#allocation66_spill]] }
 0x162   : > { %s663_s1 = sshll.u32 %s2846_s16, 4  ;;  %s664_s1 = int_to_ptr.vmem [resolvable:$true] %s663_s1 }
 0x167   : > { %s2493_s27 = scalar_lea.hbm %s3820_s13, 32 }
 0x168   : > { %p2494_p13 = scmp.ne.s32.totalorder %s3820_s13, %s2493_s27  ;;  %p2500_p3 = scmp.lt.u32.totalorder %s2493_s27, %s3820_s13 }
 0x16a   : > { %p2496_p0 = pnand %p2494_p13, %p3014_p8 }
 0x16c   : > { %p2497_p1 = pneg %p2496_p0 }
 0x16e   : > { %p2502_p2 = pnand %p2500_p3, %p2497_p1 }
 0x170   : > { %2505 = shalt.err (!%p2502_p2)
}
 0x171   : > { %s2506_s25 = scalar_lea.vmem %s664_s1, 32  ;;  %p2514_p4 = scmp.lt.s32.totalorder %s664_s1, %s664_s1 }
 0x172   : > { %p2507_p5 = scmp.ne.s32.totalorder %s664_s1, %s2506_s25  ;;  %p2515_p10 = scmp.lt.s32.totalorder %s2506_s25, %s2506_s25 }
 0x174   : > { %p2509_p7 = pnand %p2507_p5, %p3014_p8  ;;  %p2516_p11 = por %p2515_p10, %p2514_p4 }
 0x176   : > { %p2510_p9 = pneg %p2509_p7 }
 0x178   : > { %p2517_p12 = pnand %p2516_p11, %p2510_p9 }
 0x17a   : > { %2520 = shalt.err (!%p2517_p12)
}
 0x17b   : > { %s3821_s24 = sld [smem:[#allocation47_spill]]  ;;  %s3822_s17 = sld [smem:[#allocation50_spill]] }
 0x17c   : > { %2060 = dma.hbm_to_vmem [thread:$0]  (!%p2998_p6), %s3820_s13, 32, %s664_s1, [#allocation24]  }
 0x17d   : > { %s3766_s3 = sadd.s32 4294967294, %s2831_s21   ;;  %s3262_s16 = sadd.s32 1, %s2831_s21  }
 0x17e   : > { %s58_s26 = ssub.s32 %s2831_s21, %s3262_s16  ;;  %s61_s0 = sadd.s32 1, %s2827_s20 }
 0x17f   : > { %p59_p8 = scmp.eq.s32.totalorder %s58_s26, 0  ;;  %p68_p13 = scmp.ne.s32.totalorder %s2827_s20, %s2823_s30 }
 0x180   : > { %p69_p0 = scmp.eq.s32.totalorder %s2831_s21, 0  ;;  %p382_p7 = scmp.eq.s32.totalorder %s3766_s3, 1 }
 0x181   : > { %p74_p1 = scmp.ne.s32.totalorder %s2823_s30, %s3821_s24  ;;  %p3825_p2 = scmp.eq.s32.totalorder %s3822_s17, 0 }
 0x182   : > { %s3273_s27 = scalar_select %p59_p8, %s2827_s20, %s61_s0  }
 0x183   : > { %p3275_p3 = por %p69_p0, %p68_p13  ;;  %p3281_p6 = por %p3825_p2, %p74_p1 }
 0x184   : > { %3823 = sst [smem:[#allocation52_spill]] %s3273_s27  ;;  %p376_p5 = scmp.eq.s32.totalorder %s3822_s17, 1 }
 0x185   : > { %p2099_p9 = scmp.lt.s32.totalorder %s2831_s21, 2  ;;  %s674_s2 = sand.u32 1, %s2827_s20  }
 0x186   : > { %p3290_p4 = por %p376_p5, %p68_p13  ;;  %p3294_p10 = por %p382_p7, %p74_p1 }
 0x187   : > { %s1806_s25 = sshll.u32 %s674_s2, 3  ;;  %s1889_s22 = sshll.u32 %s2831_s21, 7 }
 0x188   : > { %s3827_s29 = scalar_select %p3290_p4, 1, 0 }
 0x189   : > { %s3828_s23 = scalar_select %p3294_p10, 1, 0 }
 0x18a   : > { %s3829_s26 = sld [smem:[#allocation53_spill]]  ;;  %s678_s17 = scalar_lea.vmem [#allocation2], %s1806_s25 }
 0x18b   : > { %s685_s3 = sshll.u32 %s678_s17, 4  ;;  %p3308_p11 = pnand %p2099_p9, %p3275_p3  ;;  %s3304_s3 = int_to_ptr.vmem [resolvable:$true] %s685_s3 }
 0x18c   : > { %s3831_s6 = sld [smem:[#allocation54_spill]]  ;;  %s699_s24 = scalar_lea.vmem [#allocation5], %s1806_s25 }
 0x18d   : > { %s3317_s7 = sshll.u32 %s699_s24, 4  ;;  %s3319_s8 = scalar_lea.sflag [#allocation3], %s674_s2  ;;  %s3351_s7 = int_to_ptr.vmem [resolvable:$true] %s3317_s7 }
 0x18e   : > { %p2523_p8 = pneg %p3308_p11 }
 0x190   : > { %s3302_s0 = scalar_lea.hbm %s3829_s26, %s1889_s22  ;;  %s2526_s4 = scalar_lea.hbm %s3829_s26, 256 }
 0x191   : > { %s2521_s17 = scalar_lea.hbm %s3302_s0, 128  ;;  %p2527_p1 = scmp.lt.u32.totalorder %s3302_s0, %s3829_s26 }
 0x192   : > { %s3315_s28 = scalar_lea.hbm %s3831_s6, %s1889_s22  ;;  %p2522_p12 = scmp.ne.s32.totalorder %s3302_s0, %s2521_s17 }
 0x193   : > { %p2528_p3 = scmp.lt.u32.totalorder %s2526_s4, %s2521_s17  ;;  %p2530_p5 = scmp.lt.u32.totalorder %s2521_s17, %s3302_s0 }
 0x194   : > { %p2524_p13 = pnand %p2523_p8, %p2522_p12 }
 0x195   : > { %p2529_p2 = por %p2528_p3, %p2527_p1 }
 0x196   : > { %p2525_p0 = pneg %p2524_p13 }
 0x197   : > { %p2531_p7 = por %p2530_p5, %p2529_p2 }
 0x199   : > { %p2532_p9 = pnand %p2531_p7, %p2525_p0 }
 0x19b   : > { %2535 = shalt.err (!%p2532_p9)
}
 0x19c   : > { %s2536_s2 = scalar_lea.vmem %s3304_s3, 128  ;;  %s2847_s9 = smov [#allocation2]  }
 0x19d   : > { %p2537_p12 = scmp.ne.s32.totalorder %s3304_s3, %s2536_s2  ;;  %s2541_s25 = sshll.u32 %s2847_s9, 4  ;;  %s2542_s25 = int_to_ptr.vmem [resolvable:$false] %s2541_s25 }
 0x19e   : > { %s2543_s24 = scalar_lea.vmem %s2542_s25, 256  ;;  %p2544_p4 = scmp.lt.s32.totalorder %s3304_s3, %s2542_s25 }
 0x19f   : > { %p2539_p13 = pnand %p2537_p12, %p2523_p8  ;;  %p2545_p1 = scmp.lt.s32.totalorder %s2543_s24, %s2536_s2 }
 0x1a1   : > { %p2540_p10 = pneg %p2539_p13  ;;  %p2546_p3 = por %p2545_p1, %p2544_p4 }
 0x1a3   : > { %p2547_p2 = pnand %p2546_p3, %p2540_p10 }
 0x1a5   : > { %2550 = shalt.err (!%p2547_p2)
}
 0x1a6   : > { %s3832_s17 = smov 4   ;;  %s695_s18 = sand.u32 1, %s2831_s21  }
 0x1a7   : > { %2064 = dma.hbm_to_vmem [thread:$0]  (!%p3308_p11), %s3302_s0, 128, %s3304_s3, %s3319_s8, %s3815_s19, %s3815_s19, %s3832_s17  }
 0x1a8   : > { %s3354_s4 = scalar_lea.sflag [#allocation6], %s695_s18  ;;  %s2551_s5 = scalar_lea.hbm %s3315_s28, 128 }
 0x1a9   : > { %p2552_p4 = scmp.ne.s32.totalorder %s3315_s28, %s2551_s5  ;;  %s2556_s9 = scalar_lea.hbm %s3831_s6, 256 }
 0x1aa   : > { %p2557_p5 = scmp.lt.u32.totalorder %s3315_s28, %s3831_s6  ;;  %p2558_p7 = scmp.lt.u32.totalorder %s2556_s9, %s2551_s5 }
 0x1ab   : > { %p2554_p10 = pnand %p2552_p4, %p2523_p8  ;;  %p2560_p12 = scmp.lt.u32.totalorder %s2551_s5, %s3315_s28 }
 0x1ac   : > { %p2559_p9 = por %p2558_p7, %p2557_p5 }
 0x1ad   : > { %p2555_p0 = pneg %p2554_p10 }
 0x1ae   : > { %p2561_p13 = por %p2560_p12, %p2559_p9 }
 0x1b0   : > { %p2562_p1 = pnand %p2561_p13, %p2555_p0 }
 0x1b2   : > { %2565 = shalt.err (!%p2562_p1)
}
 0x1b3   : > { %s2566_s8 = scalar_lea.vmem %s3351_s7, 128  ;;  %s2848_s3 = smov [#allocation5]  }
 0x1b4   : > { %p2567_p3 = scmp.ne.s32.totalorder %s3351_s7, %s2566_s8  ;;  %s2571_s0 = sshll.u32 %s2848_s3, 4  ;;  %s2572_s0 = int_to_ptr.vmem [resolvable:$false] %s2571_s0 }
 0x1b5   : > { %s2573_s18 = scalar_lea.vmem %s2572_s0, 256  ;;  %p2574_p10 = scmp.lt.s32.totalorder %s3351_s7, %s2572_s0 }
 0x1b6   : > { %p2569_p2 = pnand %p2567_p3, %p2523_p8  ;;  %p2575_p5 = scmp.lt.s32.totalorder %s2573_s18, %s2566_s8 }
 0x1b8   : > { %p2570_p4 = pneg %p2569_p2  ;;  %p2576_p7 = por %p2575_p5, %p2574_p10 }
 0x1ba   : > { %p2577_p9 = pnand %p2576_p7, %p2570_p4 }
 0x1bc   : > { %2580 = shalt.err (!%p2577_p9)
}
 0x1bd   : > { %2067 = dma.hbm_to_vmem [thread:$0]  (!%p3308_p11), %s3315_s28, 128, %s3351_s7, %s3354_s4, %s3815_s19, %s3815_s19, %s3832_s17  }
 0x1be   : > { %s3833_s5 = sld [smem:[#allocation51_spill]] }
 0x1c4   : > { %p3834_p8 = scmp.ne.s32.totalorder %s3833_s5, 0 }
 0x1c5   : > { %s3386_s22 = sand.u32 (!%p3834_p8), 1, %s2823_s30  }
 0x1c6   : > { %718 = sbr.rel (%p3834_p8) target bundleno = 880 (0x370), region = 76  ;;  %s3389_s2 = sshll.u32 (!%p3834_p8), %s3386_s22, 3 }
 0x1c7   : > { %s721_s14 = scalar_lea.sflag (!%p3834_p8), [#allocation3], %s3386_s22  ;;  %s724_s9 = scalar_lea.vmem (!%p3834_p8), [#allocation2], %s3389_s2 }
 0x1cd   : > { %2766 = dma.done.wait (%p3281_p6), %s721_s14, 128  }
 0x1ce   : > { %2768 = vsyncadd (%p3281_p6), %s721_s14, 4294967168  ;;  %s3835_s7 = sld [smem:[#allocation50_spill]]  ;;  %s733_s17 = scalar_lea.vmem [#allocation5], %s3389_s2 }
 0x1d4   : > { %s3398_s19 = sand.u32 1, %s3835_s7  }
 0x1d5   : > { %s730_s28 = scalar_lea.sflag [#allocation6], %s3398_s19 }
 0x1d6   : > { %2770 = dma.done.wait (%p3281_p6), %s730_s28, 128  }
 0x1d7   : > { %2772 = vsyncadd (%p3281_p6), %s730_s28, 4294967168  ;;  %p3836_p11 = scmp.eq.s32.totalorder %s3835_s7, 0 }
 0x1d9   : > { %2774 = dma.done.wait (%p3836_p11), [#allocation6], 256   ;;  %p3837_p0 = pmov %p3836_p11 }
 0x1db   : > { %2776 = vsyncadd (%p3837_p0), [#allocation6], 4294967040  ;;  %p3838_p12 = pmov %p3837_p0 }
 0x1dc   : > { %p3839_p13 = pmov %p3837_p0 }
 0x1dd   : > { %2778 = dma.done.wait (%p3838_p12), [#allocation9], 272  }
 0x1de   : > { %2780 = vsyncadd (%p3839_p13), [#allocation9], 4294967024  ;;  %p3840_p1 = pmov %p3837_p0 }
 0x1df   : > { %p3841_p3 = pmov %p3837_p0 }
 0x1e0   : > { %2782 = dma.done.wait (%p3840_p1), [#allocation12], 272  }
 0x1e1   : > { %2784 = vsyncadd (%p3841_p3), [#allocation12], 4294967024  ;;  %p3842_p6 = pmov %p3837_p0 }
 0x1e2   : > { %p3843_p2 = pmov %p3837_p0 }
 0x1e3   : > { %2786 = dma.done.wait (%p3842_p6), [#allocation15], 272  }
 0x1e4   : > { %2788 = vsyncadd (%p3843_p2), [#allocation15], 4294967024  ;;  %p3844_p4 = pmov %p3837_p0 }
 0x1e5   : > { %p3845_p10 = pmov %p3837_p0 }
 0x1e6   : > { %2790 = dma.done.wait (%p3844_p4), [#allocation18], 272  }
 0x1e7   : > { %2792 = vsyncadd (%p3845_p10), [#allocation18], 4294967024  ;;  %p3846_p5 = pmov %p3837_p0 }
 0x1e8   : > { %p3847_p7 = pmov %p3837_p0 }
 0x1e9   : > { %2794 = dma.done.wait (%p3846_p5), [#allocation21], 48  }
 0x1ea   : > { %2796 = vsyncadd (%p3847_p7), [#allocation21], 4294967248  ;;  %p3848_p9 = pmov %p3837_p0 }
 0x1eb   : > { %p3849_p8 = pmov %p3837_p0 }
 0x1ec   : > { %2798 = dma.done.wait (%p3848_p9), [#allocation24], 32  }
 0x1ed   : > { %2800 = vsyncadd (%p3849_p8), [#allocation24], 4294967264  ;;  %v2849_v0 = vmov 0.0   ;;  %vm2850_vm0 = vmmov 0   ;;  %v2165_v1 = vld [vmem:[#allocation10] sm:$0xff]   ;;  %v2166_v2 = vld [vmem:[#allocation10 + $0x8] sm:$0xff]  }
 0x1ee   : > { %1928 = vmatprep.subr.bf16.mxu1 %v2849_v0  ;;  %1920 = vmatprep.subr.bf16.mxu0 %v2849_v0  ;;  %v2167_v3 = vld [vmem:[#allocation7] sm:$0xff]   ;;  %v2169_v4 = vld [vmem:[#allocation7 + $0x8] sm:$0xff]   ;;  %v2168_v5 = vld [vmem:[%s733_s17] sm:$0xff]   ;;  %vm907_vm1 = vcmask 261120   ;;  %vm1291_vm2 = vcmask 519168   ;;  %s1831_s1 = sshll.u32 %s3386_s22, 4 }
 0x1ef   : > { %1932 = vmatprep.mubr.msk.bf16.mxu1 %vm2850_vm0, %v2849_v0  ;;  %1924 = vmatprep.mubr.msk.bf16.mxu0 %vm2850_vm0, %v2849_v0  ;;  %v2170_v6 = vld [vmem:[%s724_s9] sm:$0xff]   ;;  %v2173_v8 = vld [vmem:[#allocation16] sm:$0xff]   ;;  %v1833_v15 = vld [vmem:[#allocation8] ss:$0 sm:$0xff]  ;;  %s844_s4 = scalar_lea.vmem [#allocation28], %s3389_s2  ;;  %s3453_s24 = sshll.u32 %s3835_s7, 7 }
 0x1f0   : > { %1929 = vmatpush3.bf16.msra.mxu1 %v2165_v1  ;;  %1921 = vmatpush3.bf16.msra.mxu0 %v2167_v3  ;;  %v2171_v7 = vld [vmem:[#allocation13] sm:$0xff]   ;;  %v2172_v10 = vld [vmem:[#allocation13 + $0x8] sm:$0xff]   ;;  %v1838_v13 = vld [vmem:[#allocation11] ss:$0 sm:$0xff]  ;;  %s1379_s25 = sshll.u32 %s844_s4, 4  ;;  %s3456_s8 = scalar_lea.vmem [#allocation26], %s3389_s2  ;;  %s3449_s25 = int_to_ptr.vmem [resolvable:$true] %s1379_s25 }
 0x1f1   : > { %1930 = vmatprep.subr.bf16.mxu1 %v2849_v0  ;;  %1922 = vmatprep.subr.bf16.mxu0 %v2849_v0  ;;  %v2174_v9 = vld [vmem:[#allocation16 + $0x8] sm:$0xff]   ;;  %v2175_v11 = vld [vmem:[#allocation19] sm:$0xff]   ;;  %v2176_v12 = vld [vmem:[#allocation19 + $0x8] sm:$0xff]   ;;  %s3461_s0 = scalar_lea.vmem [#allocation31], %s1831_s1  ;;  %s851_s5 = scalar_lea.vmem [#allocation29], %s3389_s2  ;;  %vm1256_vm3 = vcmask 125952  }
 0x1f2   : > { %v1849_v30 = vld [vmem:[#allocation17] ss:$0 sm:$0xff]  ;;  %v1845_v33 = vld [vmem:[#allocation14] ss:$0 sm:$0xff]  ;;  %v1857_v39 = vld [vmem:[#allocation22] ss:$0 sm:$0xff] }
 0x1f3   : > { %v1861_v46 = vld [vmem:[#allocation22 + $0x1] ss:$0 sm:$0xff]  ;;  %s1395_s14 = sshll.u32 %s851_s5, 4  ;;  %s3467_s9 = scalar_lea.vmem [#allocation32], %s1831_s1  ;;  %v1858_v53 = vld [vmem:[#allocation23] ss:$0 sm:$0xff]  ;;  %s3477_s14 = int_to_ptr.vmem [resolvable:$true] %s1395_s14 }
 0x1f4   : > { %1931 = vmatpush3.bf16.msra.mxu1 %v2166_v2  ;;  %1923 = vmatpush3.bf16.msra.mxu0 %v2169_v4  ;;  %s1427_s28 = sshll.u32 %s3467_s9, 4  ;;  %v1862_v54 = vld [vmem:[#allocation23 + $0x1] ss:$0 sm:$0xff]  ;;  %s3850_s18 = sld [smem:[#allocation70_spill]]  ;;  %v1853_v2 = vld [vmem:[#allocation20] ss:$0 sm:$0xff]  ;;  %s3479_s28 = int_to_ptr.vmem [resolvable:$true] %s1427_s28 }
 0x1f5   : > { %1944 = vmatprep.subr.bf16.mxu1 %v2849_v0  ;;  %1936 = vmatprep.subr.bf16.mxu0 %v2849_v0  ;;  %s3489_s10 = scalar_lea.vmem [#allocation25], %s3389_s2  ;;  %s2581_s13 = scalar_lea.vmem %s3477_s14, 128 }
 0x1f6   : > { %p2582_p11 = scmp.ne.s32.totalorder %s3477_s14, %s2581_s13  ;;  %p3852_p0 = scmp.ne.s32.totalorder %s3827_s29, 0 }
 0x1f7   : > { %1933 = vmatmul.mubr.msk.bf16.vlgmr.msra.gmra.mrb[0].mxu1 %vm907_vm1, %v2168_v5  ;;  %1925 = vmatmul.mubr.msk.bf16.vlgmr.msra.gmra.mrb[0].mxu0 %vm907_vm1, %v2170_v6 }
 0x1f8   : > { %1945 = vmatpush3.bf16.msra.mxu1 %v2173_v8  ;;  %1948 = vmatprep.mubr.msk.bf16.mxu1 %vm2850_vm0, %v2849_v0  ;;  %p2583_p12 = pnand %p2582_p11, %p3852_p0 }
 0x1f9   : > { %1946 = vmatprep.subr.bf16.mxu1 %v2849_v0  ;;  %1937 = vmatpush3.bf16.msra.mxu0 %v2171_v7 }
 0x1fa   : > { %1940 = vmatprep.mubr.msk.bf16.mxu0 %vm2850_vm0, %v2849_v0  ;;  %1938 = vmatprep.subr.bf16.mxu0 %v2849_v0  ;;  %s3475_s3 = scalar_lea.hbm %s3850_s18, %s3453_s24  ;;  %p2584_p13 = pneg %p2583_p12 }
 0x1fc   : > { %1947 = vmatpush3.bf16.msra.mxu1 %v2174_v9 }
 0x1fd   : > { %1939 = vmatpush3.bf16.msra.mxu0 %v2172_v10 }
 0x1fe   : > { %1952 = vmatprep.subr.bf16.mxu0 %v2849_v0 }
 0x1ff   : > { %1949 = vmatmul.mubr.msk.bf16.vlgmr.msra.gmra.mrb[4].mxu1 %vm907_vm1, %v2168_v5 }
 0x200   : > { %1941 = vmatmul.mubr.msk.bf16.vlgmr.msra.gmra.mrb[4].mxu0 %vm907_vm1, %v2168_v5 }
 0x201   : > { %1953 = vmatpush3.bf16.msra.mxu0 %v2175_v11  ;;  %1956 = vmatprep.mubr.msk.bf16.mxu0 %vm2850_vm0, %v2849_v0 }
 0x202   : > { %1954 = vmatprep.subr.bf16.mxu0 %v2849_v0 }
 0x205   : > { %1955 = vmatpush3.bf16.msra.mxu0 %v2176_v12 }
 0x208   : > { %1957 = vmatmul.mubr.msk.bf16.vlgmr.msra.gmra.mrb[8].mxu0 %vm907_vm1, %v2168_v5 }
 0x2ca   : > { %v1019_v14 = vpop.f32.mrb[0].mxu1  ;;  %v945_v19 = vpop.f32.mrb[0].mxu0 }
 0x2cb   : > { %v1020_v16 = vadd.f32 %v1838_v13, %v1019_v14  ;;  %v1934_v17 = vpop.f32.mrb[1].mxu1  ;;  %v946_v23 = vadd.f32 %v1833_v15, %v945_v19  ;;  %v1926_v24 = vpop.f32.mrb[1].mxu0 }
 0x2cc   : > { %v1022_v18 = vpop.f32.mrb[2].mxu1  ;;  %v948_v25 = vpop.f32.mrb[2].mxu0 }
 0x2cd   : > { %v1843_v20 = vmul.f32 -1.442695, %v1020_v16  ;;  %v1023_v21 = vadd.f32 %v1838_v13, %v1022_v18  ;;  %v1935_v22 = vpop.f32.mrb[3].mxu1  ;;  %v952_v27 = vmax.f32 %v946_v23, 0.0  ;;  %v949_v28 = vadd.f32 %v1833_v15, %v948_v25  ;;  %v1927_v29 = vpop.f32.mrb[3].mxu0 }
 0x2cf   : > { %2177 = vpow2.f32 %v1843_v20  ;;  %v1844_v26 = vmul.f32 -1.442695, %v1023_v21  ;;  %v1895_v31 = vpack.c.bf16 %v952_v27, %v952_v27  ;;  %v953_v32 = vmax.f32 %v949_v28, 0.0 }
 0x2d1   : > { %2179 = vpow2.f32 %v1844_v26  ;;  %1292 = vst.msk [vmem:[%s844_s4] sm:$0xf] %vm1291_vm2, %v1895_v31  ;;  %v1896_v35 = vpack.c.bf16 %v953_v32, %v953_v32 }
 0x2d2   : > { %v1161_v34 = vpop.f32.mrb[4].mxu1 }
 0x2d3   : > { %v1162_v36 = vadd.f32 %v1849_v30, %v1161_v34  ;;  %v1950_v37 = vpop.f32.mrb[5].mxu1  ;;  %v1095_v38 = vpop.f32.mrb[4].mxu0  ;;  %1293 = vst.msk [vmem:[%s844_s4 + $0x4] sm:$0xf] %vm1291_vm2, %v1896_v35  ;;  %s3851_s4 = sld [smem:[#allocation68_spill]] }
 0x2d4   : > { %v1164_v40 = vpop.f32.mrb[6].mxu1  ;;  %v1096_v41 = vadd.f32 %v1845_v33, %v1095_v38  ;;  %v1942_v42 = vpop.f32.mrb[5].mxu0 }
 0x2d5   : > { %v1168_v43 = vmax.f32 %v1162_v36, 0.0  ;;  %v1165_v44 = vadd.f32 %v1849_v30, %v1164_v40  ;;  %v1951_v45 = vpop.f32.mrb[7].mxu1  ;;  %v1098_v47 = vpop.f32.mrb[6].mxu0 }
 0x2d6   : > { %v1102_v48 = vmax.f32 %v1096_v41, 0.0  ;;  %v1099_v49 = vadd.f32 %v1845_v33, %v1098_v47  ;;  %v1943_v50 = vpop.f32.mrb[7].mxu0 }
 0x2d7   : > { %v1897_v51 = vpack.c.bf16 %v1168_v43, %v1168_v43  ;;  %v1169_v52 = vmax.f32 %v1165_v44, 0.0 }
 0x2d8   : > { %v1239_v56 = vmul.f32 %v1857_v39, %v1102_v48  ;;  %v1264_v57 = vmul.f32 %v1861_v46, %v1102_v48  ;;  %v1103_v58 = vmax.f32 %v1099_v49, 0.0 }
 0x2d9   : > { %v2178_v55 = vpop.eup %2177  ;;  %1302 = vst.msk [vmem:[%s851_s5] sm:$0xf] %vm1291_vm2, %v1897_v51  ;;  %v1898_v59 = vpack.c.bf16 %v1169_v52, %v1169_v52  ;;  %s3486_s6 = scalar_lea.hbm %s3851_s4, %s3453_s24 }
 0x2da   : > { %v1032_v60 = vadd.f32 1.0, %v2178_v55  ;;  %v1246_v62 = vadd.f32 %v1858_v53, %v1239_v56  ;;  %v1271_v63 = vadd.f32 %v1862_v54, %v1264_v57  ;;  %v1240_v0 = vmul.f32 %v1857_v39, %v1103_v58 }
 0x2db   : > { %v2180_v61 = vpop.eup %2179  ;;  %v1265_v1 = vmul.f32 %v1861_v46, %v1103_v58  ;;  %1303 = vst.msk [vmem:[%s851_s5 + $0x4] sm:$0xf] %vm1291_vm2, %v1898_v59  ;;  %v1227_v4 = vpop.f32.mrb[8].mxu0  ;;  %s2851_s5 = smov [#allocation29]  }
 0x2dc   : > { %2181 = vrcp.f32 %v1032_v60  ;;  %v1033_v3 = vadd.f32 1.0, %v2180_v61  ;;  %s2585_s15 = sshll.u32 %s2851_s5, 4  ;;  %s2586_s15 = int_to_ptr.vmem [resolvable:$false] %s2585_s15 }
 0x2dd   : > { %s2587_s1 = scalar_lea.vmem %s2586_s15, 256  ;;  %p2588_p1 = scmp.lt.s32.totalorder %s3477_s14, %s2586_s15 }
 0x2de   : > { %p2589_p3 = scmp.lt.s32.totalorder %s2587_s1, %s2581_s13 }
 0x2e0   : > { %p2590_p6 = por %p2589_p3, %p2588_p1 }
 0x2e2   : > { %p2591_p2 = pnand %p2590_p6, %p2584_p13 }
 0x2e4   : > { %2594 = shalt.err (!%p2591_p2)
}
 0x2e5   : > { %s2595_s2 = scalar_lea.hbm %s3475_s3, 128  ;;  %s2599_s5 = scalar_lea.hbm %s3850_s18, 256 }
 0x2e6   : > { %p2596_p4 = scmp.ne.s32.totalorder %s3475_s3, %s2595_s2  ;;  %p2600_p7 = scmp.lt.u32.totalorder %s3475_s3, %s3850_s18 }
 0x2e7   : > { %p2601_p9 = scmp.lt.u32.totalorder %s2599_s5, %s2595_s2  ;;  %p2603_p11 = scmp.lt.u32.totalorder %s2595_s2, %s3475_s3 }
 0x2e8   : > { %p2597_p10 = pnand %p2596_p4, %p3852_p0 }
 0x2e9   : > { %p2602_p8 = por %p2601_p9, %p2600_p7 }
 0x2ea   : > { %p2598_p5 = pneg %p2597_p10 }
 0x2eb   : > { %p2604_p12 = por %p2603_p11, %p2602_p8 }
 0x2ed   : > { %p2605_p13 = pnand %p2604_p12, %p2598_p5 }
 0x2ef   : > { %2608 = shalt.err (!%p2605_p13)
}
 0x2f0   : > { %s3772_s13 = smov 64   ;;  %s3774_s11 = smov 4   ;;  %v1891_v5 = vpack.c.bf16 %v1246_v62, %v1246_v62  ;;  %v1893_v6 = vpack.c.bf16 %v1271_v63, %v1271_v63  ;;  %v1247_v7 = vadd.f32 %v1858_v53, %v1240_v0  ;;  %v1272_v8 = vadd.f32 %v1862_v54, %v1265_v1  ;;  %v1958_v9 = vpop.f32.mrb[9].mxu0 }
 0x2f1   : > { %s3853_s12 = scalar_lea.sflag [#allocation30], %s3398_s19  ;;  %s3854_s1 = sshll.u32 %s3456_s8, 4  ;;  %2183 = vrcp.f32 %v1033_v3  ;;  %v1228_v10 = vadd.f32 %v1853_v2, %v1227_v4  ;;  %v1230_v11 = vpop.f32.mrb[10].mxu0  ;;  %s3521_s1 = int_to_ptr.vmem [resolvable:$true] %s3854_s1 }
 0x2f2   : > { %2015 = dma.vmem_to_hbm [thread:$0]  (%p3852_p0), %s3477_s14, 128, %s3475_s3, %s3853_s12, %s3772_s13, %s3772_s13, %s3774_s11   ;;  %v1892_v12 = vpack.c.bf16 %v1247_v7, %v1247_v7  ;;  %v1894_v13 = vpack.c.bf16 %v1272_v8, %v1272_v8  ;;  %v1231_v14 = vadd.f32 %v1853_v2, %v1230_v11  ;;  %v1959_v15 = vpop.f32.mrb[11].mxu0 }
 0x2f3   : > { %s3855_s14 = sld [smem:[#allocation67_spill]]  ;;  %s1903_s5 = sshll.u32 %s3835_s7, 8  ;;  %1257 = vst.msk [vmem:[%s3489_s10] sm:$0xf] %vm1256_vm3, %v1891_v5  ;;  %1281 = vst.msk [vmem:[%s3456_s8] sm:$0xf] %vm1256_vm3, %v1893_v6 }
 0x2f4   : > { %s3856_s15 = sshll.u32 %s3489_s10, 4  ;;  %s3857_s3 = sld [smem:[#allocation69_spill]]  ;;  %1306 = vst.msk [vmem:[%s3467_s9] sm:$0xff] %vm907_vm1, %v1228_v10  ;;  %1307 = vst.msk [vmem:[%s3467_s9 + $0x8] sm:$0xff] %vm907_vm1, %v1231_v14  ;;  %s3536_s15 = int_to_ptr.vmem [resolvable:$true] %s3856_s15 }
 0x2f5   : > { %1258 = vst.msk [vmem:[%s3489_s10 + $0x4] sm:$0xf] %vm1256_vm3, %v1892_v12  ;;  %1282 = vst.msk [vmem:[%s3456_s8 + $0x4] sm:$0xf] %vm1256_vm3, %v1894_v13  ;;  %s3858_s26 = sld [smem:[#allocation72_spill]]  ;;  %s1314_s20 = scalar_lea.sflag [#allocation27], %s3398_s19 }
 0x2f6   : > { %s2609_s30 = scalar_lea.vmem %s3521_s1, 128 }
 0x2f7   : > { %p2610_p1 = scmp.ne.s32.totalorder %s3521_s1, %s2609_s30 }
 0x2f9   : > { %s3527_s17 = scalar_lea.hbm %s3855_s14, %s3453_s24  ;;  %p2611_p3 = pnand %p2610_p1, %p3852_p0 }
 0x2fa   : > { %s3542_s13 = scalar_lea.hbm %s3857_s3, %s3453_s24  ;;  %s2854_s24 = smov [#allocation26]  }
 0x2fb   : > { %s3557_s27 = scalar_lea.hbm %s3858_s26, %s1903_s5  ;;  %p2612_p6 = pneg %p2611_p3 }
 0x2fc   : > { %s2613_s12 = sshll.u32 %s2854_s24, 4  ;;  %s2614_s12 = int_to_ptr.vmem [resolvable:$false] %s2613_s12 }
 0x2fd   : > { %s2615_s10 = scalar_lea.vmem %s2614_s12, 256  ;;  %p2616_p2 = scmp.lt.s32.totalorder %s3521_s1, %s2614_s12 }
 0x2fe   : > { %p2617_p4 = scmp.lt.s32.totalorder %s2615_s10, %s2609_s30 }
 0x300   : > { %p2618_p10 = por %p2617_p4, %p2616_p2 }
 0x302   : > { %p2619_p5 = pnand %p2618_p10, %p2612_p6 }
 0x304   : > { %2622 = shalt.err (!%p2619_p5)
}
 0x305   : > { %s2623_s8 = scalar_lea.hbm %s3486_s6, 128  ;;  %s2627_s11 = scalar_lea.hbm %s3851_s4, 256 }
 0x306   : > { %p2624_p7 = scmp.ne.s32.totalorder %s3486_s6, %s2623_s8  ;;  %p2628_p11 = scmp.lt.u32.totalorder %s3486_s6, %s3851_s4 }
 0x307   : > { %p2629_p12 = scmp.lt.u32.totalorder %s2627_s11, %s2623_s8  ;;  %p2631_p1 = scmp.lt.u32.totalorder %s2623_s8, %s3486_s6 }
 0x308   : > { %p2625_p9 = pnand %p2624_p7, %p3852_p0 }
 0x309   : > { %p2630_p13 = por %p2629_p12, %p2628_p11 }
 0x30a   : > { %p2626_p8 = pneg %p2625_p9 }
 0x30b   : > { %p2632_p3 = por %p2631_p1, %p2630_p13 }
 0x30d   : > { %p2633_p6 = pnand %p2632_p3, %p2626_p8 }
 0x30f   : > { %2636 = shalt.err (!%p2633_p6)
}
 0x310   : > { %s3859_s30 = smov 4   ;;  %s3860_s12 = smov 64  }
 0x311   : > { %2013 = dma.vmem_to_hbm [thread:$0]  (%p3852_p0), %s3521_s1, 128, %s3486_s6, %s1314_s20, %s3860_s12, %s3860_s12, %s3859_s30  }
 0x312   : > { %s1309_s10 = scalar_lea.sflag [#allocation4], %s3386_s22  ;;  %s2637_s8 = scalar_lea.vmem %s3536_s15, 128 }
 0x313   : > { %p2638_p2 = scmp.ne.s32.totalorder %s3536_s15, %s2637_s8  ;;  %s2855_s18 = smov [#allocation25]  }
 0x314   : > { %s2641_s9 = sshll.u32 %s2855_s18, 4  ;;  %s2642_s9 = int_to_ptr.vmem [resolvable:$false] %s2641_s9 }
 0x315   : > { %p2639_p4 = pnand %p2638_p2, %p3852_p0  ;;  %s2643_s11 = scalar_lea.vmem %s2642_s9, 256 }
 0x316   : > { %p2644_p5 = scmp.lt.s32.totalorder %s3536_s15, %s2642_s9  ;;  %p2645_p7 = scmp.lt.s32.totalorder %s2643_s11, %s2637_s8 }
 0x317   : > { %p2640_p10 = pneg %p2639_p4 }
 0x318   : > { %p2646_p9 = por %p2645_p7, %p2644_p5 }
 0x31a   : > { %p2647_p8 = pnand %p2646_p9, %p2640_p10 }
 0x31c   : > { %2650 = shalt.err (!%p2647_p8)
}
 0x31d   : > { %s2651_s6 = scalar_lea.hbm %s3527_s17, 128  ;;  %s2655_s24 = scalar_lea.hbm %s3855_s14, 256 }
 0x31e   : > { %p2652_p11 = scmp.ne.s32.totalorder %s3527_s17, %s2651_s6  ;;  %p2656_p1 = scmp.lt.u32.totalorder %s3527_s17, %s3855_s14 }
 0x31f   : > { %p2657_p3 = scmp.lt.u32.totalorder %s2655_s24, %s2651_s6  ;;  %p2659_p2 = scmp.lt.u32.totalorder %s2651_s6, %s3527_s17 }
 0x320   : > { %p2653_p12 = pnand %p2652_p11, %p3852_p0 }
 0x321   : > { %p2658_p6 = por %p2657_p3, %p2656_p1 }
 0x322   : > { %p2654_p13 = pneg %p2653_p12 }
 0x323   : > { %p2660_p4 = por %p2659_p2, %p2658_p6 }
 0x325   : > { %p2661_p10 = pnand %p2660_p4, %p2654_p13 }
 0x327   : > { %2664 = shalt.err (!%p2661_p10)
}
 0x328   : > { %2012 = dma.vmem_to_hbm [thread:$0]  (%p3852_p0), %s3536_s15, 128, %s3527_s17, %s1309_s10, %s3860_s12, %s3860_s12, %s3859_s30  }
 0x329   : > { %s2665_s8 = scalar_lea.vmem %s3449_s25, 128  ;;  %s2856_s11 = smov [#allocation28]  }
 0x32a   : > { %p2666_p5 = scmp.ne.s32.totalorder %s3449_s25, %s2665_s8  ;;  %s2669_s6 = sshll.u32 %s2856_s11, 4  ;;  %s2670_s6 = int_to_ptr.vmem [resolvable:$false] %s2669_s6 }
 0x32b   : > { %s2671_s1 = scalar_lea.vmem %s2670_s6, 256  ;;  %p2672_p8 = scmp.lt.s32.totalorder %s3449_s25, %s2670_s6 }
 0x32c   : > { %p2667_p7 = pnand %p2666_p5, %p3852_p0  ;;  %p2673_p11 = scmp.lt.s32.totalorder %s2671_s1, %s2665_s8 }
 0x32e   : > { %p2668_p9 = pneg %p2667_p7  ;;  %p2674_p12 = por %p2673_p11, %p2672_p8 }
 0x330   : > { %p2675_p13 = pnand %p2674_p12, %p2668_p9 }
 0x332   : > { %2678 = shalt.err (!%p2675_p13)
}
 0x333   : > { %s2679_s17 = scalar_lea.hbm %s3542_s13, 128  ;;  %s2683_s2 = scalar_lea.hbm %s3857_s3, 256 }
 0x334   : > { %p2680_p1 = scmp.ne.s32.totalorder %s3542_s13, %s2679_s17  ;;  %p2684_p2 = scmp.lt.u32.totalorder %s3542_s13, %s3857_s3 }
 0x335   : > { %p2685_p4 = scmp.lt.u32.totalorder %s2683_s2, %s2679_s17  ;;  %p2687_p5 = scmp.lt.u32.totalorder %s2679_s17, %s3542_s13 }
 0x336   : > { %p2681_p3 = pnand %p2680_p1, %p3852_p0 }
 0x337   : > { %p2686_p10 = por %p2685_p4, %p2684_p2 }
 0x338   : > { %p2682_p6 = pneg %p2681_p3 }
 0x339   : > { %p2688_p7 = por %p2687_p5, %p2686_p10 }
 0x33b   : > { %p2689_p9 = pnand %p2688_p7, %p2682_p6 }
 0x33d   : > { %2692 = shalt.err (!%p2689_p9)
}
 0x33e   : > { %2014 = dma.vmem_to_hbm [thread:$0]  (%p3852_p0), %s3449_s25, 128, %s3542_s13, %s1314_s20, %s3860_s12, %s3860_s12, %s3859_s30  }
 0x33f   : > { %s1334_s9 = scalar_lea.sflag [#allocation33], %s3386_s22  ;;  %s2693_s8 = scalar_lea.vmem %s3479_s28, 256 }
 0x340   : > { %p2694_p8 = scmp.ne.s32.totalorder %s3479_s28, %s2693_s8  ;;  %s2857_s11 = smov [#allocation32]  }
 0x341   : > { %s2697_s6 = sshll.u32 %s2857_s11, 4  ;;  %s2698_s6 = int_to_ptr.vmem [resolvable:$false] %s2697_s6 }
 0x342   : > { %p2695_p11 = pnand %p2694_p8, %p3852_p0  ;;  %s2699_s1 = scalar_lea.vmem %s2698_s6, 512 }
 0x343   : > { %p2700_p13 = scmp.lt.s32.totalorder %s3479_s28, %s2698_s6  ;;  %p2701_p1 = scmp.lt.s32.totalorder %s2699_s1, %s2693_s8 }
 0x344   : > { %p2696_p12 = pneg %p2695_p11 }
 0x345   : > { %p2702_p3 = por %p2701_p1, %p2700_p13 }
 0x347   : > { %p2703_p6 = pnand %p2702_p3, %p2696_p12 }
 0x349   : > { %2706 = shalt.err (!%p2703_p6)
}
 0x34a   : > { %s2707_s20 = scalar_lea.hbm %s3557_s27, 256  ;;  %s2711_s30 = scalar_lea.hbm %s3858_s26, 512 }
 0x34b   : > { %p2708_p2 = scmp.ne.s32.totalorder %s3557_s27, %s2707_s20  ;;  %p2712_p5 = scmp.lt.u32.totalorder %s3557_s27, %s3858_s26 }
 0x34c   : > { %p2713_p7 = scmp.lt.u32.totalorder %s2711_s30, %s2707_s20  ;;  %p2715_p8 = scmp.lt.u32.totalorder %s2707_s20, %s3557_s27 }
 0x34d   : > { %p2709_p4 = pnand %p2708_p2, %p3852_p0 }
 0x34e   : > { %p2714_p9 = por %p2713_p7, %p2712_p5 }
 0x34f   : > { %p2710_p10 = pneg %p2709_p4 }
 0x350   : > { %p2716_p11 = por %p2715_p8, %p2714_p9 }
 0x352   : > { %p2717_p12 = pnand %p2716_p11, %p2710_p10 }
 0x354   : > { %2720 = shalt.err (!%p2717_p12)
}
 0x355   : > { %s2858_s15 = smov 128   ;;  %s2859_s10 = smov 8   ;;  %v2182_v16 = vpop.eup %2181 }
 0x356   : > { %2017 = dma.vmem_to_hbm [thread:$0]  (%p3852_p0), %s3479_s28, 256, %s3557_s27, %s1334_s9, %s2858_s15, %s2858_s15, %s2859_s10   ;;  %v2184_v17 = vpop.eup %2183 }
 0x357   : > { %1304 = vst.msk [vmem:[%s3461_s0] sm:$0xff] %vm907_vm1, %v2182_v16  ;;  %s3861_s2 = sshll.u32 %s3461_s0, 4  ;;  %s3862_s8 = sld [smem:[#allocation71_spill]]  ;;  %1305 = vst.msk [vmem:[%s3461_s0 + $0x8] sm:$0xff] %vm907_vm1, %v2184_v17  ;;  %s3670_s2 = int_to_ptr.vmem [resolvable:$true] %s3861_s2 }
 0x358   : > { %s2721_s22 = scalar_lea.vmem %s3670_s2, 256  ;;  %s2860_s27 = smov [#allocation31]  }
 0x359   : > { %p2722_p13 = scmp.ne.s32.totalorder %s3670_s2, %s2721_s22  ;;  %s2725_s28 = sshll.u32 %s2860_s27, 4  ;;  %s2726_s28 = int_to_ptr.vmem [resolvable:$false] %s2725_s28 }
 0x35a   : > { %s2727_s7 = scalar_lea.vmem %s2726_s28, 512  ;;  %p2728_p6 = scmp.lt.s32.totalorder %s3670_s2, %s2726_s28 }
 0x35b   : > { %p2723_p1 = pnand %p2722_p13, %p3852_p0  ;;  %p2729_p2 = scmp.lt.s32.totalorder %s2727_s7, %s2721_s22 }
 0x35d   : > { %s3677_s11 = scalar_lea.hbm %s3862_s8, %s1903_s5  ;;  %p2724_p3 = pneg %p2723_p1 }
 0x35e   : > { %p2730_p4 = por %p2729_p2, %p2728_p6 }
 0x360   : > { %p2731_p10 = pnand %p2730_p4, %p2724_p3 }
 0x362   : > { %2734 = shalt.err (!%p2731_p10)
}
 0x363   : > { %s2735_s0 = scalar_lea.hbm %s3677_s11, 256  ;;  %s2739_s6 = scalar_lea.hbm %s3862_s8, 512 }
 0x364   : > { %p2736_p5 = scmp.ne.s32.totalorder %s3677_s11, %s2735_s0  ;;  %p2740_p8 = scmp.lt.u32.totalorder %s3677_s11, %s3862_s8 }
 0x365   : > { %p2741_p11 = scmp.lt.u32.totalorder %s2739_s6, %s2735_s0  ;;  %p2743_p13 = scmp.lt.u32.totalorder %s2735_s0, %s3677_s11 }
 0x366   : > { %p2737_p7 = pnand %p2736_p5, %p3852_p0 }
 0x367   : > { %p2742_p12 = por %p2741_p11, %p2740_p8 }
 0x368   : > { %p2738_p9 = pneg %p2737_p7 }
 0x369   : > { %p2744_p1 = por %p2743_p13, %p2742_p12 }
 0x36b   : > { %p2745_p3 = pnand %p2744_p1, %p2738_p9 }
 0x36d   : > { %2748 = shalt.err (!%p2745_p3)
}
 0x36e   : > { %s3863_s25 = scalar_lea.sflag [#allocation30], %s3398_s19 }
 0x36f   : > { %2016 = dma.vmem_to_hbm [thread:$0]  (%p3852_p0), %s3670_s2, 256, %s3677_s11, %s3863_s25, %s2858_s15, %s2858_s15, %s2859_s10  }
 0x370 PF: > { %s3864_s13 = sld [smem:[#allocation47_spill]]  ;;  %p3865_p6 = scmp.ne.s32.totalorder %s3828_s23, 0 }
 0x371   : > { %p3866_p2 = scmp.ge.s32.totalorder %s2831_s21, 2 }
 0x373   : > { %p2069_p4 = pnand %p3866_p2, %p3865_p6 }
 0x376   : > { %s1442_s30 = sand.u32 1, %s3864_s13  }
 0x377   : > { %s1443_s12 = scalar_lea.sflag [#allocation4], %s1442_s30 }
 0x378   : > { %2802 = dma.done.wait (!%p2069_p4), %s1443_s12, 128  }
 0x379   : > { %2804 = vsyncadd (!%p2069_p4), %s1443_s12, 4294967168  ;;  %s3867_s29 = sadd.s32 4294967294, %s2831_s21  }
 0x37a   : > { %s1451_s17 = sand.u32 1, %s3867_s29  }
 0x37b   : > { %s1452_s24 = scalar_lea.sflag [#allocation27], %s1451_s17 }
 0x37c   : > { %2806 = dma.done.wait (!%p2069_p4), %s1452_s24, 256  }
 0x37d   : > { %2808 = vsyncadd (!%p2069_p4), %s1452_s24, 4294967040  ;;  %s1470_s19 = scalar_lea.sflag [#allocation30], %s1451_s17 }
 0x37e   : > { %2810 = dma.done.wait (!%p2069_p4), %s1470_s19, 384  }
 0x37f   : > { %2812 = vsyncadd (!%p2069_p4), %s1470_s19, 4294966912  ;;  %s1488_s15 = scalar_lea.sflag [#allocation33], %s1442_s30 }
 0x380   : > { %2814 = dma.done.wait (!%p2069_p4), %s1488_s15, 256  }
 0x381   : > { %2816 = vsyncadd (!%p2069_p4), %s1488_s15, 4294967040  ;;  %s3868_s0 = sld [smem:[#allocation48_spill]]  ;;  %s3869_s30 = sld [smem:[#allocation49_spill]] }
 0x382   : > { %s3870_s20 = sld [smem:[#allocation52_spill]]  ;;  %p51_p0 = scmp.ge.s32.totalorder %s3262_s16, 4  }
 0x383   : > { %s3871_s21 = smov %s3262_s16 }
 0x384   :  { %53 = sbr.rel (!%p51_p0) target bundleno = 40 (0x28), region = 263 }
 0x38b   :  { %1493 = vsyncpa [#allocation3], 1 }
 0x38c   :  { %1495 = vsyncpa [#allocation3 + $0x1], 1 }
 0x38d   :  { %1496 = vsyncpa [#allocation6], 1 }
 0x38e   :  { %1498 = vsyncpa [#allocation6 + $0x1], 1 }
 0x38f   :  { %1499 = vsyncpa [#allocation9], 1 }
 0x390   :  { %1500 = vsyncpa [#allocation12], 1 }
 0x391   :  { %1501 = vsyncpa [#allocation15], 1 }
 0x392   :  { %1502 = vsyncpa [#allocation18], 1 }
 0x393   :  { %1503 = vsyncpa [#allocation21], 1 }
 0x394   :  { %1504 = vsyncpa [#allocation24], 1 }
 0x395   :  { %1505 = vsyncpa [#allocation4], 1 }
 0x396   :  { %1507 = vsyncpa [#allocation4 + $0x1], 1 }
 0x397   :  { %1508 = vsyncpa [#allocation27], 1 }
 0x398   :  { %1510 = vsyncpa [#allocation27 + $0x1], 1 }
 0x399   :  { %1511 = vsyncpa [#allocation30], 1 }
 0x39a   :  { %1513 = vsyncpa [#allocation30 + $0x1], 1 }
 0x39b   :  { %1514 = vsyncpa [#allocation33], 1 }
 0x39c   :  { %1516 = vsyncpa [#allocation33 + $0x1], 1 }

</bundles_post_ra>
